<compile_context>
chip_gen: v7x
topology: tpu7x:2x2x1
jax: 0.10.0
libtpu: 0.0.40
codegen_flags: <defaults>
</compile_context>

<pallas_src>
import jax
import jax.numpy as jnp
from jax import lax
from jax.experimental import pallas as pl
from jax.experimental.pallas import tpu as pltpu


def _selector_kernel(cov_ref, af_ref, out_ref, aug_ref):
    # cov_ref: (n, n, bt)   columns of Sigma  [col, row, batch-in-lanes]
    # af_ref : (2, n, bt)   af[0] = action, af[1] = feedback  [*, row, batch]
    # out_ref: (n, bt)      corrected action (lane-dense)
    # aug_ref: (n+1, n, bt) scratch; slab j = column j of [Sigma + I | f]
    n = cov_ref.shape[0]
    bt = cov_ref.shape[2]
    n_aug = n + 1

    row_ids = lax.broadcasted_iota(jnp.int32, (n, bt), 0)   # hoisted constant

    # ---- init scratch with the columns of [Sigma + I | f] ------------------
    def init_col(j, carry):
        ej = (row_ids == j).astype(jnp.float32)              # e_j, (n, bt)
        aug_ref[j] = cov_ref[j] + ej
        return carry

    lax.fori_loop(0, n, init_col, 0)
    aug_ref[n] = af_ref[1]                                    # RHS column f

    # ---- Gauss-Jordan elimination; pivot index k is static -----------------
    # No pivoting: Sigma is PSD, so Sigma + I has all pivots >= 1.
    for k in range(n):
        colk = aug_ref[k]                                     # pivot column (n, bt)
        piv = colk[k:k + 1, :]                                # (1, bt)
        inv_p = pl.reciprocal(piv, approx=True)               # EUP slot
        inv_p = inv_p * (2.0 - piv * inv_p)                   # 1 Newton step -> ~f32
        ek = (row_ids == k).astype(jnp.float32)               # (n, bt)
        col_s = (colk - ek) * inv_p                           # == where(i==k, piv-1, col)/piv

        def update_col(j, carry, col_s=col_s, k=k):
            slab = aug_ref[j]                                 # column j, (n, bt)
            r = slab[k:k + 1, :]                              # pivot-row entry (1, bt)
            aug_ref[j] = slab - r * col_s                     # rank-1 update (lane dense)
            return carry

        lax.fori_loop(0, n_aug, update_col, 0)

    # aug column n now holds x = (Sigma + I)^{-1} f ; corrected = a + f - x.
    out_ref[...] = (af_ref[0] + af_ref[1] - aug_ref[n]).astype(out_ref.dtype)


def selector_batched(policy_action, feedback, policy_covariance, *, block_b=128):
    """policy_action: (B, n), feedback: (B, n), policy_covariance: (B, n, n) -> (B, n)."""
    B, n = policy_action.shape
    act = jnp.asarray(policy_action, jnp.float32)
    fb = jnp.asarray(feedback, jnp.float32)
    cov = jnp.asarray(policy_covariance, jnp.float32)

    bp = pl.cdiv(B, block_b) * block_b
    if bp != B:
        pad = bp - B  # zero padding: Sigma=0 -> Sigma+I=I, pivots=1, numerically safe
        act = jnp.pad(act, ((0, pad), (0, 0)))
        fb = jnp.pad(fb, ((0, pad), (0, 0)))
        cov = jnp.pad(cov, ((0, pad), (0, 0), (0, 0)))

    # Lane-batched layouts: batch on the last (lane) dim.
    cov_t = jnp.transpose(cov, (2, 1, 0))                     # (col, row, B)
    af = jnp.stack([act.T, fb.T], axis=0)                     # (2, row, B) packed

    out = pl.pallas_call(
        _selector_kernel,
        out_shape=jax.ShapeDtypeStruct((n, bp), jnp.float32),
        grid_spec=pltpu.PrefetchScalarGridSpec(
            num_scalar_prefetch=0,
            grid=(bp // block_b,),
            in_specs=[
                pl.BlockSpec((n, n, block_b), lambda b: (0, 0, b)),
                pl.BlockSpec((2, n, block_b), lambda b: (0, 0, b)),
            ],
            out_specs=pl.BlockSpec((n, block_b), lambda b: (0, b)),
            scratch_shapes=[pltpu.VMEM((n + 1, n, block_b), jnp.float32)],
        ),
        compiler_params=pltpu.CompilerParams(
            dimension_semantics=("parallel",),   # shards batch across v7x's 2 TCs
        ),
    )(cov_t, af)
    return out[:, :B].T


def selector(policy_action, feedback, policy_covariance):
    """Single-sample API matching the PyTorch module: (n,), (n,), (n, n) -> (n,)."""
    out = selector_batched(policy_action[None], feedback[None], policy_covariance[None])
    return out[0]


if __name__ == "__main__":
    n = 32
    B = 256
    key = jax.random.PRNGKey(0)
    k1, k2, k3 = jax.random.split(key, 3)

    policy_action = jax.random.normal(k1, (B, n), jnp.float32)
    feedback = jax.random.normal(k2, (B, n), jnp.float32)
    a_mat = jax.random.normal(k3, (B, n, n), jnp.float32)
    policy_covariance = jnp.einsum("bij,bkj->bik", a_mat, a_mat) / n   # SPD per sample

    out = jax.block_until_ready(
        selector_batched(policy_action, feedback, policy_covariance))

    # Reference (plain JAX) for the PyTorch semantics.
    eye = jnp.eye(n, dtype=jnp.float32)
    x = jnp.linalg.solve(policy_covariance + eye, feedback[..., None])[..., 0]
    ref = policy_action + jnp.einsum("bij,bj->bi", policy_covariance, x)
    assert jnp.allclose(out, ref, atol=2e-3, rtol=2e-3), float(jnp.max(jnp.abs(out - ref)))

    # Single-sample path (exact module signature); also exercises batch padding.
    out1 = jax.block_until_ready(
        selector(policy_action[0], feedback[0], policy_covariance[0]))
    assert jnp.allclose(out1, ref[0], atol=2e-3, rtol=2e-3), float(jnp.max(jnp.abs(out1 - ref[0])))

    print("KERNEL_OK")
</pallas_src>

<mosaic_0001>
module attributes {stable_mosaic.version = 11 : i64} {
  func.func @_selector_kernel(%arg0: i32, %arg1: memref<32x32x128xf32, #tpu.memory_space<vmem>>, %arg2: memref<2x32x128xf32, #tpu.memory_space<vmem>>, %arg3: memref<32x128xf32, #tpu.memory_space<vmem>>, %arg4: memref<33x32x128xf32, #tpu.memory_space<vmem>>) attributes {dimension_semantics = [#tpu.dimension_semantics<parallel>], iteration_bounds = array<i64: 2>, scalar_prefetch = 0 : i64, scratch_operands = 1 : i64, tpu.core_type = #tpu.core_type<tc>, window_params = [{transform_indices = @transform_0, window_bounds = array<i64: 32, 32, 128>}, {transform_indices = @transform_1, window_bounds = array<i64: 2, 32, 128>}, {transform_indices = @transform_2, window_bounds = array<i64: 32, 128>}]} {
    %0 = tpu.iota {dimensions = array<i32: 0>} : vector<32x128xi32>
    %c0_i32 = arith.constant 0 : i32
    %c32_i32 = arith.constant 32 : i32
    %1 = arith.addi %c0_i32, %c32_i32 : i32
    %c1_i32 = arith.constant 1 : i32
    scf.for %arg5 = %c0_i32 to %1 step %c1_i32  : i32 {
      %528 = vector.broadcast %arg5 : i32 to vector<32x128xi32>
      %529 = arith.cmpi eq, %0, %528 : vector<32x128xi32>
      %530 = arith.extui %529 : vector<32x128xi1> to vector<32x128xi32>
      %531 = arith.sitofp %530 : vector<32x128xi32> to vector<32x128xf32>
      %532 = arith.index_cast %arg5 : i32 to index
      %c0_241 = arith.constant 0 : index
      %c0_242 = arith.constant 0 : index
      %533 = vector.load %arg1[%532, %c0_241, %c0_242] : memref<32x32x128xf32, #tpu.memory_space<vmem>>, vector<1x32x128xf32>
      %534 = vector.shape_cast %533 : vector<1x32x128xf32> to vector<32x128xf32>
      %535 = arith.addf %534, %531 : vector<32x128xf32>
      %536 = arith.index_cast %arg5 : i32 to index
      %c0_243 = arith.constant 0 : index
      %c0_244 = arith.constant 0 : index
      %537 = vector.load %arg4[%536, %c0_243, %c0_244] : memref<33x32x128xf32, #tpu.memory_space<vmem>>, vector<1x32x128xf32>
      %538 = vector.shape_cast %537 : vector<1x32x128xf32> to vector<32x128xf32>
      %539 = vector.shape_cast %535 : vector<32x128xf32> to vector<1x32x128xf32>
      tpu.vector_store %arg4[%536, %c0_243, %c0_244], %539 {strides = array<i32>} : memref<33x32x128xf32, #tpu.memory_space<vmem>>, vector<1x32x128xf32>,
    }
    %c32_i32_0 = arith.constant 32 : i32
    %c1 = arith.constant 1 : index
    %c0 = arith.constant 0 : index
    %c0_1 = arith.constant 0 : index
    %2 = vector.load %arg2[%c1, %c0, %c0_1] : memref<2x32x128xf32, #tpu.memory_space<vmem>>, vector<1x32x128xf32>
    %3 = vector.shape_cast %2 : vector<1x32x128xf32> to vector<32x128xf32>
    %c32 = arith.constant 32 : index
    %c0_2 = arith.constant 0 : index
    %c0_3 = arith.constant 0 : index
    %4 = vector.load %arg4[%c32, %c0_2, %c0_3] : memref<33x32x128xf32, #tpu.memory_space<vmem>>, vector<1x32x128xf32>
    %5 = vector.shape_cast %4 : vector<1x32x128xf32> to vector<32x128xf32>
    %6 = vector.shape_cast %3 : vector<32x128xf32> to vector<1x32x128xf32>
    tpu.vector_store %arg4[%c32, %c0_2, %c0_3], %6 {strides = array<i32>} : memref<33x32x128xf32, #tpu.memory_space<vmem>>, vector<1x32x128xf32>,
    %c0_4 = arith.constant 0 : index
    %c0_5 = arith.constant 0 : index
    %c0_6 = arith.constant 0 : index
    %7 = vector.load %arg4[%c0_4, %c0_5, %c0_6] : memref<33x32x128xf32, #tpu.memory_space<vmem>>, vector<1x32x128xf32>
    %8 = vector.shape_cast %7 : vector<1x32x128xf32> to vector<32x128xf32>
    %9 = vector.extract_strided_slice %8 {offsets = [0, 0], sizes = [1, 128], strides = [1, 1]} : vector<32x128xf32> to vector<1x128xf32>
    %10 = tpu.reciprocal %9 {approx = true} : vector<1x128xf32> -> vector<1x128xf32>
    %11 = arith.mulf %9, %10 : vector<1x128xf32>
    %cst = arith.constant 2.000000e+00 : f32
    %12 = vector.broadcast %cst : f32 to vector<1x128xf32>
    %13 = arith.subf %12, %11 : vector<1x128xf32>
    %14 = arith.mulf %10, %13 : vector<1x128xf32>
    %c0_i32_7 = arith.constant 0 : i32
    %15 = vector.broadcast %c0_i32_7 : i32 to vector<32x128xi32>
    %16 = arith.cmpi eq, %0, %15 : vector<32x128xi32>
    %17 = arith.extui %16 : vector<32x128xi1> to vector<32x128xi32>
    %18 = arith.sitofp %17 : vector<32x128xi32> to vector<32x128xf32>
    %19 = arith.subf %8, %18 : vector<32x128xf32>
    %20 = vector.broadcast %14 : vector<1x128xf32> to vector<32x128xf32>
    %21 = arith.mulf %19, %20 : vector<32x128xf32>
    %c0_i32_8 = arith.constant 0 : i32
    %c33_i32 = arith.constant 33 : i32
    %22 = arith.addi %c0_i32_8, %c33_i32 : i32
    %c1_i32_9 = arith.constant 1 : i32
    scf.for %arg5 = %c0_i32_8 to %22 step %c1_i32_9  : i32 {
      %528 = arith.index_cast %arg5 : i32 to index
      %c0_241 = arith.constant 0 : index
      %c0_242 = arith.constant 0 : index
      %529 = vector.load %arg4[%528, %c0_241, %c0_242] : memref<33x32x128xf32, #tpu.memory_space<vmem>>, vector<1x32x128xf32>
      %530 = vector.shape_cast %529 : vector<1x32x128xf32> to vector<32x128xf32>
      %531 = vector.extract_strided_slice %530 {offsets = [0, 0], sizes = [1, 128], strides = [1, 1]} : vector<32x128xf32> to vector<1x128xf32>
      %532 = vector.broadcast %531 : vector<1x128xf32> to vector<32x128xf32>
      %533 = arith.mulf %532, %21 : vector<32x128xf32>
      %534 = arith.subf %530, %533 : vector<32x128xf32>
      %535 = arith.index_cast %arg5 : i32 to index
      %c0_243 = arith.constant 0 : index
      %c0_244 = arith.constant 0 : index
      %536 = vector.load %arg4[%535, %c0_243, %c0_244] : memref<33x32x128xf32, #tpu.memory_space<vmem>>, vector<1x32x128xf32>
      %537 = vector.shape_cast %536 : vector<1x32x128xf32> to vector<32x128xf32>
      %538 = vector.shape_cast %534 : vector<32x128xf32> to vector<1x32x128xf32>
      tpu.vector_store %arg4[%535, %c0_243, %c0_244], %538 {strides = array<i32>} : memref<33x32x128xf32, #tpu.memory_space<vmem>>, vector<1x32x128xf32>,
    }
    %c33_i32_10 = arith.constant 33 : i32
    %c1_11 = arith.constant 1 : index
    %c0_12 = arith.constant 0 : index
    %c0_13 = arith.constant 0 : index
    %23 = vector.load %arg4[%c1_11, %c0_12, %c0_13] : memref<33x32x128xf32, #tpu.memory_space<vmem>>, vector<1x32x128xf32>
    %24 = vector.shape_cast %23 : vector<1x32x128xf32> to vector<32x128xf32>
    %25 = vector.extract_strided_slice %24 {offsets = [1, 0], sizes = [1, 128], strides = [1, 1]} : vector<32x128xf32> to vector<1x128xf32>
    %26 = tpu.reciprocal %25 {approx = true} : vector<1x128xf32> -> vector<1x128xf32>
    %27 = arith.mulf %25, %26 : vector<1x128xf32>
    %cst_14 = arith.constant 2.000000e+00 : f32
    %28 = vector.broadcast %cst_14 : f32 to vector<1x128xf32>
    %29 = arith.subf %28, %27 : vector<1x128xf32>
    %30 = arith.mulf %26, %29 : vector<1x128xf32>
    %c1_i32_15 = arith.constant 1 : i32
    %31 = vector.broadcast %c1_i32_15 : i32 to vector<32x128xi32>
    %32 = arith.cmpi eq, %0, %31 : vector<32x128xi32>
    %33 = arith.extui %32 : vector<32x128xi1> to vector<32x128xi32>
    %34 = arith.sitofp %33 : vector<32x128xi32> to vector<32x128xf32>
    %35 = arith.subf %24, %34 : vector<32x128xf32>
    %36 = vector.broadcast %30 : vector<1x128xf32> to vector<32x128xf32>
    %37 = arith.mulf %35, %36 : vector<32x128xf32>
    %c0_i32_16 = arith.constant 0 : i32
    %c33_i32_17 = arith.constant 33 : i32
    %38 = arith.addi %c0_i32_16, %c33_i32_17 : i32
    %c1_i32_18 = arith.constant 1 : i32
    scf.for %arg5 = %c0_i32_16 to %38 step %c1_i32_18  : i32 {
      %528 = arith.index_cast %arg5 : i32 to index
      %c0_241 = arith.constant 0 : index
      %c0_242 = arith.constant 0 : index
      %529 = vector.load %arg4[%528, %c0_241, %c0_242] : memref<33x32x128xf32, #tpu.memory_space<vmem>>, vector<1x32x128xf32>
      %530 = vector.shape_cast %529 : vector<1x32x128xf32> to vector<32x128xf32>
      %531 = vector.extract_strided_slice %530 {offsets = [1, 0], sizes = [1, 128], strides = [1, 1]} : vector<32x128xf32> to vector<1x128xf32>
      %532 = vector.broadcast %531 : vector<1x128xf32> to vector<32x128xf32>
      %533 = arith.mulf %532, %37 : vector<32x128xf32>
      %534 = arith.subf %530, %533 : vector<32x128xf32>
      %535 = arith.index_cast %arg5 : i32 to index
      %c0_243 = arith.constant 0 : index
      %c0_244 = arith.constant 0 : index
      %536 = vector.load %arg4[%535, %c0_243, %c0_244] : memref<33x32x128xf32, #tpu.memory_space<vmem>>, vector<1x32x128xf32>
      %537 = vector.shape_cast %536 : vector<1x32x128xf32> to vector<32x128xf32>
      %538 = vector.shape_cast %534 : vector<32x128xf32> to vector<1x32x128xf32>
      tpu.vector_store %arg4[%535, %c0_243, %c0_244], %538 {strides = array<i32>} : memref<33x32x128xf32, #tpu.memory_space<vmem>>, vector<1x32x128xf32>,
    }
    %c33_i32_19 = arith.constant 33 : i32
    %c2 = arith.constant 2 : index
    %c0_20 = arith.constant 0 : index
    %c0_21 = arith.constant 0 : index
    %39 = vector.load %arg4[%c2, %c0_20, %c0_21] : memref<33x32x128xf32, #tpu.memory_space<vmem>>, vector<1x32x128xf32>
    %40 = vector.shape_cast %39 : vector<1x32x128xf32> to vector<32x128xf32>
    %41 = vector.extract_strided_slice %40 {offsets = [2, 0], sizes = [1, 128], strides = [1, 1]} : vector<32x128xf32> to vector<1x128xf32>
    %42 = tpu.reciprocal %41 {approx = true} : vector<1x128xf32> -> vector<1x128xf32>
    %43 = arith.mulf %41, %42 : vector<1x128xf32>
    %cst_22 = arith.constant 2.000000e+00 : f32
    %44 = vector.broadcast %cst_22 : f32 to vector<1x128xf32>
    %45 = arith.subf %44, %43 : vector<1x128xf32>
    %46 = arith.mulf %42, %45 : vector<1x128xf32>
    %c2_i32 = arith.constant 2 : i32
    %47 = vector.broadcast %c2_i32 : i32 to vector<32x128xi32>
    %48 = arith.cmpi eq, %0, %47 : vector<32x128xi32>
    %49 = arith.extui %48 : vector<32x128xi1> to vector<32x128xi32>
    %50 = arith.sitofp %49 : vector<32x128xi32> to vector<32x128xf32>
    %51 = arith.subf %40, %50 : vector<32x128xf32>
    %52 = vector.broadcast %46 : vector<1x128xf32> to vector<32x128xf32>
    %53 = arith.mulf %51, %52 : vector<32x128xf32>
    %c0_i32_23 = arith.constant 0 : i32
    %c33_i32_24 = arith.constant 33 : i32
    %54 = arith.addi %c0_i32_23, %c33_i32_24 : i32
    %c1_i32_25 = arith.constant 1 : i32
    scf.for %arg5 = %c0_i32_23 to %54 step %c1_i32_25  : i32 {
      %528 = arith.index_cast %arg5 : i32 to index
      %c0_241 = arith.constant 0 : index
      %c0_242 = arith.constant 0 : index
      %529 = vector.load %arg4[%528, %c0_241, %c0_242] : memref<33x32x128xf32, #tpu.memory_space<vmem>>, vector<1x32x128xf32>
      %530 = vector.shape_cast %529 : vector<1x32x128xf32> to vector<32x128xf32>
      %531 = vector.extract_strided_slice %530 {offsets = [2, 0], sizes = [1, 128], strides = [1, 1]} : vector<32x128xf32> to vector<1x128xf32>
      %532 = vector.broadcast %531 : vector<1x128xf32> to vector<32x128xf32>
      %533 = arith.mulf %532, %53 : vector<32x128xf32>
      %534 = arith.subf %530, %533 : vector<32x128xf32>
      %535 = arith.index_cast %arg5 : i32 to index
      %c0_243 = arith.constant 0 : index
      %c0_244 = arith.constant 0 : index
      %536 = vector.load %arg4[%535, %c0_243, %c0_244] : memref<33x32x128xf32, #tpu.memory_space<vmem>>, vector<1x32x128xf32>
      %537 = vector.shape_cast %536 : vector<1x32x128xf32> to vector<32x128xf32>
      %538 = vector.shape_cast %534 : vector<32x128xf32> to vector<1x32x128xf32>
      tpu.vector_store %arg4[%535, %c0_243, %c0_244], %538 {strides = array<i32>} : memref<33x32x128xf32, #tpu.memory_space<vmem>>, vector<1x32x128xf32>,
    }
    %c33_i32_26 = arith.constant 33 : i32
    %c3 = arith.constant 3 : index
    %c0_27 = arith.constant 0 : index
    %c0_28 = arith.constant 0 : index
    %55 = vector.load %arg4[%c3, %c0_27, %c0_28] : memref<33x32x128xf32, #tpu.memory_space<vmem>>, vector<1x32x128xf32>
    %56 = vector.shape_cast %55 : vector<1x32x128xf32> to vector<32x128xf32>
    %57 = vector.extract_strided_slice %56 {offsets = [3, 0], sizes = [1, 128], strides = [1, 1]} : vector<32x128xf32> to vector<1x128xf32>
    %58 = tpu.reciprocal %57 {approx = true} : vector<1x128xf32> -> vector<1x128xf32>
    %59 = arith.mulf %57, %58 : vector<1x128xf32>
    %cst_29 = arith.constant 2.000000e+00 : f32
    %60 = vector.broadcast %cst_29 : f32 to vector<1x128xf32>
    %61 = arith.subf %60, %59 : vector<1x128xf32>
    %62 = arith.mulf %58, %61 : vector<1x128xf32>
    %c3_i32 = arith.constant 3 : i32
    %63 = vector.broadcast %c3_i32 : i32 to vector<32x128xi32>
    %64 = arith.cmpi eq, %0, %63 : vector<32x128xi32>
    %65 = arith.extui %64 : vector<32x128xi1> to vector<32x128xi32>
    %66 = arith.sitofp %65 : vector<32x128xi32> to vector<32x128xf32>
    %67 = arith.subf %56, %66 : vector<32x128xf32>
    %68 = vector.broadcast %62 : vector<1x128xf32> to vector<32x128xf32>
    %69 = arith.mulf %67, %68 : vector<32x128xf32>
    %c0_i32_30 = arith.constant 0 : i32
    %c33_i32_31 = arith.constant 33 : i32
    %70 = arith.addi %c0_i32_30, %c33_i32_31 : i32
    %c1_i32_32 = arith.constant 1 : i32
    scf.for %arg5 = %c0_i32_30 to %70 step %c1_i32_32  : i32 {
      %528 = arith.index_cast %arg5 : i32 to index
      %c0_241 = arith.constant 0 : index
      %c0_242 = arith.constant 0 : index
      %529 = vector.load %arg4[%528, %c0_241, %c0_242] : memref<33x32x128xf32, #tpu.memory_space<vmem>>, vector<1x32x128xf32>
      %530 = vector.shape_cast %529 : vector<1x32x128xf32> to vector<32x128xf32>
      %531 = vector.extract_strided_slice %530 {offsets = [3, 0], sizes = [1, 128], strides = [1, 1]} : vector<32x128xf32> to vector<1x128xf32>
      %532 = vector.broadcast %531 : vector<1x128xf32> to vector<32x128xf32>
      %533 = arith.mulf %532, %69 : vector<32x128xf32>
      %534 = arith.subf %530, %533 : vector<32x128xf32>
      %535 = arith.index_cast %arg5 : i32 to index
      %c0_243 = arith.constant 0 : index
      %c0_244 = arith.constant 0 : index
      %536 = vector.load %arg4[%535, %c0_243, %c0_244] : memref<33x32x128xf32, #tpu.memory_space<vmem>>, vector<1x32x128xf32>
      %537 = vector.shape_cast %536 : vector<1x32x128xf32> to vector<32x128xf32>
      %538 = vector.shape_cast %534 : vector<32x128xf32> to vector<1x32x128xf32>
      tpu.vector_store %arg4[%535, %c0_243, %c0_244], %538 {strides = array<i32>} : memref<33x32x128xf32, #tpu.memory_space<vmem>>, vector<1x32x128xf32>,
    }
    %c33_i32_33 = arith.constant 33 : i32
    %c4 = arith.constant 4 : index
    %c0_34 = arith.constant 0 : index
    %c0_35 = arith.constant 0 : index
    %71 = vector.load %arg4[%c4, %c0_34, %c0_35] : memref<33x32x128xf32, #tpu.memory_space<vmem>>, vector<1x32x128xf32>
    %72 = vector.shape_cast %71 : vector<1x32x128xf32> to vector<32x128xf32>
    %73 = vector.extract_strided_slice %72 {offsets = [4, 0], sizes = [1, 128], strides = [1, 1]} : vector<32x128xf32> to vector<1x128xf32>
    %74 = tpu.reciprocal %73 {approx = true} : vector<1x128xf32> -> vector<1x128xf32>
    %75 = arith.mulf %73, %74 : vector<1x128xf32>
    %cst_36 = arith.constant 2.000000e+00 : f32
    %76 = vector.broadcast %cst_36 : f32 to vector<1x128xf32>
    %77 = arith.subf %76, %75 : vector<1x128xf32>
    %78 = arith.mulf %74, %77 : vector<1x128xf32>
    %c4_i32 = arith.constant 4 : i32
    %79 = vector.broadcast %c4_i32 : i32 to vector<32x128xi32>
    %80 = arith.cmpi eq, %0, %79 : vector<32x128xi32>
    %81 = arith.extui %80 : vector<32x128xi1> to vector<32x128xi32>
    %82 = arith.sitofp %81 : vector<32x128xi32> to vector<32x128xf32>
    %83 = arith.subf %72, %82 : vector<32x128xf32>
    %84 = vector.broadcast %78 : vector<1x128xf32> to vector<32x128xf32>
    %85 = arith.mulf %83, %84 : vector<32x128xf32>
    %c0_i32_37 = arith.constant 0 : i32
    %c33_i32_38 = arith.constant 33 : i32
    %86 = arith.addi %c0_i32_37, %c33_i32_38 : i32
    %c1_i32_39 = arith.constant 1 : i32
    scf.for %arg5 = %c0_i32_37 to %86 step %c1_i32_39  : i32 {
      %528 = arith.index_cast %arg5 : i32 to index
      %c0_241 = arith.constant 0 : index
      %c0_242 = arith.constant 0 : index
      %529 = vector.load %arg4[%528, %c0_241, %c0_242] : memref<33x32x128xf32, #tpu.memory_space<vmem>>, vector<1x32x128xf32>
      %530 = vector.shape_cast %529 : vector<1x32x128xf32> to vector<32x128xf32>
      %531 = vector.extract_strided_slice %530 {offsets = [4, 0], sizes = [1, 128], strides = [1, 1]} : vector<32x128xf32> to vector<1x128xf32>
      %532 = vector.broadcast %531 : vector<1x128xf32> to vector<32x128xf32>
      %533 = arith.mulf %532, %85 : vector<32x128xf32>
      %534 = arith.subf %530, %533 : vector<32x128xf32>
      %535 = arith.index_cast %arg5 : i32 to index
      %c0_243 = arith.constant 0 : index
      %c0_244 = arith.constant 0 : index
      %536 = vector.load %arg4[%535, %c0_243, %c0_244] : memref<33x32x128xf32, #tpu.memory_space<vmem>>, vector<1x32x128xf32>
      %537 = vector.shape_cast %536 : vector<1x32x128xf32> to vector<32x128xf32>
      %538 = vector.shape_cast %534 : vector<32x128xf32> to vector<1x32x128xf32>
      tpu.vector_store %arg4[%535, %c0_243, %c0_244], %538 {strides = array<i32>} : memref<33x32x128xf32, #tpu.memory_space<vmem>>, vector<1x32x128xf32>,
    }
    %c33_i32_40 = arith.constant 33 : i32
    %c5 = arith.constant 5 : index
    %c0_41 = arith.constant 0 : index
    %c0_42 = arith.constant 0 : index
    %87 = vector.load %arg4[%c5, %c0_41, %c0_42] : memref<33x32x128xf32, #tpu.memory_space<vmem>>, vector<1x32x128xf32>
    %88 = vector.shape_cast %87 : vector<1x32x128xf32> to vector<32x128xf32>
    %89 = vector.extract_strided_slice %88 {offsets = [5, 0], sizes = [1, 128], strides = [1, 1]} : vector<32x128xf32> to vector<1x128xf32>
    %90 = tpu.reciprocal %89 {approx = true} : vector<1x128xf32> -> vector<1x128xf32>
    %91 = arith.mulf %89, %90 : vector<1x128xf32>
    %cst_43 = arith.constant 2.000000e+00 : f32
    %92 = vector.broadcast %cst_43 : f32 to vector<1x128xf32>
    %93 = arith.subf %92, %91 : vector<1x128xf32>
    %94 = arith.mulf %90, %93 : vector<1x128xf32>
    %c5_i32 = arith.constant 5 : i32
    %95 = vector.broadcast %c5_i32 : i32 to vector<32x128xi32>
    %96 = arith.cmpi eq, %0, %95 : vector<32x128xi32>
    %97 = arith.extui %96 : vector<32x128xi1> to vector<32x128xi32>
    %98 = arith.sitofp %97 : vector<32x128xi32> to vector<32x128xf32>
    %99 = arith.subf %88, %98 : vector<32x128xf32>
    %100 = vector.broadcast %94 : vector<1x128xf32> to vector<32x128xf32>
    %101 = arith.mulf %99, %100 : vector<32x128xf32>
    %c0_i32_44 = arith.constant 0 : i32
    %c33_i32_45 = arith.constant 33 : i32
    %102 = arith.addi %c0_i32_44, %c33_i32_45 : i32
    %c1_i32_46 = arith.constant 1 : i32
    scf.for %arg5 = %c0_i32_44 to %102 step %c1_i32_46  : i32 {
      %528 = arith.index_cast %arg5 : i32 to index
      %c0_241 = arith.constant 0 : index
      %c0_242 = arith.constant 0 : index
      %529 = vector.load %arg4[%528, %c0_241, %c0_242] : memref<33x32x128xf32, #tpu.memory_space<vmem>>, vector<1x32x128xf32>
      %530 = vector.shape_cast %529 : vector<1x32x128xf32> to vector<32x128xf32>
      %531 = vector.extract_strided_slice %530 {offsets = [5, 0], sizes = [1, 128], strides = [1, 1]} : vector<32x128xf32> to vector<1x128xf32>
      %532 = vector.broadcast %531 : vector<1x128xf32> to vector<32x128xf32>
      %533 = arith.mulf %532, %101 : vector<32x128xf32>
      %534 = arith.subf %530, %533 : vector<32x128xf32>
      %535 = arith.index_cast %arg5 : i32 to index
      %c0_243 = arith.constant 0 : index
      %c0_244 = arith.constant 0 : index
      %536 = vector.load %arg4[%535, %c0_243, %c0_244] : memref<33x32x128xf32, #tpu.memory_space<vmem>>, vector<1x32x128xf32>
      %537 = vector.shape_cast %536 : vector<1x32x128xf32> to vector<32x128xf32>
      %538 = vector.shape_cast %534 : vector<32x128xf32> to vector<1x32x128xf32>
      tpu.vector_store %arg4[%535, %c0_243, %c0_244], %538 {strides = array<i32>} : memref<33x32x128xf32, #tpu.memory_space<vmem>>, vector<1x32x128xf32>,
    }
    %c33_i32_47 = arith.constant 33 : i32
    %c6 = arith.constant 6 : index
    %c0_48 = arith.constant 0 : index
    %c0_49 = arith.constant 0 : index
    %103 = vector.load %arg4[%c6, %c0_48, %c0_49] : memref<33x32x128xf32, #tpu.memory_space<vmem>>, vector<1x32x128xf32>
    %104 = vector.shape_cast %103 : vector<1x32x128xf32> to vector<32x128xf32>
    %105 = vector.extract_strided_slice %104 {offsets = [6, 0], sizes = [1, 128], strides = [1, 1]} : vector<32x128xf32> to vector<1x128xf32>
    %106 = tpu.reciprocal %105 {approx = true} : vector<1x128xf32> -> vector<1x128xf32>
    %107 = arith.mulf %105, %106 : vector<1x128xf32>
    %cst_50 = arith.constant 2.000000e+00 : f32
    %108 = vector.broadcast %cst_50 : f32 to vector<1x128xf32>
    %109 = arith.subf %108, %107 : vector<1x128xf32>
    %110 = arith.mulf %106, %109 : vector<1x128xf32>
    %c6_i32 = arith.constant 6 : i32
    %111 = vector.broadcast %c6_i32 : i32 to vector<32x128xi32>
    %112 = arith.cmpi eq, %0, %111 : vector<32x128xi32>
    %113 = arith.extui %112 : vector<32x128xi1> to vector<32x128xi32>
    %114 = arith.sitofp %113 : vector<32x128xi32> to vector<32x128xf32>
    %115 = arith.subf %104, %114 : vector<32x128xf32>
    %116 = vector.broadcast %110 : vector<1x128xf32> to vector<32x128xf32>
    %117 = arith.mulf %115, %116 : vector<32x128xf32>
    %c0_i32_51 = arith.constant 0 : i32
    %c33_i32_52 = arith.constant 33 : i32
    %118 = arith.addi %c0_i32_51, %c33_i32_52 : i32
    %c1_i32_53 = arith.constant 1 : i32
    scf.for %arg5 = %c0_i32_51 to %118 step %c1_i32_53  : i32 {
      %528 = arith.index_cast %arg5 : i32 to index
      %c0_241 = arith.constant 0 : index
      %c0_242 = arith.constant 0 : index
      %529 = vector.load %arg4[%528, %c0_241, %c0_242] : memref<33x32x128xf32, #tpu.memory_space<vmem>>, vector<1x32x128xf32>
      %530 = vector.shape_cast %529 : vector<1x32x128xf32> to vector<32x128xf32>
      %531 = vector.extract_strided_slice %530 {offsets = [6, 0], sizes = [1, 128], strides = [1, 1]} : vector<32x128xf32> to vector<1x128xf32>
      %532 = vector.broadcast %531 : vector<1x128xf32> to vector<32x128xf32>
      %533 = arith.mulf %532, %117 : vector<32x128xf32>
      %534 = arith.subf %530, %533 : vector<32x128xf32>
      %535 = arith.index_cast %arg5 : i32 to index
      %c0_243 = arith.constant 0 : index
      %c0_244 = arith.constant 0 : index
      %536 = vector.load %arg4[%535, %c0_243, %c0_244] : memref<33x32x128xf32, #tpu.memory_space<vmem>>, vector<1x32x128xf32>
      %537 = vector.shape_cast %536 : vector<1x32x128xf32> to vector<32x128xf32>
      %538 = vector.shape_cast %534 : vector<32x128xf32> to vector<1x32x128xf32>
      tpu.vector_store %arg4[%535, %c0_243, %c0_244], %538 {strides = array<i32>} : memref<33x32x128xf32, #tpu.memory_space<vmem>>, vector<1x32x128xf32>,
    }
    %c33_i32_54 = arith.constant 33 : i32
    %c7 = arith.constant 7 : index
    %c0_55 = arith.constant 0 : index
    %c0_56 = arith.constant 0 : index
    %119 = vector.load %arg4[%c7, %c0_55, %c0_56] : memref<33x32x128xf32, #tpu.memory_space<vmem>>, vector<1x32x128xf32>
    %120 = vector.shape_cast %119 : vector<1x32x128xf32> to vector<32x128xf32>
    %121 = vector.extract_strided_slice %120 {offsets = [7, 0], sizes = [1, 128], strides = [1, 1]} : vector<32x128xf32> to vector<1x128xf32>
    %122 = tpu.reciprocal %121 {approx = true} : vector<1x128xf32> -> vector<1x128xf32>
    %123 = arith.mulf %121, %122 : vector<1x128xf32>
    %cst_57 = arith.constant 2.000000e+00 : f32
    %124 = vector.broadcast %cst_57 : f32 to vector<1x128xf32>
    %125 = arith.subf %124, %123 : vector<1x128xf32>
    %126 = arith.mulf %122, %125 : vector<1x128xf32>
    %c7_i32 = arith.constant 7 : i32
    %127 = vector.broadcast %c7_i32 : i32 to vector<32x128xi32>
    %128 = arith.cmpi eq, %0, %127 : vector<32x128xi32>
    %129 = arith.extui %128 : vector<32x128xi1> to vector<32x128xi32>
    %130 = arith.sitofp %129 : vector<32x128xi32> to vector<32x128xf32>
    %131 = arith.subf %120, %130 : vector<32x128xf32>
    %132 = vector.broadcast %126 : vector<1x128xf32> to vector<32x128xf32>
    %133 = arith.mulf %131, %132 : vector<32x128xf32>
    %c0_i32_58 = arith.constant 0 : i32
    %c33_i32_59 = arith.constant 33 : i32
    %134 = arith.addi %c0_i32_58, %c33_i32_59 : i32
    %c1_i32_60 = arith.constant 1 : i32
    scf.for %arg5 = %c0_i32_58 to %134 step %c1_i32_60  : i32 {
      %528 = arith.index_cast %arg5 : i32 to index
      %c0_241 = arith.constant 0 : index
      %c0_242 = arith.constant 0 : index
      %529 = vector.load %arg4[%528, %c0_241, %c0_242] : memref<33x32x128xf32, #tpu.memory_space<vmem>>, vector<1x32x128xf32>
      %530 = vector.shape_cast %529 : vector<1x32x128xf32> to vector<32x128xf32>
      %531 = vector.extract_strided_slice %530 {offsets = [7, 0], sizes = [1, 128], strides = [1, 1]} : vector<32x128xf32> to vector<1x128xf32>
      %532 = vector.broadcast %531 : vector<1x128xf32> to vector<32x128xf32>
      %533 = arith.mulf %532, %133 : vector<32x128xf32>
      %534 = arith.subf %530, %533 : vector<32x128xf32>
      %535 = arith.index_cast %arg5 : i32 to index
      %c0_243 = arith.constant 0 : index
      %c0_244 = arith.constant 0 : index
      %536 = vector.load %arg4[%535, %c0_243, %c0_244] : memref<33x32x128xf32, #tpu.memory_space<vmem>>, vector<1x32x128xf32>
      %537 = vector.shape_cast %536 : vector<1x32x128xf32> to vector<32x128xf32>
      %538 = vector.shape_cast %534 : vector<32x128xf32> to vector<1x32x128xf32>
      tpu.vector_store %arg4[%535, %c0_243, %c0_244], %538 {strides = array<i32>} : memref<33x32x128xf32, #tpu.memory_space<vmem>>, vector<1x32x128xf32>,
    }
    %c33_i32_61 = arith.constant 33 : i32
    %c8 = arith.constant 8 : index
    %c0_62 = arith.constant 0 : index
    %c0_63 = arith.constant 0 : index
    %135 = vector.load %arg4[%c8, %c0_62, %c0_63] : memref<33x32x128xf32, #tpu.memory_space<vmem>>, vector<1x32x128xf32>
    %136 = vector.shape_cast %135 : vector<1x32x128xf32> to vector<32x128xf32>
    %137 = vector.extract_strided_slice %136 {offsets = [8, 0], sizes = [1, 128], strides = [1, 1]} : vector<32x128xf32> to vector<1x128xf32>
    %138 = tpu.reciprocal %137 {approx = true} : vector<1x128xf32> -> vector<1x128xf32>
    %139 = arith.mulf %137, %138 : vector<1x128xf32>
    %cst_64 = arith.constant 2.000000e+00 : f32
    %140 = vector.broadcast %cst_64 : f32 to vector<1x128xf32>
    %141 = arith.subf %140, %139 : vector<1x128xf32>
    %142 = arith.mulf %138, %141 : vector<1x128xf32>
    %c8_i32 = arith.constant 8 : i32
    %143 = vector.broadcast %c8_i32 : i32 to vector<32x128xi32>
    %144 = arith.cmpi eq, %0, %143 : vector<32x128xi32>
    %145 = arith.extui %144 : vector<32x128xi1> to vector<32x128xi32>
    %146 = arith.sitofp %145 : vector<32x128xi32> to vector<32x128xf32>
    %147 = arith.subf %136, %146 : vector<32x128xf32>
    %148 = vector.broadcast %142 : vector<1x128xf32> to vector<32x128xf32>
    %149 = arith.mulf %147, %148 : vector<32x128xf32>
    %c0_i32_65 = arith.constant 0 : i32
    %c33_i32_66 = arith.constant 33 : i32
    %150 = arith.addi %c0_i32_65, %c33_i32_66 : i32
    %c1_i32_67 = arith.constant 1 : i32
    scf.for %arg5 = %c0_i32_65 to %150 step %c1_i32_67  : i32 {
      %528 = arith.index_cast %arg5 : i32 to index
      %c0_241 = arith.constant 0 : index
      %c0_242 = arith.constant 0 : index
      %529 = vector.load %arg4[%528, %c0_241, %c0_242] : memref<33x32x128xf32, #tpu.memory_space<vmem>>, vector<1x32x128xf32>
      %530 = vector.shape_cast %529 : vector<1x32x128xf32> to vector<32x128xf32>
      %531 = vector.extract_strided_slice %530 {offsets = [8, 0], sizes = [1, 128], strides = [1, 1]} : vector<32x128xf32> to vector<1x128xf32>
      %532 = vector.broadcast %531 : vector<1x128xf32> to vector<32x128xf32>
      %533 = arith.mulf %532, %149 : vector<32x128xf32>
      %534 = arith.subf %530, %533 : vector<32x128xf32>
      %535 = arith.index_cast %arg5 : i32 to index
      %c0_243 = arith.constant 0 : index
      %c0_244 = arith.constant 0 : index
      %536 = vector.load %arg4[%535, %c0_243, %c0_244] : memref<33x32x128xf32, #tpu.memory_space<vmem>>, vector<1x32x128xf32>
      %537 = vector.shape_cast %536 : vector<1x32x128xf32> to vector<32x128xf32>
      %538 = vector.shape_cast %534 : vector<32x128xf32> to vector<1x32x128xf32>
      tpu.vector_store %arg4[%535, %c0_243, %c0_244], %538 {strides = array<i32>} : memref<33x32x128xf32, #tpu.memory_space<vmem>>, vector<1x32x128xf32>,
    }
    %c33_i32_68 = arith.constant 33 : i32
    %c9 = arith.constant 9 : index
    %c0_69 = arith.constant 0 : index
    %c0_70 = arith.constant 0 : index
    %151 = vector.load %arg4[%c9, %c0_69, %c0_70] : memref<33x32x128xf32, #tpu.memory_space<vmem>>, vector<1x32x128xf32>
    %152 = vector.shape_cast %151 : vector<1x32x128xf32> to vector<32x128xf32>
    %153 = vector.extract_strided_slice %152 {offsets = [9, 0], sizes = [1, 128], strides = [1, 1]} : vector<32x128xf32> to vector<1x128xf32>
    %154 = tpu.reciprocal %153 {approx = true} : vector<1x128xf32> -> vector<1x128xf32>
    %155 = arith.mulf %153, %154 : vector<1x128xf32>
    %cst_71 = arith.constant 2.000000e+00 : f32
    %156 = vector.broadcast %cst_71 : f32 to vector<1x128xf32>
    %157 = arith.subf %156, %155 : vector<1x128xf32>
    %158 = arith.mulf %154, %157 : vector<1x128xf32>
    %c9_i32 = arith.constant 9 : i32
    %159 = vector.broadcast %c9_i32 : i32 to vector<32x128xi32>
    %160 = arith.cmpi eq, %0, %159 : vector<32x128xi32>
    %161 = arith.extui %160 : vector<32x128xi1> to vector<32x128xi32>
    %162 = arith.sitofp %161 : vector<32x128xi32> to vector<32x128xf32>
    %163 = arith.subf %152, %162 : vector<32x128xf32>
    %164 = vector.broadcast %158 : vector<1x128xf32> to vector<32x128xf32>
    %165 = arith.mulf %163, %164 : vector<32x128xf32>
    %c0_i32_72 = arith.constant 0 : i32
    %c33_i32_73 = arith.constant 33 : i32
    %166 = arith.addi %c0_i32_72, %c33_i32_73 : i32
    %c1_i32_74 = arith.constant 1 : i32
    scf.for %arg5 = %c0_i32_72 to %166 step %c1_i32_74  : i32 {
      %528 = arith.index_cast %arg5 : i32 to index
      %c0_241 = arith.constant 0 : index
      %c0_242 = arith.constant 0 : index
      %529 = vector.load %arg4[%528, %c0_241, %c0_242] : memref<33x32x128xf32, #tpu.memory_space<vmem>>, vector<1x32x128xf32>
      %530 = vector.shape_cast %529 : vector<1x32x128xf32> to vector<32x128xf32>
      %531 = vector.extract_strided_slice %530 {offsets = [9, 0], sizes = [1, 128], strides = [1, 1]} : vector<32x128xf32> to vector<1x128xf32>
      %532 = vector.broadcast %531 : vector<1x128xf32> to vector<32x128xf32>
      %533 = arith.mulf %532, %165 : vector<32x128xf32>
      %534 = arith.subf %530, %533 : vector<32x128xf32>
      %535 = arith.index_cast %arg5 : i32 to index
      %c0_243 = arith.constant 0 : index
      %c0_244 = arith.constant 0 : index
      %536 = vector.load %arg4[%535, %c0_243, %c0_244] : memref<33x32x128xf32, #tpu.memory_space<vmem>>, vector<1x32x128xf32>
      %537 = vector.shape_cast %536 : vector<1x32x128xf32> to vector<32x128xf32>
      %538 = vector.shape_cast %534 : vector<32x128xf32> to vector<1x32x128xf32>
      tpu.vector_store %arg4[%535, %c0_243, %c0_244], %538 {strides = array<i32>} : memref<33x32x128xf32, #tpu.memory_space<vmem>>, vector<1x32x128xf32>,
    }
    %c33_i32_75 = arith.constant 33 : i32
    %c10 = arith.constant 10 : index
    %c0_76 = arith.constant 0 : index
    %c0_77 = arith.constant 0 : index
    %167 = vector.load %arg4[%c10, %c0_76, %c0_77] : memref<33x32x128xf32, #tpu.memory_space<vmem>>, vector<1x32x128xf32>
    %168 = vector.shape_cast %167 : vector<1x32x128xf32> to vector<32x128xf32>
    %169 = vector.extract_strided_slice %168 {offsets = [10, 0], sizes = [1, 128], strides = [1, 1]} : vector<32x128xf32> to vector<1x128xf32>
    %170 = tpu.reciprocal %169 {approx = true} : vector<1x128xf32> -> vector<1x128xf32>
    %171 = arith.mulf %169, %170 : vector<1x128xf32>
    %cst_78 = arith.constant 2.000000e+00 : f32
    %172 = vector.broadcast %cst_78 : f32 to vector<1x128xf32>
    %173 = arith.subf %172, %171 : vector<1x128xf32>
    %174 = arith.mulf %170, %173 : vector<1x128xf32>
    %c10_i32 = arith.constant 10 : i32
    %175 = vector.broadcast %c10_i32 : i32 to vector<32x128xi32>
    %176 = arith.cmpi eq, %0, %175 : vector<32x128xi32>
    %177 = arith.extui %176 : vector<32x128xi1> to vector<32x128xi32>
    %178 = arith.sitofp %177 : vector<32x128xi32> to vector<32x128xf32>
    %179 = arith.subf %168, %178 : vector<32x128xf32>
    %180 = vector.broadcast %174 : vector<1x128xf32> to vector<32x128xf32>
    %181 = arith.mulf %179, %180 : vector<32x128xf32>
    %c0_i32_79 = arith.constant 0 : i32
    %c33_i32_80 = arith.constant 33 : i32
    %182 = arith.addi %c0_i32_79, %c33_i32_80 : i32
    %c1_i32_81 = arith.constant 1 : i32
    scf.for %arg5 = %c0_i32_79 to %182 step %c1_i32_81  : i32 {
      %528 = arith.index_cast %arg5 : i32 to index
      %c0_241 = arith.constant 0 : index
      %c0_242 = arith.constant 0 : index
      %529 = vector.load %arg4[%528, %c0_241, %c0_242] : memref<33x32x128xf32, #tpu.memory_space<vmem>>, vector<1x32x128xf32>
      %530 = vector.shape_cast %529 : vector<1x32x128xf32> to vector<32x128xf32>
      %531 = vector.extract_strided_slice %530 {offsets = [10, 0], sizes = [1, 128], strides = [1, 1]} : vector<32x128xf32> to vector<1x128xf32>
      %532 = vector.broadcast %531 : vector<1x128xf32> to vector<32x128xf32>
      %533 = arith.mulf %532, %181 : vector<32x128xf32>
      %534 = arith.subf %530, %533 : vector<32x128xf32>
      %535 = arith.index_cast %arg5 : i32 to index
      %c0_243 = arith.constant 0 : index
      %c0_244 = arith.constant 0 : index
      %536 = vector.load %arg4[%535, %c0_243, %c0_244] : memref<33x32x128xf32, #tpu.memory_space<vmem>>, vector<1x32x128xf32>
      %537 = vector.shape_cast %536 : vector<1x32x128xf32> to vector<32x128xf32>
      %538 = vector.shape_cast %534 : vector<32x128xf32> to vector<1x32x128xf32>
      tpu.vector_store %arg4[%535, %c0_243, %c0_244], %538 {strides = array<i32>} : memref<33x32x128xf32, #tpu.memory_space<vmem>>, vector<1x32x128xf32>,
    }
    %c33_i32_82 = arith.constant 33 : i32
    %c11 = arith.constant 11 : index
    %c0_83 = arith.constant 0 : index
    %c0_84 = arith.constant 0 : index
    %183 = vector.load %arg4[%c11, %c0_83, %c0_84] : memref<33x32x128xf32, #tpu.memory_space<vmem>>, vector<1x32x128xf32>
    %184 = vector.shape_cast %183 : vector<1x32x128xf32> to vector<32x128xf32>
    %185 = vector.extract_strided_slice %184 {offsets = [11, 0], sizes = [1, 128], strides = [1, 1]} : vector<32x128xf32> to vector<1x128xf32>
    %186 = tpu.reciprocal %185 {approx = true} : vector<1x128xf32> -> vector<1x128xf32>
    %187 = arith.mulf %185, %186 : vector<1x128xf32>
    %cst_85 = arith.constant 2.000000e+00 : f32
    %188 = vector.broadcast %cst_85 : f32 to vector<1x128xf32>
    %189 = arith.subf %188, %187 : vector<1x128xf32>
    %190 = arith.mulf %186, %189 : vector<1x128xf32>
    %c11_i32 = arith.constant 11 : i32
    %191 = vector.broadcast %c11_i32 : i32 to vector<32x128xi32>
    %192 = arith.cmpi eq, %0, %191 : vector<32x128xi32>
    %193 = arith.extui %192 : vector<32x128xi1> to vector<32x128xi32>
    %194 = arith.sitofp %193 : vector<32x128xi32> to vector<32x128xf32>
    %195 = arith.subf %184, %194 : vector<32x128xf32>
    %196 = vector.broadcast %190 : vector<1x128xf32> to vector<32x128xf32>
    %197 = arith.mulf %195, %196 : vector<32x128xf32>
    %c0_i32_86 = arith.constant 0 : i32
    %c33_i32_87 = arith.constant 33 : i32
    %198 = arith.addi %c0_i32_86, %c33_i32_87 : i32
    %c1_i32_88 = arith.constant 1 : i32
    scf.for %arg5 = %c0_i32_86 to %198 step %c1_i32_88  : i32 {
      %528 = arith.index_cast %arg5 : i32 to index
      %c0_241 = arith.constant 0 : index
      %c0_242 = arith.constant 0 : index
      %529 = vector.load %arg4[%528, %c0_241, %c0_242] : memref<33x32x128xf32, #tpu.memory_space<vmem>>, vector<1x32x128xf32>
      %530 = vector.shape_cast %529 : vector<1x32x128xf32> to vector<32x128xf32>
      %531 = vector.extract_strided_slice %530 {offsets = [11, 0], sizes = [1, 128], strides = [1, 1]} : vector<32x128xf32> to vector<1x128xf32>
      %532 = vector.broadcast %531 : vector<1x128xf32> to vector<32x128xf32>
      %533 = arith.mulf %532, %197 : vector<32x128xf32>
      %534 = arith.subf %530, %533 : vector<32x128xf32>
      %535 = arith.index_cast %arg5 : i32 to index
      %c0_243 = arith.constant 0 : index
      %c0_244 = arith.constant 0 : index
      %536 = vector.load %arg4[%535, %c0_243, %c0_244] : memref<33x32x128xf32, #tpu.memory_space<vmem>>, vector<1x32x128xf32>
      %537 = vector.shape_cast %536 : vector<1x32x128xf32> to vector<32x128xf32>
      %538 = vector.shape_cast %534 : vector<32x128xf32> to vector<1x32x128xf32>
      tpu.vector_store %arg4[%535, %c0_243, %c0_244], %538 {strides = array<i32>} : memref<33x32x128xf32, #tpu.memory_space<vmem>>, vector<1x32x128xf32>,
    }
    %c33_i32_89 = arith.constant 33 : i32
    %c12 = arith.constant 12 : index
    %c0_90 = arith.constant 0 : index
    %c0_91 = arith.constant 0 : index
    %199 = vector.load %arg4[%c12, %c0_90, %c0_91] : memref<33x32x128xf32, #tpu.memory_space<vmem>>, vector<1x32x128xf32>
    %200 = vector.shape_cast %199 : vector<1x32x128xf32> to vector<32x128xf32>
    %201 = vector.extract_strided_slice %200 {offsets = [12, 0], sizes = [1, 128], strides = [1, 1]} : vector<32x128xf32> to vector<1x128xf32>
    %202 = tpu.reciprocal %201 {approx = true} : vector<1x128xf32> -> vector<1x128xf32>
    %203 = arith.mulf %201, %202 : vector<1x128xf32>
    %cst_92 = arith.constant 2.000000e+00 : f32
    %204 = vector.broadcast %cst_92 : f32 to vector<1x128xf32>
    %205 = arith.subf %204, %203 : vector<1x128xf32>
    %206 = arith.mulf %202, %205 : vector<1x128xf32>
    %c12_i32 = arith.constant 12 : i32
    %207 = vector.broadcast %c12_i32 : i32 to vector<32x128xi32>
    %208 = arith.cmpi eq, %0, %207 : vector<32x128xi32>
    %209 = arith.extui %208 : vector<32x128xi1> to vector<32x128xi32>
    %210 = arith.sitofp %209 : vector<32x128xi32> to vector<32x128xf32>
    %211 = arith.subf %200, %210 : vector<32x128xf32>
    %212 = vector.broadcast %206 : vector<1x128xf32> to vector<32x128xf32>
    %213 = arith.mulf %211, %212 : vector<32x128xf32>
    %c0_i32_93 = arith.constant 0 : i32
    %c33_i32_94 = arith.constant 33 : i32
    %214 = arith.addi %c0_i32_93, %c33_i32_94 : i32
    %c1_i32_95 = arith.constant 1 : i32
    scf.for %arg5 = %c0_i32_93 to %214 step %c1_i32_95  : i32 {
      %528 = arith.index_cast %arg5 : i32 to index
      %c0_241 = arith.constant 0 : index
      %c0_242 = arith.constant 0 : index
      %529 = vector.load %arg4[%528, %c0_241, %c0_242] : memref<33x32x128xf32, #tpu.memory_space<vmem>>, vector<1x32x128xf32>
      %530 = vector.shape_cast %529 : vector<1x32x128xf32> to vector<32x128xf32>
      %531 = vector.extract_strided_slice %530 {offsets = [12, 0], sizes = [1, 128], strides = [1, 1]} : vector<32x128xf32> to vector<1x128xf32>
      %532 = vector.broadcast %531 : vector<1x128xf32> to vector<32x128xf32>
      %533 = arith.mulf %532, %213 : vector<32x128xf32>
      %534 = arith.subf %530, %533 : vector<32x128xf32>
      %535 = arith.index_cast %arg5 : i32 to index
      %c0_243 = arith.constant 0 : index
      %c0_244 = arith.constant 0 : index
      %536 = vector.load %arg4[%535, %c0_243, %c0_244] : memref<33x32x128xf32, #tpu.memory_space<vmem>>, vector<1x32x128xf32>
      %537 = vector.shape_cast %536 : vector<1x32x128xf32> to vector<32x128xf32>
      %538 = vector.shape_cast %534 : vector<32x128xf32> to vector<1x32x128xf32>
      tpu.vector_store %arg4[%535, %c0_243, %c0_244], %538 {strides = array<i32>} : memref<33x32x128xf32, #tpu.memory_space<vmem>>, vector<1x32x128xf32>,
    }
    %c33_i32_96 = arith.constant 33 : i32
    %c13 = arith.constant 13 : index
    %c0_97 = arith.constant 0 : index
    %c0_98 = arith.constant 0 : index
    %215 = vector.load %arg4[%c13, %c0_97, %c0_98] : memref<33x32x128xf32, #tpu.memory_space<vmem>>, vector<1x32x128xf32>
    %216 = vector.shape_cast %215 : vector<1x32x128xf32> to vector<32x128xf32>
    %217 = vector.extract_strided_slice %216 {offsets = [13, 0], sizes = [1, 128], strides = [1, 1]} : vector<32x128xf32> to vector<1x128xf32>
    %218 = tpu.reciprocal %217 {approx = true} : vector<1x128xf32> -> vector<1x128xf32>
    %219 = arith.mulf %217, %218 : vector<1x128xf32>
    %cst_99 = arith.constant 2.000000e+00 : f32
    %220 = vector.broadcast %cst_99 : f32 to vector<1x128xf32>
    %221 = arith.subf %220, %219 : vector<1x128xf32>
    %222 = arith.mulf %218, %221 : vector<1x128xf32>
    %c13_i32 = arith.constant 13 : i32
    %223 = vector.broadcast %c13_i32 : i32 to vector<32x128xi32>
    %224 = arith.cmpi eq, %0, %223 : vector<32x128xi32>
    %225 = arith.extui %224 : vector<32x128xi1> to vector<32x128xi32>
    %226 = arith.sitofp %225 : vector<32x128xi32> to vector<32x128xf32>
    %227 = arith.subf %216, %226 : vector<32x128xf32>
    %228 = vector.broadcast %222 : vector<1x128xf32> to vector<32x128xf32>
    %229 = arith.mulf %227, %228 : vector<32x128xf32>
    %c0_i32_100 = arith.constant 0 : i32
    %c33_i32_101 = arith.constant 33 : i32
    %230 = arith.addi %c0_i32_100, %c33_i32_101 : i32
    %c1_i32_102 = arith.constant 1 : i32
    scf.for %arg5 = %c0_i32_100 to %230 step %c1_i32_102  : i32 {
      %528 = arith.index_cast %arg5 : i32 to index
      %c0_241 = arith.constant 0 : index
      %c0_242 = arith.constant 0 : index
      %529 = vector.load %arg4[%528, %c0_241, %c0_242] : memref<33x32x128xf32, #tpu.memory_space<vmem>>, vector<1x32x128xf32>
      %530 = vector.shape_cast %529 : vector<1x32x128xf32> to vector<32x128xf32>
      %531 = vector.extract_strided_slice %530 {offsets = [13, 0], sizes = [1, 128], strides = [1, 1]} : vector<32x128xf32> to vector<1x128xf32>
      %532 = vector.broadcast %531 : vector<1x128xf32> to vector<32x128xf32>
      %533 = arith.mulf %532, %229 : vector<32x128xf32>
      %534 = arith.subf %530, %533 : vector<32x128xf32>
      %535 = arith.index_cast %arg5 : i32 to index
      %c0_243 = arith.constant 0 : index
      %c0_244 = arith.constant 0 : index
      %536 = vector.load %arg4[%535, %c0_243, %c0_244] : memref<33x32x128xf32, #tpu.memory_space<vmem>>, vector<1x32x128xf32>
      %537 = vector.shape_cast %536 : vector<1x32x128xf32> to vector<32x128xf32>
      %538 = vector.shape_cast %534 : vector<32x128xf32> to vector<1x32x128xf32>
      tpu.vector_store %arg4[%535, %c0_243, %c0_244], %538 {strides = array<i32>} : memref<33x32x128xf32, #tpu.memory_space<vmem>>, vector<1x32x128xf32>,
    }
    %c33_i32_103 = arith.constant 33 : i32
    %c14 = arith.constant 14 : index
    %c0_104 = arith.constant 0 : index
    %c0_105 = arith.constant 0 : index
    %231 = vector.load %arg4[%c14, %c0_104, %c0_105] : memref<33x32x128xf32, #tpu.memory_space<vmem>>, vector<1x32x128xf32>
    %232 = vector.shape_cast %231 : vector<1x32x128xf32> to vector<32x128xf32>
    %233 = vector.extract_strided_slice %232 {offsets = [14, 0], sizes = [1, 128], strides = [1, 1]} : vector<32x128xf32> to vector<1x128xf32>
    %234 = tpu.reciprocal %233 {approx = true} : vector<1x128xf32> -> vector<1x128xf32>
    %235 = arith.mulf %233, %234 : vector<1x128xf32>
    %cst_106 = arith.constant 2.000000e+00 : f32
    %236 = vector.broadcast %cst_106 : f32 to vector<1x128xf32>
    %237 = arith.subf %236, %235 : vector<1x128xf32>
    %238 = arith.mulf %234, %237 : vector<1x128xf32>
    %c14_i32 = arith.constant 14 : i32
    %239 = vector.broadcast %c14_i32 : i32 to vector<32x128xi32>
    %240 = arith.cmpi eq, %0, %239 : vector<32x128xi32>
    %241 = arith.extui %240 : vector<32x128xi1> to vector<32x128xi32>
    %242 = arith.sitofp %241 : vector<32x128xi32> to vector<32x128xf32>
    %243 = arith.subf %232, %242 : vector<32x128xf32>
    %244 = vector.broadcast %238 : vector<1x128xf32> to vector<32x128xf32>
    %245 = arith.mulf %243, %244 : vector<32x128xf32>
    %c0_i32_107 = arith.constant 0 : i32
    %c33_i32_108 = arith.constant 33 : i32
    %246 = arith.addi %c0_i32_107, %c33_i32_108 : i32
    %c1_i32_109 = arith.constant 1 : i32
    scf.for %arg5 = %c0_i32_107 to %246 step %c1_i32_109  : i32 {
      %528 = arith.index_cast %arg5 : i32 to index
      %c0_241 = arith.constant 0 : index
      %c0_242 = arith.constant 0 : index
      %529 = vector.load %arg4[%528, %c0_241, %c0_242] : memref<33x32x128xf32, #tpu.memory_space<vmem>>, vector<1x32x128xf32>
      %530 = vector.shape_cast %529 : vector<1x32x128xf32> to vector<32x128xf32>
      %531 = vector.extract_strided_slice %530 {offsets = [14, 0], sizes = [1, 128], strides = [1, 1]} : vector<32x128xf32> to vector<1x128xf32>
      %532 = vector.broadcast %531 : vector<1x128xf32> to vector<32x128xf32>
      %533 = arith.mulf %532, %245 : vector<32x128xf32>
      %534 = arith.subf %530, %533 : vector<32x128xf32>
      %535 = arith.index_cast %arg5 : i32 to index
      %c0_243 = arith.constant 0 : index
      %c0_244 = arith.constant 0 : index
      %536 = vector.load %arg4[%535, %c0_243, %c0_244] : memref<33x32x128xf32, #tpu.memory_space<vmem>>, vector<1x32x128xf32>
      %537 = vector.shape_cast %536 : vector<1x32x128xf32> to vector<32x128xf32>
      %538 = vector.shape_cast %534 : vector<32x128xf32> to vector<1x32x128xf32>
      tpu.vector_store %arg4[%535, %c0_243, %c0_244], %538 {strides = array<i32>} : memref<33x32x128xf32, #tpu.memory_space<vmem>>, vector<1x32x128xf32>,
    }
    %c33_i32_110 = arith.constant 33 : i32
    %c15 = arith.constant 15 : index
    %c0_111 = arith.constant 0 : index
    %c0_112 = arith.constant 0 : index
    %247 = vector.load %arg4[%c15, %c0_111, %c0_112] : memref<33x32x128xf32, #tpu.memory_space<vmem>>, vector<1x32x128xf32>
    %248 = vector.shape_cast %247 : vector<1x32x128xf32> to vector<32x128xf32>
    %249 = vector.extract_strided_slice %248 {offsets = [15, 0], sizes = [1, 128], strides = [1, 1]} : vector<32x128xf32> to vector<1x128xf32>
    %250 = tpu.reciprocal %249 {approx = true} : vector<1x128xf32> -> vector<1x128xf32>
    %251 = arith.mulf %249, %250 : vector<1x128xf32>
    %cst_113 = arith.constant 2.000000e+00 : f32
    %252 = vector.broadcast %cst_113 : f32 to vector<1x128xf32>
    %253 = arith.subf %252, %251 : vector<1x128xf32>
    %254 = arith.mulf %250, %253 : vector<1x128xf32>
    %c15_i32 = arith.constant 15 : i32
    %255 = vector.broadcast %c15_i32 : i32 to vector<32x128xi32>
    %256 = arith.cmpi eq, %0, %255 : vector<32x128xi32>
    %257 = arith.extui %256 : vector<32x128xi1> to vector<32x128xi32>
    %258 = arith.sitofp %257 : vector<32x128xi32> to vector<32x128xf32>
    %259 = arith.subf %248, %258 : vector<32x128xf32>
    %260 = vector.broadcast %254 : vector<1x128xf32> to vector<32x128xf32>
    %261 = arith.mulf %259, %260 : vector<32x128xf32>
    %c0_i32_114 = arith.constant 0 : i32
    %c33_i32_115 = arith.constant 33 : i32
    %262 = arith.addi %c0_i32_114, %c33_i32_115 : i32
    %c1_i32_116 = arith.constant 1 : i32
    scf.for %arg5 = %c0_i32_114 to %262 step %c1_i32_116  : i32 {
      %528 = arith.index_cast %arg5 : i32 to index
      %c0_241 = arith.constant 0 : index
      %c0_242 = arith.constant 0 : index
      %529 = vector.load %arg4[%528, %c0_241, %c0_242] : memref<33x32x128xf32, #tpu.memory_space<vmem>>, vector<1x32x128xf32>
      %530 = vector.shape_cast %529 : vector<1x32x128xf32> to vector<32x128xf32>
      %531 = vector.extract_strided_slice %530 {offsets = [15, 0], sizes = [1, 128], strides = [1, 1]} : vector<32x128xf32> to vector<1x128xf32>
      %532 = vector.broadcast %531 : vector<1x128xf32> to vector<32x128xf32>
      %533 = arith.mulf %532, %261 : vector<32x128xf32>
      %534 = arith.subf %530, %533 : vector<32x128xf32>
      %535 = arith.index_cast %arg5 : i32 to index
      %c0_243 = arith.constant 0 : index
      %c0_244 = arith.constant 0 : index
      %536 = vector.load %arg4[%535, %c0_243, %c0_244] : memref<33x32x128xf32, #tpu.memory_space<vmem>>, vector<1x32x128xf32>
      %537 = vector.shape_cast %536 : vector<1x32x128xf32> to vector<32x128xf32>
      %538 = vector.shape_cast %534 : vector<32x128xf32> to vector<1x32x128xf32>
      tpu.vector_store %arg4[%535, %c0_243, %c0_244], %538 {strides = array<i32>} : memref<33x32x128xf32, #tpu.memory_space<vmem>>, vector<1x32x128xf32>,
    }
    %c33_i32_117 = arith.constant 33 : i32
    %c16 = arith.constant 16 : index
    %c0_118 = arith.constant 0 : index
    %c0_119 = arith.constant 0 : index
    %263 = vector.load %arg4[%c16, %c0_118, %c0_119] : memref<33x32x128xf32, #tpu.memory_space<vmem>>, vector<1x32x128xf32>
    %264 = vector.shape_cast %263 : vector<1x32x128xf32> to vector<32x128xf32>
    %265 = vector.extract_strided_slice %264 {offsets = [16, 0], sizes = [1, 128], strides = [1, 1]} : vector<32x128xf32> to vector<1x128xf32>
    %266 = tpu.reciprocal %265 {approx = true} : vector<1x128xf32> -> vector<1x128xf32>
    %267 = arith.mulf %265, %266 : vector<1x128xf32>
    %cst_120 = arith.constant 2.000000e+00 : f32
    %268 = vector.broadcast %cst_120 : f32 to vector<1x128xf32>
    %269 = arith.subf %268, %267 : vector<1x128xf32>
    %270 = arith.mulf %266, %269 : vector<1x128xf32>
    %c16_i32 = arith.constant 16 : i32
    %271 = vector.broadcast %c16_i32 : i32 to vector<32x128xi32>
    %272 = arith.cmpi eq, %0, %271 : vector<32x128xi32>
    %273 = arith.extui %272 : vector<32x128xi1> to vector<32x128xi32>
    %274 = arith.sitofp %273 : vector<32x128xi32> to vector<32x128xf32>
    %275 = arith.subf %264, %274 : vector<32x128xf32>
    %276 = vector.broadcast %270 : vector<1x128xf32> to vector<32x128xf32>
    %277 = arith.mulf %275, %276 : vector<32x128xf32>
    %c0_i32_121 = arith.constant 0 : i32
    %c33_i32_122 = arith.constant 33 : i32
    %278 = arith.addi %c0_i32_121, %c33_i32_122 : i32
    %c1_i32_123 = arith.constant 1 : i32
    scf.for %arg5 = %c0_i32_121 to %278 step %c1_i32_123  : i32 {
      %528 = arith.index_cast %arg5 : i32 to index
      %c0_241 = arith.constant 0 : index
      %c0_242 = arith.constant 0 : index
      %529 = vector.load %arg4[%528, %c0_241, %c0_242] : memref<33x32x128xf32, #tpu.memory_space<vmem>>, vector<1x32x128xf32>
      %530 = vector.shape_cast %529 : vector<1x32x128xf32> to vector<32x128xf32>
      %531 = vector.extract_strided_slice %530 {offsets = [16, 0], sizes = [1, 128], strides = [1, 1]} : vector<32x128xf32> to vector<1x128xf32>
      %532 = vector.broadcast %531 : vector<1x128xf32> to vector<32x128xf32>
      %533 = arith.mulf %532, %277 : vector<32x128xf32>
      %534 = arith.subf %530, %533 : vector<32x128xf32>
      %535 = arith.index_cast %arg5 : i32 to index
      %c0_243 = arith.constant 0 : index
      %c0_244 = arith.constant 0 : index
      %536 = vector.load %arg4[%535, %c0_243, %c0_244] : memref<33x32x128xf32, #tpu.memory_space<vmem>>, vector<1x32x128xf32>
      %537 = vector.shape_cast %536 : vector<1x32x128xf32> to vector<32x128xf32>
      %538 = vector.shape_cast %534 : vector<32x128xf32> to vector<1x32x128xf32>
      tpu.vector_store %arg4[%535, %c0_243, %c0_244], %538 {strides = array<i32>} : memref<33x32x128xf32, #tpu.memory_space<vmem>>, vector<1x32x128xf32>,
    }
    %c33_i32_124 = arith.constant 33 : i32
    %c17 = arith.constant 17 : index
    %c0_125 = arith.constant 0 : index
    %c0_126 = arith.constant 0 : index
    %279 = vector.load %arg4[%c17, %c0_125, %c0_126] : memref<33x32x128xf32, #tpu.memory_space<vmem>>, vector<1x32x128xf32>
    %280 = vector.shape_cast %279 : vector<1x32x128xf32> to vector<32x128xf32>
    %281 = vector.extract_strided_slice %280 {offsets = [17, 0], sizes = [1, 128], strides = [1, 1]} : vector<32x128xf32> to vector<1x128xf32>
    %282 = tpu.reciprocal %281 {approx = true} : vector<1x128xf32> -> vector<1x128xf32>
    %283 = arith.mulf %281, %282 : vector<1x128xf32>
    %cst_127 = arith.constant 2.000000e+00 : f32
    %284 = vector.broadcast %cst_127 : f32 to vector<1x128xf32>
    %285 = arith.subf %284, %283 : vector<1x128xf32>
    %286 = arith.mulf %282, %285 : vector<1x128xf32>
    %c17_i32 = arith.constant 17 : i32
    %287 = vector.broadcast %c17_i32 : i32 to vector<32x128xi32>
    %288 = arith.cmpi eq, %0, %287 : vector<32x128xi32>
    %289 = arith.extui %288 : vector<32x128xi1> to vector<32x128xi32>
    %290 = arith.sitofp %289 : vector<32x128xi32> to vector<32x128xf32>
    %291 = arith.subf %280, %290 : vector<32x128xf32>
    %292 = vector.broadcast %286 : vector<1x128xf32> to vector<32x128xf32>
    %293 = arith.mulf %291, %292 : vector<32x128xf32>
    %c0_i32_128 = arith.constant 0 : i32
    %c33_i32_129 = arith.constant 33 : i32
    %294 = arith.addi %c0_i32_128, %c33_i32_129 : i32
    %c1_i32_130 = arith.constant 1 : i32
    scf.for %arg5 = %c0_i32_128 to %294 step %c1_i32_130  : i32 {
      %528 = arith.index_cast %arg5 : i32 to index
      %c0_241 = arith.constant 0 : index
      %c0_242 = arith.constant 0 : index
      %529 = vector.load %arg4[%528, %c0_241, %c0_242] : memref<33x32x128xf32, #tpu.memory_space<vmem>>, vector<1x32x128xf32>
      %530 = vector.shape_cast %529 : vector<1x32x128xf32> to vector<32x128xf32>
      %531 = vector.extract_strided_slice %530 {offsets = [17, 0], sizes = [1, 128], strides = [1, 1]} : vector<32x128xf32> to vector<1x128xf32>
      %532 = vector.broadcast %531 : vector<1x128xf32> to vector<32x128xf32>
      %533 = arith.mulf %532, %293 : vector<32x128xf32>
      %534 = arith.subf %530, %533 : vector<32x128xf32>
      %535 = arith.index_cast %arg5 : i32 to index
      %c0_243 = arith.constant 0 : index
      %c0_244 = arith.constant 0 : index
      %536 = vector.load %arg4[%535, %c0_243, %c0_244] : memref<33x32x128xf32, #tpu.memory_space<vmem>>, vector<1x32x128xf32>
      %537 = vector.shape_cast %536 : vector<1x32x128xf32> to vector<32x128xf32>
      %538 = vector.shape_cast %534 : vector<32x128xf32> to vector<1x32x128xf32>
      tpu.vector_store %arg4[%535, %c0_243, %c0_244], %538 {strides = array<i32>} : memref<33x32x128xf32, #tpu.memory_space<vmem>>, vector<1x32x128xf32>,
    }
    %c33_i32_131 = arith.constant 33 : i32
    %c18 = arith.constant 18 : index
    %c0_132 = arith.constant 0 : index
    %c0_133 = arith.constant 0 : index
    %295 = vector.load %arg4[%c18, %c0_132, %c0_133] : memref<33x32x128xf32, #tpu.memory_space<vmem>>, vector<1x32x128xf32>
    %296 = vector.shape_cast %295 : vector<1x32x128xf32> to vector<32x128xf32>
    %297 = vector.extract_strided_slice %296 {offsets = [18, 0], sizes = [1, 128], strides = [1, 1]} : vector<32x128xf32> to vector<1x128xf32>
    %298 = tpu.reciprocal %297 {approx = true} : vector<1x128xf32> -> vector<1x128xf32>
    %299 = arith.mulf %297, %298 : vector<1x128xf32>
    %cst_134 = arith.constant 2.000000e+00 : f32
    %300 = vector.broadcast %cst_134 : f32 to vector<1x128xf32>
    %301 = arith.subf %300, %299 : vector<1x128xf32>
    %302 = arith.mulf %298, %301 : vector<1x128xf32>
    %c18_i32 = arith.constant 18 : i32
    %303 = vector.broadcast %c18_i32 : i32 to vector<32x128xi32>
    %304 = arith.cmpi eq, %0, %303 : vector<32x128xi32>
    %305 = arith.extui %304 : vector<32x128xi1> to vector<32x128xi32>
    %306 = arith.sitofp %305 : vector<32x128xi32> to vector<32x128xf32>
    %307 = arith.subf %296, %306 : vector<32x128xf32>
    %308 = vector.broadcast %302 : vector<1x128xf32> to vector<32x128xf32>
    %309 = arith.mulf %307, %308 : vector<32x128xf32>
    %c0_i32_135 = arith.constant 0 : i32
    %c33_i32_136 = arith.constant 33 : i32
    %310 = arith.addi %c0_i32_135, %c33_i32_136 : i32
    %c1_i32_137 = arith.constant 1 : i32
    scf.for %arg5 = %c0_i32_135 to %310 step %c1_i32_137  : i32 {
      %528 = arith.index_cast %arg5 : i32 to index
      %c0_241 = arith.constant 0 : index
      %c0_242 = arith.constant 0 : index
      %529 = vector.load %arg4[%528, %c0_241, %c0_242] : memref<33x32x128xf32, #tpu.memory_space<vmem>>, vector<1x32x128xf32>
      %530 = vector.shape_cast %529 : vector<1x32x128xf32> to vector<32x128xf32>
      %531 = vector.extract_strided_slice %530 {offsets = [18, 0], sizes = [1, 128], strides = [1, 1]} : vector<32x128xf32> to vector<1x128xf32>
      %532 = vector.broadcast %531 : vector<1x128xf32> to vector<32x128xf32>
      %533 = arith.mulf %532, %309 : vector<32x128xf32>
      %534 = arith.subf %530, %533 : vector<32x128xf32>
      %535 = arith.index_cast %arg5 : i32 to index
      %c0_243 = arith.constant 0 : index
      %c0_244 = arith.constant 0 : index
      %536 = vector.load %arg4[%535, %c0_243, %c0_244] : memref<33x32x128xf32, #tpu.memory_space<vmem>>, vector<1x32x128xf32>
      %537 = vector.shape_cast %536 : vector<1x32x128xf32> to vector<32x128xf32>
      %538 = vector.shape_cast %534 : vector<32x128xf32> to vector<1x32x128xf32>
      tpu.vector_store %arg4[%535, %c0_243, %c0_244], %538 {strides = array<i32>} : memref<33x32x128xf32, #tpu.memory_space<vmem>>, vector<1x32x128xf32>,
    }
    %c33_i32_138 = arith.constant 33 : i32
    %c19 = arith.constant 19 : index
    %c0_139 = arith.constant 0 : index
    %c0_140 = arith.constant 0 : index
    %311 = vector.load %arg4[%c19, %c0_139, %c0_140] : memref<33x32x128xf32, #tpu.memory_space<vmem>>, vector<1x32x128xf32>
    %312 = vector.shape_cast %311 : vector<1x32x128xf32> to vector<32x128xf32>
    %313 = vector.extract_strided_slice %312 {offsets = [19, 0], sizes = [1, 128], strides = [1, 1]} : vector<32x128xf32> to vector<1x128xf32>
    %314 = tpu.reciprocal %313 {approx = true} : vector<1x128xf32> -> vector<1x128xf32>
    %315 = arith.mulf %313, %314 : vector<1x128xf32>
    %cst_141 = arith.constant 2.000000e+00 : f32
    %316 = vector.broadcast %cst_141 : f32 to vector<1x128xf32>
    %317 = arith.subf %316, %315 : vector<1x128xf32>
    %318 = arith.mulf %314, %317 : vector<1x128xf32>
    %c19_i32 = arith.constant 19 : i32
    %319 = vector.broadcast %c19_i32 : i32 to vector<32x128xi32>
    %320 = arith.cmpi eq, %0, %319 : vector<32x128xi32>
    %321 = arith.extui %320 : vector<32x128xi1> to vector<32x128xi32>
    %322 = arith.sitofp %321 : vector<32x128xi32> to vector<32x128xf32>
    %323 = arith.subf %312, %322 : vector<32x128xf32>
    %324 = vector.broadcast %318 : vector<1x128xf32> to vector<32x128xf32>
    %325 = arith.mulf %323, %324 : vector<32x128xf32>
    %c0_i32_142 = arith.constant 0 : i32
    %c33_i32_143 = arith.constant 33 : i32
    %326 = arith.addi %c0_i32_142, %c33_i32_143 : i32
    %c1_i32_144 = arith.constant 1 : i32
    scf.for %arg5 = %c0_i32_142 to %326 step %c1_i32_144  : i32 {
      %528 = arith.index_cast %arg5 : i32 to index
      %c0_241 = arith.constant 0 : index
      %c0_242 = arith.constant 0 : index
      %529 = vector.load %arg4[%528, %c0_241, %c0_242] : memref<33x32x128xf32, #tpu.memory_space<vmem>>, vector<1x32x128xf32>
      %530 = vector.shape_cast %529 : vector<1x32x128xf32> to vector<32x128xf32>
      %531 = vector.extract_strided_slice %530 {offsets = [19, 0], sizes = [1, 128], strides = [1, 1]} : vector<32x128xf32> to vector<1x128xf32>
      %532 = vector.broadcast %531 : vector<1x128xf32> to vector<32x128xf32>
      %533 = arith.mulf %532, %325 : vector<32x128xf32>
      %534 = arith.subf %530, %533 : vector<32x128xf32>
      %535 = arith.index_cast %arg5 : i32 to index
      %c0_243 = arith.constant 0 : index
      %c0_244 = arith.constant 0 : index
      %536 = vector.load %arg4[%535, %c0_243, %c0_244] : memref<33x32x128xf32, #tpu.memory_space<vmem>>, vector<1x32x128xf32>
      %537 = vector.shape_cast %536 : vector<1x32x128xf32> to vector<32x128xf32>
      %538 = vector.shape_cast %534 : vector<32x128xf32> to vector<1x32x128xf32>
      tpu.vector_store %arg4[%535, %c0_243, %c0_244], %538 {strides = array<i32>} : memref<33x32x128xf32, #tpu.memory_space<vmem>>, vector<1x32x128xf32>,
    }
    %c33_i32_145 = arith.constant 33 : i32
    %c20 = arith.constant 20 : index
    %c0_146 = arith.constant 0 : index
    %c0_147 = arith.constant 0 : index
    %327 = vector.load %arg4[%c20, %c0_146, %c0_147] : memref<33x32x128xf32, #tpu.memory_space<vmem>>, vector<1x32x128xf32>
    %328 = vector.shape_cast %327 : vector<1x32x128xf32> to vector<32x128xf32>
    %329 = vector.extract_strided_slice %328 {offsets = [20, 0], sizes = [1, 128], strides = [1, 1]} : vector<32x128xf32> to vector<1x128xf32>
    %330 = tpu.reciprocal %329 {approx = true} : vector<1x128xf32> -> vector<1x128xf32>
    %331 = arith.mulf %329, %330 : vector<1x128xf32>
    %cst_148 = arith.constant 2.000000e+00 : f32
    %332 = vector.broadcast %cst_148 : f32 to vector<1x128xf32>
    %333 = arith.subf %332, %331 : vector<1x128xf32>
    %334 = arith.mulf %330, %333 : vector<1x128xf32>
    %c20_i32 = arith.constant 20 : i32
    %335 = vector.broadcast %c20_i32 : i32 to vector<32x128xi32>
    %336 = arith.cmpi eq, %0, %335 : vector<32x128xi32>
    %337 = arith.extui %336 : vector<32x128xi1> to vector<32x128xi32>
    %338 = arith.sitofp %337 : vector<32x128xi32> to vector<32x128xf32>
    %339 = arith.subf %328, %338 : vector<32x128xf32>
    %340 = vector.broadcast %334 : vector<1x128xf32> to vector<32x128xf32>
    %341 = arith.mulf %339, %340 : vector<32x128xf32>
    %c0_i32_149 = arith.constant 0 : i32
    %c33_i32_150 = arith.constant 33 : i32
    %342 = arith.addi %c0_i32_149, %c33_i32_150 : i32
    %c1_i32_151 = arith.constant 1 : i32
    scf.for %arg5 = %c0_i32_149 to %342 step %c1_i32_151  : i32 {
      %528 = arith.index_cast %arg5 : i32 to index
      %c0_241 = arith.constant 0 : index
      %c0_242 = arith.constant 0 : index
      %529 = vector.load %arg4[%528, %c0_241, %c0_242] : memref<33x32x128xf32, #tpu.memory_space<vmem>>, vector<1x32x128xf32>
      %530 = vector.shape_cast %529 : vector<1x32x128xf32> to vector<32x128xf32>
      %531 = vector.extract_strided_slice %530 {offsets = [20, 0], sizes = [1, 128], strides = [1, 1]} : vector<32x128xf32> to vector<1x128xf32>
      %532 = vector.broadcast %531 : vector<1x128xf32> to vector<32x128xf32>
      %533 = arith.mulf %532, %341 : vector<32x128xf32>
      %534 = arith.subf %530, %533 : vector<32x128xf32>
      %535 = arith.index_cast %arg5 : i32 to index
      %c0_243 = arith.constant 0 : index
      %c0_244 = arith.constant 0 : index
      %536 = vector.load %arg4[%535, %c0_243, %c0_244] : memref<33x32x128xf32, #tpu.memory_space<vmem>>, vector<1x32x128xf32>
      %537 = vector.shape_cast %536 : vector<1x32x128xf32> to vector<32x128xf32>
      %538 = vector.shape_cast %534 : vector<32x128xf32> to vector<1x32x128xf32>
      tpu.vector_store %arg4[%535, %c0_243, %c0_244], %538 {strides = array<i32>} : memref<33x32x128xf32, #tpu.memory_space<vmem>>, vector<1x32x128xf32>,
    }
    %c33_i32_152 = arith.constant 33 : i32
    %c21 = arith.constant 21 : index
    %c0_153 = arith.constant 0 : index
    %c0_154 = arith.constant 0 : index
    %343 = vector.load %arg4[%c21, %c0_153, %c0_154] : memref<33x32x128xf32, #tpu.memory_space<vmem>>, vector<1x32x128xf32>
    %344 = vector.shape_cast %343 : vector<1x32x128xf32> to vector<32x128xf32>
    %345 = vector.extract_strided_slice %344 {offsets = [21, 0], sizes = [1, 128], strides = [1, 1]} : vector<32x128xf32> to vector<1x128xf32>
    %346 = tpu.reciprocal %345 {approx = true} : vector<1x128xf32> -> vector<1x128xf32>
    %347 = arith.mulf %345, %346 : vector<1x128xf32>
    %cst_155 = arith.constant 2.000000e+00 : f32
    %348 = vector.broadcast %cst_155 : f32 to vector<1x128xf32>
    %349 = arith.subf %348, %347 : vector<1x128xf32>
    %350 = arith.mulf %346, %349 : vector<1x128xf32>
    %c21_i32 = arith.constant 21 : i32
    %351 = vector.broadcast %c21_i32 : i32 to vector<32x128xi32>
    %352 = arith.cmpi eq, %0, %351 : vector<32x128xi32>
    %353 = arith.extui %352 : vector<32x128xi1> to vector<32x128xi32>
    %354 = arith.sitofp %353 : vector<32x128xi32> to vector<32x128xf32>
    %355 = arith.subf %344, %354 : vector<32x128xf32>
    %356 = vector.broadcast %350 : vector<1x128xf32> to vector<32x128xf32>
    %357 = arith.mulf %355, %356 : vector<32x128xf32>
    %c0_i32_156 = arith.constant 0 : i32
    %c33_i32_157 = arith.constant 33 : i32
    %358 = arith.addi %c0_i32_156, %c33_i32_157 : i32
    %c1_i32_158 = arith.constant 1 : i32
    scf.for %arg5 = %c0_i32_156 to %358 step %c1_i32_158  : i32 {
      %528 = arith.index_cast %arg5 : i32 to index
      %c0_241 = arith.constant 0 : index
      %c0_242 = arith.constant 0 : index
      %529 = vector.load %arg4[%528, %c0_241, %c0_242] : memref<33x32x128xf32, #tpu.memory_space<vmem>>, vector<1x32x128xf32>
      %530 = vector.shape_cast %529 : vector<1x32x128xf32> to vector<32x128xf32>
      %531 = vector.extract_strided_slice %530 {offsets = [21, 0], sizes = [1, 128], strides = [1, 1]} : vector<32x128xf32> to vector<1x128xf32>
      %532 = vector.broadcast %531 : vector<1x128xf32> to vector<32x128xf32>
      %533 = arith.mulf %532, %357 : vector<32x128xf32>
      %534 = arith.subf %530, %533 : vector<32x128xf32>
      %535 = arith.index_cast %arg5 : i32 to index
      %c0_243 = arith.constant 0 : index
      %c0_244 = arith.constant 0 : index
      %536 = vector.load %arg4[%535, %c0_243, %c0_244] : memref<33x32x128xf32, #tpu.memory_space<vmem>>, vector<1x32x128xf32>
      %537 = vector.shape_cast %536 : vector<1x32x128xf32> to vector<32x128xf32>
      %538 = vector.shape_cast %534 : vector<32x128xf32> to vector<1x32x128xf32>
      tpu.vector_store %arg4[%535, %c0_243, %c0_244], %538 {strides = array<i32>} : memref<33x32x128xf32, #tpu.memory_space<vmem>>, vector<1x32x128xf32>,
    }
    %c33_i32_159 = arith.constant 33 : i32
    %c22 = arith.constant 22 : index
    %c0_160 = arith.constant 0 : index
    %c0_161 = arith.constant 0 : index
    %359 = vector.load %arg4[%c22, %c0_160, %c0_161] : memref<33x32x128xf32, #tpu.memory_space<vmem>>, vector<1x32x128xf32>
    %360 = vector.shape_cast %359 : vector<1x32x128xf32> to vector<32x128xf32>
    %361 = vector.extract_strided_slice %360 {offsets = [22, 0], sizes = [1, 128], strides = [1, 1]} : vector<32x128xf32> to vector<1x128xf32>
    %362 = tpu.reciprocal %361 {approx = true} : vector<1x128xf32> -> vector<1x128xf32>
    %363 = arith.mulf %361, %362 : vector<1x128xf32>
    %cst_162 = arith.constant 2.000000e+00 : f32
    %364 = vector.broadcast %cst_162 : f32 to vector<1x128xf32>
    %365 = arith.subf %364, %363 : vector<1x128xf32>
    %366 = arith.mulf %362, %365 : vector<1x128xf32>
    %c22_i32 = arith.constant 22 : i32
    %367 = vector.broadcast %c22_i32 : i32 to vector<32x128xi32>
    %368 = arith.cmpi eq, %0, %367 : vector<32x128xi32>
    %369 = arith.extui %368 : vector<32x128xi1> to vector<32x128xi32>
    %370 = arith.sitofp %369 : vector<32x128xi32> to vector<32x128xf32>
    %371 = arith.subf %360, %370 : vector<32x128xf32>
    %372 = vector.broadcast %366 : vector<1x128xf32> to vector<32x128xf32>
    %373 = arith.mulf %371, %372 : vector<32x128xf32>
    %c0_i32_163 = arith.constant 0 : i32
    %c33_i32_164 = arith.constant 33 : i32
    %374 = arith.addi %c0_i32_163, %c33_i32_164 : i32
    %c1_i32_165 = arith.constant 1 : i32
    scf.for %arg5 = %c0_i32_163 to %374 step %c1_i32_165  : i32 {
      %528 = arith.index_cast %arg5 : i32 to index
      %c0_241 = arith.constant 0 : index
      %c0_242 = arith.constant 0 : index
      %529 = vector.load %arg4[%528, %c0_241, %c0_242] : memref<33x32x128xf32, #tpu.memory_space<vmem>>, vector<1x32x128xf32>
      %530 = vector.shape_cast %529 : vector<1x32x128xf32> to vector<32x128xf32>
      %531 = vector.extract_strided_slice %530 {offsets = [22, 0], sizes = [1, 128], strides = [1, 1]} : vector<32x128xf32> to vector<1x128xf32>
      %532 = vector.broadcast %531 : vector<1x128xf32> to vector<32x128xf32>
      %533 = arith.mulf %532, %373 : vector<32x128xf32>
      %534 = arith.subf %530, %533 : vector<32x128xf32>
      %535 = arith.index_cast %arg5 : i32 to index
      %c0_243 = arith.constant 0 : index
      %c0_244 = arith.constant 0 : index
      %536 = vector.load %arg4[%535, %c0_243, %c0_244] : memref<33x32x128xf32, #tpu.memory_space<vmem>>, vector<1x32x128xf32>
      %537 = vector.shape_cast %536 : vector<1x32x128xf32> to vector<32x128xf32>
      %538 = vector.shape_cast %534 : vector<32x128xf32> to vector<1x32x128xf32>
      tpu.vector_store %arg4[%535, %c0_243, %c0_244], %538 {strides = array<i32>} : memref<33x32x128xf32, #tpu.memory_space<vmem>>, vector<1x32x128xf32>,
    }
    %c33_i32_166 = arith.constant 33 : i32
    %c23 = arith.constant 23 : index
    %c0_167 = arith.constant 0 : index
    %c0_168 = arith.constant 0 : index
    %375 = vector.load %arg4[%c23, %c0_167, %c0_168] : memref<33x32x128xf32, #tpu.memory_space<vmem>>, vector<1x32x128xf32>
    %376 = vector.shape_cast %375 : vector<1x32x128xf32> to vector<32x128xf32>
    %377 = vector.extract_strided_slice %376 {offsets = [23, 0], sizes = [1, 128], strides = [1, 1]} : vector<32x128xf32> to vector<1x128xf32>
    %378 = tpu.reciprocal %377 {approx = true} : vector<1x128xf32> -> vector<1x128xf32>
    %379 = arith.mulf %377, %378 : vector<1x128xf32>
    %cst_169 = arith.constant 2.000000e+00 : f32
    %380 = vector.broadcast %cst_169 : f32 to vector<1x128xf32>
    %381 = arith.subf %380, %379 : vector<1x128xf32>
    %382 = arith.mulf %378, %381 : vector<1x128xf32>
    %c23_i32 = arith.constant 23 : i32
    %383 = vector.broadcast %c23_i32 : i32 to vector<32x128xi32>
    %384 = arith.cmpi eq, %0, %383 : vector<32x128xi32>
    %385 = arith.extui %384 : vector<32x128xi1> to vector<32x128xi32>
    %386 = arith.sitofp %385 : vector<32x128xi32> to vector<32x128xf32>
    %387 = arith.subf %376, %386 : vector<32x128xf32>
    %388 = vector.broadcast %382 : vector<1x128xf32> to vector<32x128xf32>
    %389 = arith.mulf %387, %388 : vector<32x128xf32>
    %c0_i32_170 = arith.constant 0 : i32
    %c33_i32_171 = arith.constant 33 : i32
    %390 = arith.addi %c0_i32_170, %c33_i32_171 : i32
    %c1_i32_172 = arith.constant 1 : i32
    scf.for %arg5 = %c0_i32_170 to %390 step %c1_i32_172  : i32 {
      %528 = arith.index_cast %arg5 : i32 to index
      %c0_241 = arith.constant 0 : index
      %c0_242 = arith.constant 0 : index
      %529 = vector.load %arg4[%528, %c0_241, %c0_242] : memref<33x32x128xf32, #tpu.memory_space<vmem>>, vector<1x32x128xf32>
      %530 = vector.shape_cast %529 : vector<1x32x128xf32> to vector<32x128xf32>
      %531 = vector.extract_strided_slice %530 {offsets = [23, 0], sizes = [1, 128], strides = [1, 1]} : vector<32x128xf32> to vector<1x128xf32>
      %532 = vector.broadcast %531 : vector<1x128xf32> to vector<32x128xf32>
      %533 = arith.mulf %532, %389 : vector<32x128xf32>
      %534 = arith.subf %530, %533 : vector<32x128xf32>
      %535 = arith.index_cast %arg5 : i32 to index
      %c0_243 = arith.constant 0 : index
      %c0_244 = arith.constant 0 : index
      %536 = vector.load %arg4[%535, %c0_243, %c0_244] : memref<33x32x128xf32, #tpu.memory_space<vmem>>, vector<1x32x128xf32>
      %537 = vector.shape_cast %536 : vector<1x32x128xf32> to vector<32x128xf32>
      %538 = vector.shape_cast %534 : vector<32x128xf32> to vector<1x32x128xf32>
      tpu.vector_store %arg4[%535, %c0_243, %c0_244], %538 {strides = array<i32>} : memref<33x32x128xf32, #tpu.memory_space<vmem>>, vector<1x32x128xf32>,
    }
    %c33_i32_173 = arith.constant 33 : i32
    %c24 = arith.constant 24 : index
    %c0_174 = arith.constant 0 : index
    %c0_175 = arith.constant 0 : index
    %391 = vector.load %arg4[%c24, %c0_174, %c0_175] : memref<33x32x128xf32, #tpu.memory_space<vmem>>, vector<1x32x128xf32>
    %392 = vector.shape_cast %391 : vector<1x32x128xf32> to vector<32x128xf32>
    %393 = vector.extract_strided_slice %392 {offsets = [24, 0], sizes = [1, 128], strides = [1, 1]} : vector<32x128xf32> to vector<1x128xf32>
    %394 = tpu.reciprocal %393 {approx = true} : vector<1x128xf32> -> vector<1x128xf32>
    %395 = arith.mulf %393, %394 : vector<1x128xf32>
    %cst_176 = arith.constant 2.000000e+00 : f32
    %396 = vector.broadcast %cst_176 : f32 to vector<1x128xf32>
    %397 = arith.subf %396, %395 : vector<1x128xf32>
    %398 = arith.mulf %394, %397 : vector<1x128xf32>
    %c24_i32 = arith.constant 24 : i32
    %399 = vector.broadcast %c24_i32 : i32 to vector<32x128xi32>
    %400 = arith.cmpi eq, %0, %399 : vector<32x128xi32>
    %401 = arith.extui %400 : vector<32x128xi1> to vector<32x128xi32>
    %402 = arith.sitofp %401 : vector<32x128xi32> to vector<32x128xf32>
    %403 = arith.subf %392, %402 : vector<32x128xf32>
    %404 = vector.broadcast %398 : vector<1x128xf32> to vector<32x128xf32>
    %405 = arith.mulf %403, %404 : vector<32x128xf32>
    %c0_i32_177 = arith.constant 0 : i32
    %c33_i32_178 = arith.constant 33 : i32
    %406 = arith.addi %c0_i32_177, %c33_i32_178 : i32
    %c1_i32_179 = arith.constant 1 : i32
    scf.for %arg5 = %c0_i32_177 to %406 step %c1_i32_179  : i32 {
      %528 = arith.index_cast %arg5 : i32 to index
      %c0_241 = arith.constant 0 : index
      %c0_242 = arith.constant 0 : index
      %529 = vector.load %arg4[%528, %c0_241, %c0_242] : memref<33x32x128xf32, #tpu.memory_space<vmem>>, vector<1x32x128xf32>
      %530 = vector.shape_cast %529 : vector<1x32x128xf32> to vector<32x128xf32>
      %531 = vector.extract_strided_slice %530 {offsets = [24, 0], sizes = [1, 128], strides = [1, 1]} : vector<32x128xf32> to vector<1x128xf32>
      %532 = vector.broadcast %531 : vector<1x128xf32> to vector<32x128xf32>
      %533 = arith.mulf %532, %405 : vector<32x128xf32>
      %534 = arith.subf %530, %533 : vector<32x128xf32>
      %535 = arith.index_cast %arg5 : i32 to index
      %c0_243 = arith.constant 0 : index
      %c0_244 = arith.constant 0 : index
      %536 = vector.load %arg4[%535, %c0_243, %c0_244] : memref<33x32x128xf32, #tpu.memory_space<vmem>>, vector<1x32x128xf32>
      %537 = vector.shape_cast %536 : vector<1x32x128xf32> to vector<32x128xf32>
      %538 = vector.shape_cast %534 : vector<32x128xf32> to vector<1x32x128xf32>
      tpu.vector_store %arg4[%535, %c0_243, %c0_244], %538 {strides = array<i32>} : memref<33x32x128xf32, #tpu.memory_space<vmem>>, vector<1x32x128xf32>,
    }
    %c33_i32_180 = arith.constant 33 : i32
    %c25 = arith.constant 25 : index
    %c0_181 = arith.constant 0 : index
    %c0_182 = arith.constant 0 : index
    %407 = vector.load %arg4[%c25, %c0_181, %c0_182] : memref<33x32x128xf32, #tpu.memory_space<vmem>>, vector<1x32x128xf32>
    %408 = vector.shape_cast %407 : vector<1x32x128xf32> to vector<32x128xf32>
    %409 = vector.extract_strided_slice %408 {offsets = [25, 0], sizes = [1, 128], strides = [1, 1]} : vector<32x128xf32> to vector<1x128xf32>
    %410 = tpu.reciprocal %409 {approx = true} : vector<1x128xf32> -> vector<1x128xf32>
    %411 = arith.mulf %409, %410 : vector<1x128xf32>
    %cst_183 = arith.constant 2.000000e+00 : f32
    %412 = vector.broadcast %cst_183 : f32 to vector<1x128xf32>
    %413 = arith.subf %412, %411 : vector<1x128xf32>
    %414 = arith.mulf %410, %413 : vector<1x128xf32>
    %c25_i32 = arith.constant 25 : i32
    %415 = vector.broadcast %c25_i32 : i32 to vector<32x128xi32>
    %416 = arith.cmpi eq, %0, %415 : vector<32x128xi32>
    %417 = arith.extui %416 : vector<32x128xi1> to vector<32x128xi32>
    %418 = arith.sitofp %417 : vector<32x128xi32> to vector<32x128xf32>
    %419 = arith.subf %408, %418 : vector<32x128xf32>
    %420 = vector.broadcast %414 : vector<1x128xf32> to vector<32x128xf32>
    %421 = arith.mulf %419, %420 : vector<32x128xf32>
    %c0_i32_184 = arith.constant 0 : i32
    %c33_i32_185 = arith.constant 33 : i32
    %422 = arith.addi %c0_i32_184, %c33_i32_185 : i32
    %c1_i32_186 = arith.constant 1 : i32
    scf.for %arg5 = %c0_i32_184 to %422 step %c1_i32_186  : i32 {
      %528 = arith.index_cast %arg5 : i32 to index
      %c0_241 = arith.constant 0 : index
      %c0_242 = arith.constant 0 : index
      %529 = vector.load %arg4[%528, %c0_241, %c0_242] : memref<33x32x128xf32, #tpu.memory_space<vmem>>, vector<1x32x128xf32>
      %530 = vector.shape_cast %529 : vector<1x32x128xf32> to vector<32x128xf32>
      %531 = vector.extract_strided_slice %530 {offsets = [25, 0], sizes = [1, 128], strides = [1, 1]} : vector<32x128xf32> to vector<1x128xf32>
      %532 = vector.broadcast %531 : vector<1x128xf32> to vector<32x128xf32>
      %533 = arith.mulf %532, %421 : vector<32x128xf32>
      %534 = arith.subf %530, %533 : vector<32x128xf32>
      %535 = arith.index_cast %arg5 : i32 to index
      %c0_243 = arith.constant 0 : index
      %c0_244 = arith.constant 0 : index
      %536 = vector.load %arg4[%535, %c0_243, %c0_244] : memref<33x32x128xf32, #tpu.memory_space<vmem>>, vector<1x32x128xf32>
      %537 = vector.shape_cast %536 : vector<1x32x128xf32> to vector<32x128xf32>
      %538 = vector.shape_cast %534 : vector<32x128xf32> to vector<1x32x128xf32>
      tpu.vector_store %arg4[%535, %c0_243, %c0_244], %538 {strides = array<i32>} : memref<33x32x128xf32, #tpu.memory_space<vmem>>, vector<1x32x128xf32>,
    }
    %c33_i32_187 = arith.constant 33 : i32
    %c26 = arith.constant 26 : index
    %c0_188 = arith.constant 0 : index
    %c0_189 = arith.constant 0 : index
    %423 = vector.load %arg4[%c26, %c0_188, %c0_189] : memref<33x32x128xf32, #tpu.memory_space<vmem>>, vector<1x32x128xf32>
    %424 = vector.shape_cast %423 : vector<1x32x128xf32> to vector<32x128xf32>
    %425 = vector.extract_strided_slice %424 {offsets = [26, 0], sizes = [1, 128], strides = [1, 1]} : vector<32x128xf32> to vector<1x128xf32>
    %426 = tpu.reciprocal %425 {approx = true} : vector<1x128xf32> -> vector<1x128xf32>
    %427 = arith.mulf %425, %426 : vector<1x128xf32>
    %cst_190 = arith.constant 2.000000e+00 : f32
    %428 = vector.broadcast %cst_190 : f32 to vector<1x128xf32>
    %429 = arith.subf %428, %427 : vector<1x128xf32>
    %430 = arith.mulf %426, %429 : vector<1x128xf32>
    %c26_i32 = arith.constant 26 : i32
    %431 = vector.broadcast %c26_i32 : i32 to vector<32x128xi32>
    %432 = arith.cmpi eq, %0, %431 : vector<32x128xi32>
    %433 = arith.extui %432 : vector<32x128xi1> to vector<32x128xi32>
    %434 = arith.sitofp %433 : vector<32x128xi32> to vector<32x128xf32>
    %435 = arith.subf %424, %434 : vector<32x128xf32>
    %436 = vector.broadcast %430 : vector<1x128xf32> to vector<32x128xf32>
    %437 = arith.mulf %435, %436 : vector<32x128xf32>
    %c0_i32_191 = arith.constant 0 : i32
    %c33_i32_192 = arith.constant 33 : i32
    %438 = arith.addi %c0_i32_191, %c33_i32_192 : i32
    %c1_i32_193 = arith.constant 1 : i32
    scf.for %arg5 = %c0_i32_191 to %438 step %c1_i32_193  : i32 {
      %528 = arith.index_cast %arg5 : i32 to index
      %c0_241 = arith.constant 0 : index
      %c0_242 = arith.constant 0 : index
      %529 = vector.load %arg4[%528, %c0_241, %c0_242] : memref<33x32x128xf32, #tpu.memory_space<vmem>>, vector<1x32x128xf32>
      %530 = vector.shape_cast %529 : vector<1x32x128xf32> to vector<32x128xf32>
      %531 = vector.extract_strided_slice %530 {offsets = [26, 0], sizes = [1, 128], strides = [1, 1]} : vector<32x128xf32> to vector<1x128xf32>
      %532 = vector.broadcast %531 : vector<1x128xf32> to vector<32x128xf32>
      %533 = arith.mulf %532, %437 : vector<32x128xf32>
      %534 = arith.subf %530, %533 : vector<32x128xf32>
      %535 = arith.index_cast %arg5 : i32 to index
      %c0_243 = arith.constant 0 : index
      %c0_244 = arith.constant 0 : index
      %536 = vector.load %arg4[%535, %c0_243, %c0_244] : memref<33x32x128xf32, #tpu.memory_space<vmem>>, vector<1x32x128xf32>
      %537 = vector.shape_cast %536 : vector<1x32x128xf32> to vector<32x128xf32>
      %538 = vector.shape_cast %534 : vector<32x128xf32> to vector<1x32x128xf32>
      tpu.vector_store %arg4[%535, %c0_243, %c0_244], %538 {strides = array<i32>} : memref<33x32x128xf32, #tpu.memory_space<vmem>>, vector<1x32x128xf32>,
    }
    %c33_i32_194 = arith.constant 33 : i32
    %c27 = arith.constant 27 : index
    %c0_195 = arith.constant 0 : index
    %c0_196 = arith.constant 0 : index
    %439 = vector.load %arg4[%c27, %c0_195, %c0_196] : memref<33x32x128xf32, #tpu.memory_space<vmem>>, vector<1x32x128xf32>
    %440 = vector.shape_cast %439 : vector<1x32x128xf32> to vector<32x128xf32>
    %441 = vector.extract_strided_slice %440 {offsets = [27, 0], sizes = [1, 128], strides = [1, 1]} : vector<32x128xf32> to vector<1x128xf32>
    %442 = tpu.reciprocal %441 {approx = true} : vector<1x128xf32> -> vector<1x128xf32>
    %443 = arith.mulf %441, %442 : vector<1x128xf32>
    %cst_197 = arith.constant 2.000000e+00 : f32
    %444 = vector.broadcast %cst_197 : f32 to vector<1x128xf32>
    %445 = arith.subf %444, %443 : vector<1x128xf32>
    %446 = arith.mulf %442, %445 : vector<1x128xf32>
    %c27_i32 = arith.constant 27 : i32
    %447 = vector.broadcast %c27_i32 : i32 to vector<32x128xi32>
    %448 = arith.cmpi eq, %0, %447 : vector<32x128xi32>
    %449 = arith.extui %448 : vector<32x128xi1> to vector<32x128xi32>
    %450 = arith.sitofp %449 : vector<32x128xi32> to vector<32x128xf32>
    %451 = arith.subf %440, %450 : vector<32x128xf32>
    %452 = vector.broadcast %446 : vector<1x128xf32> to vector<32x128xf32>
    %453 = arith.mulf %451, %452 : vector<32x128xf32>
    %c0_i32_198 = arith.constant 0 : i32
    %c33_i32_199 = arith.constant 33 : i32
    %454 = arith.addi %c0_i32_198, %c33_i32_199 : i32
    %c1_i32_200 = arith.constant 1 : i32
    scf.for %arg5 = %c0_i32_198 to %454 step %c1_i32_200  : i32 {
      %528 = arith.index_cast %arg5 : i32 to index
      %c0_241 = arith.constant 0 : index
      %c0_242 = arith.constant 0 : index
      %529 = vector.load %arg4[%528, %c0_241, %c0_242] : memref<33x32x128xf32, #tpu.memory_space<vmem>>, vector<1x32x128xf32>
      %530 = vector.shape_cast %529 : vector<1x32x128xf32> to vector<32x128xf32>
      %531 = vector.extract_strided_slice %530 {offsets = [27, 0], sizes = [1, 128], strides = [1, 1]} : vector<32x128xf32> to vector<1x128xf32>
      %532 = vector.broadcast %531 : vector<1x128xf32> to vector<32x128xf32>
      %533 = arith.mulf %532, %453 : vector<32x128xf32>
      %534 = arith.subf %530, %533 : vector<32x128xf32>
      %535 = arith.index_cast %arg5 : i32 to index
      %c0_243 = arith.constant 0 : index
      %c0_244 = arith.constant 0 : index
      %536 = vector.load %arg4[%535, %c0_243, %c0_244] : memref<33x32x128xf32, #tpu.memory_space<vmem>>, vector<1x32x128xf32>
      %537 = vector.shape_cast %536 : vector<1x32x128xf32> to vector<32x128xf32>
      %538 = vector.shape_cast %534 : vector<32x128xf32> to vector<1x32x128xf32>
      tpu.vector_store %arg4[%535, %c0_243, %c0_244], %538 {strides = array<i32>} : memref<33x32x128xf32, #tpu.memory_space<vmem>>, vector<1x32x128xf32>,
    }
    %c33_i32_201 = arith.constant 33 : i32
    %c28 = arith.constant 28 : index
    %c0_202 = arith.constant 0 : index
    %c0_203 = arith.constant 0 : index
    %455 = vector.load %arg4[%c28, %c0_202, %c0_203] : memref<33x32x128xf32, #tpu.memory_space<vmem>>, vector<1x32x128xf32>
    %456 = vector.shape_cast %455 : vector<1x32x128xf32> to vector<32x128xf32>
    %457 = vector.extract_strided_slice %456 {offsets = [28, 0], sizes = [1, 128], strides = [1, 1]} : vector<32x128xf32> to vector<1x128xf32>
    %458 = tpu.reciprocal %457 {approx = true} : vector<1x128xf32> -> vector<1x128xf32>
    %459 = arith.mulf %457, %458 : vector<1x128xf32>
    %cst_204 = arith.constant 2.000000e+00 : f32
    %460 = vector.broadcast %cst_204 : f32 to vector<1x128xf32>
    %461 = arith.subf %460, %459 : vector<1x128xf32>
    %462 = arith.mulf %458, %461 : vector<1x128xf32>
    %c28_i32 = arith.constant 28 : i32
    %463 = vector.broadcast %c28_i32 : i32 to vector<32x128xi32>
    %464 = arith.cmpi eq, %0, %463 : vector<32x128xi32>
    %465 = arith.extui %464 : vector<32x128xi1> to vector<32x128xi32>
    %466 = arith.sitofp %465 : vector<32x128xi32> to vector<32x128xf32>
    %467 = arith.subf %456, %466 : vector<32x128xf32>
    %468 = vector.broadcast %462 : vector<1x128xf32> to vector<32x128xf32>
    %469 = arith.mulf %467, %468 : vector<32x128xf32>
    %c0_i32_205 = arith.constant 0 : i32
    %c33_i32_206 = arith.constant 33 : i32
    %470 = arith.addi %c0_i32_205, %c33_i32_206 : i32
    %c1_i32_207 = arith.constant 1 : i32
    scf.for %arg5 = %c0_i32_205 to %470 step %c1_i32_207  : i32 {
      %528 = arith.index_cast %arg5 : i32 to index
      %c0_241 = arith.constant 0 : index
      %c0_242 = arith.constant 0 : index
      %529 = vector.load %arg4[%528, %c0_241, %c0_242] : memref<33x32x128xf32, #tpu.memory_space<vmem>>, vector<1x32x128xf32>
      %530 = vector.shape_cast %529 : vector<1x32x128xf32> to vector<32x128xf32>
      %531 = vector.extract_strided_slice %530 {offsets = [28, 0], sizes = [1, 128], strides = [1, 1]} : vector<32x128xf32> to vector<1x128xf32>
      %532 = vector.broadcast %531 : vector<1x128xf32> to vector<32x128xf32>
      %533 = arith.mulf %532, %469 : vector<32x128xf32>
      %534 = arith.subf %530, %533 : vector<32x128xf32>
      %535 = arith.index_cast %arg5 : i32 to index
      %c0_243 = arith.constant 0 : index
      %c0_244 = arith.constant 0 : index
      %536 = vector.load %arg4[%535, %c0_243, %c0_244] : memref<33x32x128xf32, #tpu.memory_space<vmem>>, vector<1x32x128xf32>
      %537 = vector.shape_cast %536 : vector<1x32x128xf32> to vector<32x128xf32>
      %538 = vector.shape_cast %534 : vector<32x128xf32> to vector<1x32x128xf32>
      tpu.vector_store %arg4[%535, %c0_243, %c0_244], %538 {strides = array<i32>} : memref<33x32x128xf32, #tpu.memory_space<vmem>>, vector<1x32x128xf32>,
    }
    %c33_i32_208 = arith.constant 33 : i32
    %c29 = arith.constant 29 : index
    %c0_209 = arith.constant 0 : index
    %c0_210 = arith.constant 0 : index
    %471 = vector.load %arg4[%c29, %c0_209, %c0_210] : memref<33x32x128xf32, #tpu.memory_space<vmem>>, vector<1x32x128xf32>
    %472 = vector.shape_cast %471 : vector<1x32x128xf32> to vector<32x128xf32>
    %473 = vector.extract_strided_slice %472 {offsets = [29, 0], sizes = [1, 128], strides = [1, 1]} : vector<32x128xf32> to vector<1x128xf32>
    %474 = tpu.reciprocal %473 {approx = true} : vector<1x128xf32> -> vector<1x128xf32>
    %475 = arith.mulf %473, %474 : vector<1x128xf32>
    %cst_211 = arith.constant 2.000000e+00 : f32
    %476 = vector.broadcast %cst_211 : f32 to vector<1x128xf32>
    %477 = arith.subf %476, %475 : vector<1x128xf32>
    %478 = arith.mulf %474, %477 : vector<1x128xf32>
    %c29_i32 = arith.constant 29 : i32
    %479 = vector.broadcast %c29_i32 : i32 to vector<32x128xi32>
    %480 = arith.cmpi eq, %0, %479 : vector<32x128xi32>
    %481 = arith.extui %480 : vector<32x128xi1> to vector<32x128xi32>
    %482 = arith.sitofp %481 : vector<32x128xi32> to vector<32x128xf32>
    %483 = arith.subf %472, %482 : vector<32x128xf32>
    %484 = vector.broadcast %478 : vector<1x128xf32> to vector<32x128xf32>
    %485 = arith.mulf %483, %484 : vector<32x128xf32>
    %c0_i32_212 = arith.constant 0 : i32
    %c33_i32_213 = arith.constant 33 : i32
    %486 = arith.addi %c0_i32_212, %c33_i32_213 : i32
    %c1_i32_214 = arith.constant 1 : i32
    scf.for %arg5 = %c0_i32_212 to %486 step %c1_i32_214  : i32 {
      %528 = arith.index_cast %arg5 : i32 to index
      %c0_241 = arith.constant 0 : index
      %c0_242 = arith.constant 0 : index
      %529 = vector.load %arg4[%528, %c0_241, %c0_242] : memref<33x32x128xf32, #tpu.memory_space<vmem>>, vector<1x32x128xf32>
      %530 = vector.shape_cast %529 : vector<1x32x128xf32> to vector<32x128xf32>
      %531 = vector.extract_strided_slice %530 {offsets = [29, 0], sizes = [1, 128], strides = [1, 1]} : vector<32x128xf32> to vector<1x128xf32>
      %532 = vector.broadcast %531 : vector<1x128xf32> to vector<32x128xf32>
      %533 = arith.mulf %532, %485 : vector<32x128xf32>
      %534 = arith.subf %530, %533 : vector<32x128xf32>
      %535 = arith.index_cast %arg5 : i32 to index
      %c0_243 = arith.constant 0 : index
      %c0_244 = arith.constant 0 : index
      %536 = vector.load %arg4[%535, %c0_243, %c0_244] : memref<33x32x128xf32, #tpu.memory_space<vmem>>, vector<1x32x128xf32>
      %537 = vector.shape_cast %536 : vector<1x32x128xf32> to vector<32x128xf32>
      %538 = vector.shape_cast %534 : vector<32x128xf32> to vector<1x32x128xf32>
      tpu.vector_store %arg4[%535, %c0_243, %c0_244], %538 {strides = array<i32>} : memref<33x32x128xf32, #tpu.memory_space<vmem>>, vector<1x32x128xf32>,
    }
    %c33_i32_215 = arith.constant 33 : i32
    %c30 = arith.constant 30 : index
    %c0_216 = arith.constant 0 : index
    %c0_217 = arith.constant 0 : index
    %487 = vector.load %arg4[%c30, %c0_216, %c0_217] : memref<33x32x128xf32, #tpu.memory_space<vmem>>, vector<1x32x128xf32>
    %488 = vector.shape_cast %487 : vector<1x32x128xf32> to vector<32x128xf32>
    %489 = vector.extract_strided_slice %488 {offsets = [30, 0], sizes = [1, 128], strides = [1, 1]} : vector<32x128xf32> to vector<1x128xf32>
    %490 = tpu.reciprocal %489 {approx = true} : vector<1x128xf32> -> vector<1x128xf32>
    %491 = arith.mulf %489, %490 : vector<1x128xf32>
    %cst_218 = arith.constant 2.000000e+00 : f32
    %492 = vector.broadcast %cst_218 : f32 to vector<1x128xf32>
    %493 = arith.subf %492, %491 : vector<1x128xf32>
    %494 = arith.mulf %490, %493 : vector<1x128xf32>
    %c30_i32 = arith.constant 30 : i32
    %495 = vector.broadcast %c30_i32 : i32 to vector<32x128xi32>
    %496 = arith.cmpi eq, %0, %495 : vector<32x128xi32>
    %497 = arith.extui %496 : vector<32x128xi1> to vector<32x128xi32>
    %498 = arith.sitofp %497 : vector<32x128xi32> to vector<32x128xf32>
    %499 = arith.subf %488, %498 : vector<32x128xf32>
    %500 = vector.broadcast %494 : vector<1x128xf32> to vector<32x128xf32>
    %501 = arith.mulf %499, %500 : vector<32x128xf32>
    %c0_i32_219 = arith.constant 0 : i32
    %c33_i32_220 = arith.constant 33 : i32
    %502 = arith.addi %c0_i32_219, %c33_i32_220 : i32
    %c1_i32_221 = arith.constant 1 : i32
    scf.for %arg5 = %c0_i32_219 to %502 step %c1_i32_221  : i32 {
      %528 = arith.index_cast %arg5 : i32 to index
      %c0_241 = arith.constant 0 : index
      %c0_242 = arith.constant 0 : index
      %529 = vector.load %arg4[%528, %c0_241, %c0_242] : memref<33x32x128xf32, #tpu.memory_space<vmem>>, vector<1x32x128xf32>
      %530 = vector.shape_cast %529 : vector<1x32x128xf32> to vector<32x128xf32>
      %531 = vector.extract_strided_slice %530 {offsets = [30, 0], sizes = [1, 128], strides = [1, 1]} : vector<32x128xf32> to vector<1x128xf32>
      %532 = vector.broadcast %531 : vector<1x128xf32> to vector<32x128xf32>
      %533 = arith.mulf %532, %501 : vector<32x128xf32>
      %534 = arith.subf %530, %533 : vector<32x128xf32>
      %535 = arith.index_cast %arg5 : i32 to index
      %c0_243 = arith.constant 0 : index
      %c0_244 = arith.constant 0 : index
      %536 = vector.load %arg4[%535, %c0_243, %c0_244] : memref<33x32x128xf32, #tpu.memory_space<vmem>>, vector<1x32x128xf32>
      %537 = vector.shape_cast %536 : vector<1x32x128xf32> to vector<32x128xf32>
      %538 = vector.shape_cast %534 : vector<32x128xf32> to vector<1x32x128xf32>
      tpu.vector_store %arg4[%535, %c0_243, %c0_244], %538 {strides = array<i32>} : memref<33x32x128xf32, #tpu.memory_space<vmem>>, vector<1x32x128xf32>,
    }
    %c33_i32_222 = arith.constant 33 : i32
    %c31 = arith.constant 31 : index
    %c0_223 = arith.constant 0 : index
    %c0_224 = arith.constant 0 : index
    %503 = vector.load %arg4[%c31, %c0_223, %c0_224] : memref<33x32x128xf32, #tpu.memory_space<vmem>>, vector<1x32x128xf32>
    %504 = vector.shape_cast %503 : vector<1x32x128xf32> to vector<32x128xf32>
    %505 = vector.extract_strided_slice %504 {offsets = [31, 0], sizes = [1, 128], strides = [1, 1]} : vector<32x128xf32> to vector<1x128xf32>
    %506 = tpu.reciprocal %505 {approx = true} : vector<1x128xf32> -> vector<1x128xf32>
    %507 = arith.mulf %505, %506 : vector<1x128xf32>
    %cst_225 = arith.constant 2.000000e+00 : f32
    %508 = vector.broadcast %cst_225 : f32 to vector<1x128xf32>
    %509 = arith.subf %508, %507 : vector<1x128xf32>
    %510 = arith.mulf %506, %509 : vector<1x128xf32>
    %c31_i32 = arith.constant 31 : i32
    %511 = vector.broadcast %c31_i32 : i32 to vector<32x128xi32>
    %512 = arith.cmpi eq, %0, %511 : vector<32x128xi32>
    %513 = arith.extui %512 : vector<32x128xi1> to vector<32x128xi32>
    %514 = arith.sitofp %513 : vector<32x128xi32> to vector<32x128xf32>
    %515 = arith.subf %504, %514 : vector<32x128xf32>
    %516 = vector.broadcast %510 : vector<1x128xf32> to vector<32x128xf32>
    %517 = arith.mulf %515, %516 : vector<32x128xf32>
    %c0_i32_226 = arith.constant 0 : i32
    %c33_i32_227 = arith.constant 33 : i32
    %518 = arith.addi %c0_i32_226, %c33_i32_227 : i32
    %c1_i32_228 = arith.constant 1 : i32
    scf.for %arg5 = %c0_i32_226 to %518 step %c1_i32_228  : i32 {
      %528 = arith.index_cast %arg5 : i32 to index
      %c0_241 = arith.constant 0 : index
      %c0_242 = arith.constant 0 : index
      %529 = vector.load %arg4[%528, %c0_241, %c0_242] : memref<33x32x128xf32, #tpu.memory_space<vmem>>, vector<1x32x128xf32>
      %530 = vector.shape_cast %529 : vector<1x32x128xf32> to vector<32x128xf32>
      %531 = vector.extract_strided_slice %530 {offsets = [31, 0], sizes = [1, 128], strides = [1, 1]} : vector<32x128xf32> to vector<1x128xf32>
      %532 = vector.broadcast %531 : vector<1x128xf32> to vector<32x128xf32>
      %533 = arith.mulf %532, %517 : vector<32x128xf32>
      %534 = arith.subf %530, %533 : vector<32x128xf32>
      %535 = arith.index_cast %arg5 : i32 to index
      %c0_243 = arith.constant 0 : index
      %c0_244 = arith.constant 0 : index
      %536 = vector.load %arg4[%535, %c0_243, %c0_244] : memref<33x32x128xf32, #tpu.memory_space<vmem>>, vector<1x32x128xf32>
      %537 = vector.shape_cast %536 : vector<1x32x128xf32> to vector<32x128xf32>
      %538 = vector.shape_cast %534 : vector<32x128xf32> to vector<1x32x128xf32>
      tpu.vector_store %arg4[%535, %c0_243, %c0_244], %538 {strides = array<i32>} : memref<33x32x128xf32, #tpu.memory_space<vmem>>, vector<1x32x128xf32>,
    }
    %c33_i32_229 = arith.constant 33 : i32
    %c0_230 = arith.constant 0 : index
    %c0_231 = arith.constant 0 : index
    %c0_232 = arith.constant 0 : index
    %519 = vector.load %arg2[%c0_230, %c0_231, %c0_232] : memref<2x32x128xf32, #tpu.memory_space<vmem>>, vector<1x32x128xf32>
    %520 = vector.shape_cast %519 : vector<1x32x128xf32> to vector<32x128xf32>
    %c1_233 = arith.constant 1 : index
    %c0_234 = arith.constant 0 : index
    %c0_235 = arith.constant 0 : index
    %521 = vector.load %arg2[%c1_233, %c0_234, %c0_235] : memref<2x32x128xf32, #tpu.memory_space<vmem>>, vector<1x32x128xf32>
    %522 = vector.shape_cast %521 : vector<1x32x128xf32> to vector<32x128xf32>
    %523 = arith.addf %520, %522 : vector<32x128xf32>
    %c32_236 = arith.constant 32 : index
    %c0_237 = arith.constant 0 : index
    %c0_238 = arith.constant 0 : index
    %524 = vector.load %arg4[%c32_236, %c0_237, %c0_238] : memref<33x32x128xf32, #tpu.memory_space<vmem>>, vector<1x32x128xf32>
    %525 = vector.shape_cast %524 : vector<1x32x128xf32> to vector<32x128xf32>
    %526 = arith.subf %523, %525 : vector<32x128xf32>
    %c0_239 = arith.constant 0 : index
    %c0_240 = arith.constant 0 : index
    %527 = vector.load %arg3[%c0_239, %c0_240] : memref<32x128xf32, #tpu.memory_space<vmem>>, vector<32x128xf32>
    tpu.vector_store %arg3[%c0_239, %c0_240], %526 {strides = array<i32>} : memref<32x128xf32, #tpu.memory_space<vmem>>, vector<32x128xf32>,
    return
  }
  func.func @transform_0(%arg0: i32) -> (i32, i32, i32) {
    %c0_i32 = arith.constant 0 : i32
    %c0_i32_0 = arith.constant 0 : i32
    %c0_i32_1 = arith.constant 0 : i32
    return %c0_i32, %c0_i32_0, %arg0 : i32, i32, i32
  }
  func.func @transform_1(%arg0: i32) -> (i32, i32, i32) {
    %c0_i32 = arith.constant 0 : i32
    %c0_i32_0 = arith.constant 0 : i32
    %c0_i32_1 = arith.constant 0 : i32
    return %c0_i32, %c0_i32_0, %arg0 : i32, i32, i32
  }
  func.func @transform_2(%arg0: i32) -> (i32, i32) {
    %c0_i32 = arith.constant 0 : i32
    %c0_i32_0 = arith.constant 0 : i32
    return %c0_i32, %arg0 : i32, i32
  }
}

</mosaic_0001>

<bundles_post_ra>
// kernel: tpu_custom_call.1
= control target key start
LH: loop header
LB: loop body
LE: loop exit
PB: predicated region body
PF: predicated region fallthrough
CT: control target
= control target key end

     0   :  { %7 = vsyncpa [#allocation4], 0  ;;  %s3887_s0 = inlined_call_operand.hbm [shape: f32[32,32,256], index: 0, kind: input, shape index: {}]   ;;  %s3888_s1 = inlined_call_operand.hbm [shape: f32[2,32,256], index: 1, kind: input, shape index: {}]   ;;  %s3889_s2 = inlined_call_operand.hbm [shape: f32[32,256], index: 2, kind: output, shape index: {}]  }
   0x1   :  { %9 = vsyncpa [#allocation4 + $0x1], 0 }
   0x2   :  { %10 = vsyncpa [#allocation7], 0 }
   0x3   :  { %12 = vsyncpa [#allocation7 + $0x1], 0 }
   0x4   :  { %13 = vsyncpa [#allocation5], 0 }
   0x5   :  { %15 = vsyncpa [#allocation5 + $0x1], 0  ;;  %s3467_s9 = smov 0   ;;  %s3469_s10 = smov 0  }
   0x6   :  { %s3471_s11 = smov 0   ;;  %s3473_s12 = smov 0  }
   0x7 LB: > { %s3488_s13 = sadd.s32 4294967295, %s3307_s12   ;;  %s2566_s14 = sadd.s32 4294967294, %s3307_s12   ;;  %s3307_s12 = sphi %s3473_s12, %s3906_s12   ;;  %s3303_s11 = sphi %s3471_s11, %s3905_s11   ;;  %s3299_s10 = sphi %s3469_s10, %s3904_s10   ;;  %s3295_s9 = sphi %s3467_s9, %s3903_s9  }
   0x8   : > { %s3492_s15 = sadd.s32 1, %s3307_s12   ;;  %s28_s16 = sadd.s32 1, %s3303_s11 }
   0x9   : > { %s25_s17 = ssub.s32 %s3307_s12, %s3492_s15  ;;  %p35_p0 = scmp.ne.s32.totalorder %s3303_s11, %s3299_s10 }
   0xa   : > { %p26_p1 = scmp.eq.s32.totalorder %s25_s17, 0  ;;  %p36_p2 = scmp.eq.s32.totalorder %s3307_s12, 0 }
   0xb   : > { %p41_p3 = scmp.ne.s32.totalorder %s3299_s10, %s3295_s9  ;;  %p42_p4 = scmp.eq.s32.totalorder %s3488_s13, 0 }
   0xc   : > { %s3504_s18 = scalar_select %p26_p1, %s3303_s11, %s28_s16  }
   0xd   : > { %p3506_p5 = por %p36_p2, %p35_p0  ;;  %p3510_p6 = por %p42_p4, %p41_p3 }
   0xe   : > { %p91_p7 = scmp.eq.s32.totalorder %s3488_s13, 1  ;;  %p97_p8 = scmp.eq.s32.totalorder %s2566_s14, 1 }
   0xf   : > { %s3893_s20 = scalar_select %p3510_p6, 1, 0 }
  0x10   : > { %p2675_p10 = scmp.lt.s32.totalorder %s3307_s12, 2  ;;  %p3517_p11 = por %p91_p7, %p35_p0 }
  0x11   : > { %p3521_p12 = por %p97_p8, %p41_p3  ;;  %s3526_s23 = sand.u32 1, %s3303_s11  }
  0x12   : > { %s3894_s21 = scalar_select %p3517_p11, 1, 0 }
  0x13   : > { %s3895_s22 = scalar_select %p3521_p12, 1, 0 }
  0x14   : > { %s2570_s24 = sshll.u32 %s3307_s12, 7  ;;  %s2569_s25 = sshll.u32 %s3526_s23, 10 }
  0x15   : > { %s3535_s28 = scalar_lea.hbm %s3887_s0, %s2570_s24  ;;  %s121_s29 = scalar_lea.vmem [#allocation3], %s2569_s25 }
  0x16   : > { %s127_s30 = sshll.u32 %s121_s29, 4  ;;  %p3539_p13 = pnand %p2675_p10, %p3506_p5  ;;  %s3543_s30 = int_to_ptr.vmem [resolvable:$true] %s127_s30 }
  0x17   : > { %s118_s4 = scalar_lea.sflag [#allocation4], %s3526_s23  ;;  %s3045_s5 = scalar_lea.hbm %s3535_s28, 16384 }
  0x18   : > { %p3046_p1 = scmp.ne.s32.totalorder %s3535_s28, %s3045_s5  ;;  %p3047_p2 = pneg %p3539_p13 }
  0x19   : > { %s3050_s8 = scalar_lea.hbm %s3887_s0, 32768  ;;  %p3051_p5 = scmp.lt.u32.totalorder %s3535_s28, %s3887_s0 }
  0x1a   : > { %p3048_p3 = pnand %p3047_p2, %p3046_p1  ;;  %p3052_p7 = scmp.lt.u32.totalorder %s3050_s8, %s3045_s5 }
  0x1b   : > { %p3054_p10 = scmp.lt.u32.totalorder %s3045_s5, %s3535_s28 }
  0x1c   : > { %p3049_p4 = pneg %p3048_p3  ;;  %p3053_p8 = por %p3052_p7, %p3051_p5 }
  0x1e   : > { %p3055_p9 = por %p3054_p10, %p3053_p8 }
  0x20   : > { %p3056_p0 = pnand %p3055_p9, %p3049_p4 }
  0x22   : > { %3059 = shalt.err (!%p3056_p0)
}
  0x23   : > { %s3060_s17 = scalar_lea.vmem %s3543_s30, 16384  ;;  %s3441_s19 = smov [#allocation3]  }
  0x24   : > { %p3061_p1 = scmp.ne.s32.totalorder %s3543_s30, %s3060_s17  ;;  %s3065_s25 = sshll.u32 %s3441_s19, 4  ;;  %s3066_s25 = int_to_ptr.vmem [resolvable:$false] %s3065_s25 }
  0x25   : > { %s3067_s26 = scalar_lea.vmem %s3066_s25, 32768  ;;  %p3068_p11 = scmp.lt.s32.totalorder %s3543_s30, %s3066_s25 }
  0x26   : > { %p3063_p3 = pnand %p3061_p1, %p3047_p2  ;;  %p3069_p5 = scmp.lt.s32.totalorder %s3067_s26, %s3060_s17 }
  0x28   : > { %p3064_p12 = pneg %p3063_p3  ;;  %p3070_p7 = por %p3069_p5, %p3068_p11 }
  0x2a   : > { %p3071_p8 = pnand %p3070_p7, %p3064_p12 }
  0x2c   : > { %3074 = shalt.err (!%p3071_p8)
}
  0x2d   : > { %s3442_s27 = smov 256   ;;  %s3443_s29 = smov 128  }
  0x2e   : > { %s3444_s5 = smov 8   ;;  %p155_p9 = scmp.lt.s32.totalorder %s3307_s12, 3 }
  0x2f   : > { %2667 = dma.hbm_to_vmem [thread:$0]  (!%p3539_p13), %s3535_s28, 16384, %s3543_s30, %s118_s4, %s3442_s27, %s3443_s29, %s3444_s5  }
  0x30   : > { %s2571_s6 = sshll.u32 %s3526_s23, 6  ;;  %s3584_s14 = scalar_lea.hbm %s3888_s1, %s2570_s24 }
  0x31   : > { %p3897_p11 = scmp.ge.s32.totalorder %s3307_s12, 1  ;;  %s141_s17 = scalar_lea.vmem [#allocation6], %s2571_s6 }
  0x32   : > { %s147_s19 = sshll.u32 %s141_s17, 4  ;;  %s138_s28 = scalar_lea.sflag [#allocation7], %s3526_s23  ;;  %s3592_s19 = int_to_ptr.vmem [resolvable:$true] %s147_s19 }
  0x33   : > { %p3588_p12 = pnand %p3897_p11, %p155_p9  ;;  %s3075_s30 = scalar_lea.hbm %s3584_s14, 1024 }
  0x34   : > { %p3076_p0 = scmp.ne.s32.totalorder %s3584_s14, %s3075_s30  ;;  %s3080_s25 = scalar_lea.hbm %s3888_s1, 2048 }
  0x35   : > { %p3081_p1 = scmp.lt.u32.totalorder %s3584_s14, %s3888_s1  ;;  %p3082_p3 = scmp.lt.u32.totalorder %s3080_s25, %s3075_s30 }
  0x36   : > { %p3078_p4 = pnand %p3076_p0, %p3047_p2  ;;  %p3084_p7 = scmp.lt.u32.totalorder %s3075_s30, %s3584_s14 }
  0x37   : > { %p3083_p5 = por %p3082_p3, %p3081_p1 }
  0x38   : > { %p3079_p10 = pneg %p3078_p4 }
  0x39   : > { %p3085_p8 = por %p3084_p7, %p3083_p5 }
  0x3b   : > { %p3086_p9 = pnand %p3085_p8, %p3079_p10 }
  0x3d   : > { %3089 = shalt.err (!%p3086_p9)
}
  0x3e   : > { %s3090_s6 = scalar_lea.vmem %s3592_s19, 1024  ;;  %s3445_s8 = smov [#allocation6]  }
  0x3f   : > { %p3091_p11 = scmp.ne.s32.totalorder %s3592_s19, %s3090_s6  ;;  %s3095_s17 = sshll.u32 %s3445_s8, 4  ;;  %s3096_s17 = int_to_ptr.vmem [resolvable:$false] %s3095_s17 }
  0x40   : > { %s3097_s24 = scalar_lea.vmem %s3096_s17, 2048  ;;  %p3098_p6 = scmp.lt.s32.totalorder %s3592_s19, %s3096_s17 }
  0x41   : > { %p3093_p0 = pnand %p3091_p11, %p3047_p2  ;;  %p3099_p1 = scmp.lt.s32.totalorder %s3097_s24, %s3090_s6 }
  0x43   : > { %p3094_p4 = pneg %p3093_p0  ;;  %p3100_p3 = por %p3099_p1, %p3098_p6 }
  0x45   : > { %p3101_p5 = pnand %p3100_p3, %p3094_p4 }
  0x47   : > { %3104 = shalt.err (!%p3101_p5)
}
  0x48   : > { %2670 = dma.hbm_to_vmem [thread:$0]  (!%p3539_p13), %s3584_s14, 1024, %s3592_s19, %s138_s28, %s3442_s27, %s3443_s29, %s3444_s5  }
  0x49   : > { %159 = sbr.rel (%p3588_p12) target bundleno = 1338 (0x53a), region = 28  ;;  %s3626_s30 = sand.u32 (!%p3588_p12), 1, %s3299_s10  }
  0x4a   : > { %s2574_s4 = sshll.u32 (!%p3588_p12), %s3626_s30, 10  ;;  %s162_s25 = scalar_lea.sflag (!%p3588_p12), [#allocation4], %s3626_s30 }
  0x4b   : > { %s3630_s3 = scalar_lea.vmem (!%p3588_p12), [#allocation3], %s2574_s4  ;;  %p3899_p6 = scmp.ne.s32.totalorder (!%p3588_p12), %s3893_s20, 0 }
  0x50   : > { %3282 = dma.done.wait (%p3899_p6), %s162_s25, 16384  }
  0x51   : > { %3284 = vsyncadd (%p3899_p6), %s162_s25, 4294950912  ;;  %s2575_s23 = sshll.u32 %s3626_s30, 6  ;;  %s171_s27 = scalar_lea.sflag [#allocation7], %s3626_s30 }
  0x52   : > { %s3638_s29 = scalar_lea.vmem [#allocation6], %s2575_s23 }
  0x53   : > { %3286 = dma.done.wait (%p3899_p6), %s171_s27, 1024  }
  0x54   : > { %3288 = vsyncadd (%p3899_p6), %s171_s27, 4294966272  ;;  %s2576_s5 = sshll.u32 %s3626_s30, 5  ;;  %v200_v0 = vlaneseq  ;;  %s3658_s16 = smov 0  }
  0x55   : > { %s3656_s14 = scalar_lea.vmem [#allocation8], %s2576_s5 }
  0x56   : > { %v3645_v1 = vshrl.u32 %v200_v0, 7 }
  0x58   : > { %v3648_v2 = vadd.s32 8, %v3645_v1  ;;  %v3651_v3 = vadd.s32 16, %v3645_v1  ;;  %v3654_v4 = vadd.s32 24, %v3645_v1 }
  0x59 LB: >> { %v211_v5 = vstv %s3311_s16  ;;  %s2581_s20 = sshll.u32 %s3311_s16, 5  ;;  %v3446_v6 = vmov 0.0   ;;  %s210_s16 = sadd.s32 1, %s3311_s16   ;;  %s3311_s16 = sphi %s3658_s16, %s210_s16  }
  0x5a   : >> { %vm212_vm0 = vcmp.eq.s32.totalorder %v3645_v1, %v211_v5  ;;  %s225_s19 = scalar_lea.vmem %s3630_s3, %s2581_s20 [#allocation3]  ;;  %vm213_vm1 = vcmp.eq.s32.totalorder %v3648_v2, %v211_v5  ;;  %vm214_vm2 = vcmp.eq.s32.totalorder %v3651_v3, %v211_v5  ;;  %vm215_vm3 = vcmp.eq.s32.totalorder %v3654_v4, %v211_v5  ;;  %s234_s28 = scalar_lea.vmem [#allocation2], %s2581_s20 }
  0x5b   : >> { %v2577_v7 = vsel %vm212_vm0, 1.0, %v3446_v6  ;;  %v226_v8 = vld [vmem:[%s225_s19] sm:$0xff]  ;;  %v2578_v9 = vsel %vm213_vm1, 1.0, %v3446_v6  ;;  %v227_v10 = vld [vmem:[%s225_s19 + $0x8] sm:$0xff]  ;;  %v2579_v11 = vsel %vm214_vm2, 1.0, %v3446_v6  ;;  %v228_v12 = vld [vmem:[%s225_s19 + $0x10] sm:$0xff] }
  0x5c   : >> { %v230_v13 = vadd.f32 %v2577_v7, %v226_v8  ;;  %v231_v14 = vadd.f32 %v2578_v9, %v227_v10  ;;  %v232_v15 = vadd.f32 %v2579_v11, %v228_v12  ;;  %v2580_v16 = vsel %vm215_vm3, 1.0, %v3446_v6  ;;  %v229_v17 = vld [vmem:[%s225_s19 + $0x18] sm:$0xff]  ;;  %p207_p13 = scmp.ge.s32.totalorder %s210_s16, 32  }
  0x5d   : >> { %v233_v18 = vadd.f32 %v2580_v16, %v229_v17  ;;  %v2582_v19 = vld [vmem:[%s3638_s29 + $0x20] sm:$0xff] (%p207_p13)  ;;  %v2583_v20 = vld [vmem:[%s3638_s29 + $0x28] sm:$0xff] (%p207_p13)  ;;  %v2584_v21 = vld [vmem:[%s3638_s29 + $0x30] sm:$0xff] (%p207_p13)  ;;  %vm257_vm4 = vcmp.eq.s32.totalorder (%p207_p13), %v3645_v1, 0  ;;  %v3447_v26 = vmov (%p207_p13), 0.0   ;;  %v3675_v29 = vsub.s32 (%p207_p13), 0, %v3645_v1 }
  0x5e   : >> { %235 = vst [vmem:[%s234_s28] sm:$0xff] %v230_v13  ;;  %236 = vst [vmem:[%s234_s28 + $0x8] sm:$0xff] %v231_v14  ;;  %209 = sbr.rel (!%p207_p13) target bundleno = 89 (0x59), region = 384  ;;  %v2585_v22 = vld [vmem:[%s3638_s29 + $0x38] sm:$0xff] (%p207_p13)  ;;  %v2586_v27 = vsel (%p207_p13), %vm257_vm4, 1.0, %v3447_v26  ;;  %s3313_s26 = smov (%p207_p13), 0  }
  0x5f   : >> { %237 = vst [vmem:[%s234_s28 + $0x10] sm:$0xff] %v232_v15  ;;  %238 = vst [vmem:[%s234_s28 + $0x18] sm:$0xff] %v233_v18 }
  0x60   : > { %245 = vst [vmem:[#allocation2 + $0x400] sm:$0xff] (%p207_p13), %v2582_v19  ;;  %246 = vst [vmem:[#allocation2 + $0x408] sm:$0xff] (%p207_p13), %v2583_v20 }
  0x61   : > { %247 = vst [vmem:[#allocation2 + $0x410] sm:$0xff] (%p207_p13), %v2584_v21  ;;  %248 = vst [vmem:[#allocation2 + $0x418] sm:$0xff] (%p207_p13), %v2585_v22 }
  0x66   : > { %v249_v23 = vld [vmem:[#allocation2] sm:$0xff]  ;;  %v250_v32 = vld [vmem:[#allocation2 + $0x8] sm:$0xff]  ;;  %v251_v33 = vld [vmem:[#allocation2 + $0x10] sm:$0xff] }
  0x67   : > { %2981 = vrcp.f32 %v249_v23  ;;  %v269_v31 = vsub.f32 %v249_v23, %v2586_v27  ;;  %v252_v34 = vld [vmem:[#allocation2 + $0x18] sm:$0xff] }
  0x71   : > { %v2982_v24 = vpop.eup %2981 }
  0x72   : > { %v254_v25 = vmul.f32 %v2982_v24, %v249_v23 }
  0x74   : > { %v255_v28 = vsub.f32 2.0, %v254_v25 }
  0x76   : > { %v256_v30 = vmul.f32 %v2982_v24, %v255_v28 }
  0x78   : > { %v276_v35 = vrot.slane %v256_v30, %v3675_v29 }
  0x7a   : > { %v277_v36 = vmul.f32 %v276_v35, %v269_v31  ;;  %v278_v37 = vmul.f32 %v276_v35, %v250_v32  ;;  %v279_v38 = vmul.f32 %v276_v35, %v251_v33  ;;  %v280_v39 = vmul.f32 %v276_v35, %v252_v34 }
  0x7b LB: >> { %s2587_s7 = sshll.u32 %s3315_s26, 5  ;;  %s286_s26 = sadd.s32 1, %s3315_s26   ;;  %s3315_s26 = sphi %s3313_s26, %s286_s26  }
  0x7c   : >> { %s288_s6 = scalar_lea.vmem [#allocation2], %s2587_s7  ;;  %p283_p2 = scmp.ge.s32.totalorder %s286_s26, 33  }
  0x7d   : >> { %v289_v40 = vld [vmem:[%s288_s6] sm:$0xff]  ;;  %v290_v42 = vld [vmem:[%s288_s6 + $0x8] sm:$0xff]  ;;  %v291_v43 = vld [vmem:[%s288_s6 + $0x10] sm:$0xff]  ;;  %vm318_vm5 = vcmp.eq.s32.totalorder (%p283_p2), %v3645_v1, 1  ;;  %v3682_v58 = vsub.s32 (%p283_p2), 1, %v3645_v1  ;;  %s3317_s8 = smov (%p283_p2), 0  }
  0x7e   : >> { %v296_v41 = vrot.slane %v289_v40, %v3675_v29  ;;  %v292_v44 = vld [vmem:[%s288_s6 + $0x18] sm:$0xff]  ;;  %v2588_v56 = vsel (%p283_p2), %vm318_vm5, 1.0, %v3447_v26 }
  0x7f   : > { %285 = sbr.rel (!%p283_p2) target bundleno = 123 (0x7b), region = 395 }
  0x80   : >> { %v297_v45 = vmul.f32 %v296_v41, %v277_v36  ;;  %v298_v46 = vmul.f32 %v296_v41, %v278_v37  ;;  %v299_v47 = vmul.f32 %v296_v41, %v279_v38  ;;  %v300_v48 = vmul.f32 %v296_v41, %v280_v39 }
  0x82   : >> { %v301_v49 = vsub.f32 %v289_v40, %v297_v45  ;;  %v302_v50 = vsub.f32 %v290_v42, %v298_v46  ;;  %v303_v51 = vsub.f32 %v291_v43, %v299_v47  ;;  %v304_v52 = vsub.f32 %v292_v44, %v300_v48 }
  0x84   : >> { %305 = vst [vmem:[%s288_s6] sm:$0xff] %v301_v49  ;;  %306 = vst [vmem:[%s288_s6 + $0x8] sm:$0xff] %v302_v50 }
  0x85   : >> { %307 = vst [vmem:[%s288_s6 + $0x10] sm:$0xff] %v303_v51  ;;  %308 = vst [vmem:[%s288_s6 + $0x18] sm:$0xff] %v304_v52 }
  0x8c   : > { %v310_v53 = vld [vmem:[#allocation2 + $0x20] sm:$0xff]  ;;  %v311_v61 = vld [vmem:[#allocation2 + $0x28] sm:$0xff]  ;;  %v312_v62 = vld [vmem:[#allocation2 + $0x30] sm:$0xff] }
  0x8d   : > { %2983 = vrcp.f32 %v310_v53  ;;  %v330_v60 = vsub.f32 %v310_v53, %v2588_v56  ;;  %v313_v63 = vld [vmem:[#allocation2 + $0x38] sm:$0xff] }
  0x97   : > { %v2984_v54 = vpop.eup %2983 }
  0x98   : > { %v315_v55 = vmul.f32 %v2984_v54, %v310_v53 }
  0x9a   : > { %v316_v57 = vsub.f32 2.0, %v315_v55 }
  0x9c   : > { %v317_v59 = vmul.f32 %v2984_v54, %v316_v57 }
  0x9e   : > { %v337_v0 = vrot.slane %v317_v59, %v3682_v58 }
  0xa0   : > { %v338_v5 = vmul.f32 %v337_v0, %v330_v60  ;;  %v339_v6 = vmul.f32 %v337_v0, %v311_v61  ;;  %v340_v7 = vmul.f32 %v337_v0, %v312_v62  ;;  %v341_v8 = vmul.f32 %v337_v0, %v313_v63 }
  0xa1 LB: >> { %s2589_s17 = sshll.u32 %s3319_s8, 5  ;;  %s347_s8 = sadd.s32 1, %s3319_s8   ;;  %s3319_s8 = sphi %s3317_s8, %s347_s8  }
  0xa2   : >> { %s349_s24 = scalar_lea.vmem [#allocation2], %s2589_s17  ;;  %p344_p12 = scmp.ge.s32.totalorder %s347_s8, 33  }
  0xa3   : >> { %v350_v9 = vld [vmem:[%s349_s24] sm:$0xff]  ;;  %v351_v11 = vld [vmem:[%s349_s24 + $0x8] sm:$0xff]  ;;  %v352_v12 = vld [vmem:[%s349_s24 + $0x10] sm:$0xff]  ;;  %vm379_vm6 = vcmp.eq.s32.totalorder (%p344_p12), %v3645_v1, 2  ;;  %v3689_v28 = vsub.s32 (%p344_p12), 2, %v3645_v1  ;;  %s3321_s4 = smov (%p344_p12), 0  }
  0xa4   : >> { %v357_v10 = vrot.slane %v350_v9, %v3682_v58  ;;  %v353_v13 = vld [vmem:[%s349_s24 + $0x18] sm:$0xff]  ;;  %v2590_v25 = vsel (%p344_p12), %vm379_vm6, 1.0, %v3447_v26 }
  0xa5   : > { %346 = sbr.rel (!%p344_p12) target bundleno = 161 (0xa1), region = 406 }
  0xa6   : >> { %v358_v14 = vmul.f32 %v357_v10, %v338_v5  ;;  %v359_v15 = vmul.f32 %v357_v10, %v339_v6  ;;  %v360_v16 = vmul.f32 %v357_v10, %v340_v7  ;;  %v361_v17 = vmul.f32 %v357_v10, %v341_v8 }
  0xa8   : >> { %v362_v18 = vsub.f32 %v350_v9, %v358_v14  ;;  %v363_v19 = vsub.f32 %v351_v11, %v359_v15  ;;  %v364_v20 = vsub.f32 %v352_v12, %v360_v16  ;;  %v365_v21 = vsub.f32 %v353_v13, %v361_v17 }
  0xaa   : >> { %366 = vst [vmem:[%s349_s24] sm:$0xff] %v362_v18  ;;  %367 = vst [vmem:[%s349_s24 + $0x8] sm:$0xff] %v363_v19 }
  0xab   : >> { %368 = vst [vmem:[%s349_s24 + $0x10] sm:$0xff] %v364_v20  ;;  %369 = vst [vmem:[%s349_s24 + $0x18] sm:$0xff] %v365_v21 }
  0xb2   : > { %v371_v22 = vld [vmem:[#allocation2 + $0x40] sm:$0xff]  ;;  %v372_v32 = vld [vmem:[#allocation2 + $0x48] sm:$0xff]  ;;  %v373_v33 = vld [vmem:[#allocation2 + $0x50] sm:$0xff] }
  0xb3   : > { %2985 = vrcp.f32 %v371_v22  ;;  %v391_v31 = vsub.f32 %v371_v22, %v2590_v25  ;;  %v374_v34 = vld [vmem:[#allocation2 + $0x58] sm:$0xff] }
  0xbd   : > { %v2986_v23 = vpop.eup %2985 }
  0xbe   : > { %v376_v24 = vmul.f32 %v2986_v23, %v371_v22 }
  0xc0   : > { %v377_v27 = vsub.f32 2.0, %v376_v24 }
  0xc2   : > { %v378_v30 = vmul.f32 %v2986_v23, %v377_v27 }
  0xc4   : > { %v398_v35 = vrot.slane %v378_v30, %v3689_v28 }
  0xc6   : > { %v399_v36 = vmul.f32 %v398_v35, %v391_v31  ;;  %v400_v37 = vmul.f32 %v398_v35, %v372_v32  ;;  %v401_v38 = vmul.f32 %v398_v35, %v373_v33  ;;  %v402_v39 = vmul.f32 %v398_v35, %v374_v34 }
  0xc7 LB: >> { %s2591_s25 = sshll.u32 %s3323_s4, 5  ;;  %s408_s4 = sadd.s32 1, %s3323_s4   ;;  %s3323_s4 = sphi %s3321_s4, %s408_s4  }
  0xc8   : >> { %s410_s3 = scalar_lea.vmem [#allocation2], %s2591_s25  ;;  %p405_p10 = scmp.ge.s32.totalorder %s408_s4, 33  }
  0xc9   : >> { %v411_v40 = vld [vmem:[%s410_s3] sm:$0xff]  ;;  %v412_v42 = vld [vmem:[%s410_s3 + $0x8] sm:$0xff]  ;;  %v413_v43 = vld [vmem:[%s410_s3 + $0x10] sm:$0xff]  ;;  %vm440_vm7 = vcmp.eq.s32.totalorder (%p405_p10), %v3645_v1, 3  ;;  %v3696_v59 = vsub.s32 (%p405_p10), 3, %v3645_v1  ;;  %s3325_s23 = smov (%p405_p10), 0  }
  0xca   : >> { %v418_v41 = vrot.slane %v411_v40, %v3689_v28  ;;  %v414_v44 = vld [vmem:[%s410_s3 + $0x18] sm:$0xff]  ;;  %v2592_v56 = vsel (%p405_p10), %vm440_vm7, 1.0, %v3447_v26 }
  0xcb   : > { %407 = sbr.rel (!%p405_p10) target bundleno = 199 (0xc7), region = 417 }
  0xcc   : >> { %v419_v45 = vmul.f32 %v418_v41, %v399_v36  ;;  %v420_v46 = vmul.f32 %v418_v41, %v400_v37  ;;  %v421_v47 = vmul.f32 %v418_v41, %v401_v38  ;;  %v422_v48 = vmul.f32 %v418_v41, %v402_v39 }
  0xce   : >> { %v423_v49 = vsub.f32 %v411_v40, %v419_v45  ;;  %v424_v50 = vsub.f32 %v412_v42, %v420_v46  ;;  %v425_v51 = vsub.f32 %v413_v43, %v421_v47  ;;  %v426_v52 = vsub.f32 %v414_v44, %v422_v48 }
  0xd0   : >> { %427 = vst [vmem:[%s410_s3] sm:$0xff] %v423_v49  ;;  %428 = vst [vmem:[%s410_s3 + $0x8] sm:$0xff] %v424_v50 }
  0xd1   : >> { %429 = vst [vmem:[%s410_s3 + $0x10] sm:$0xff] %v425_v51  ;;  %430 = vst [vmem:[%s410_s3 + $0x18] sm:$0xff] %v426_v52 }
  0xd8   : > { %v432_v53 = vld [vmem:[#allocation2 + $0x60] sm:$0xff]  ;;  %v433_v62 = vld [vmem:[#allocation2 + $0x68] sm:$0xff]  ;;  %v434_v63 = vld [vmem:[#allocation2 + $0x70] sm:$0xff] }
  0xd9   : > { %2987 = vrcp.f32 %v432_v53  ;;  %v452_v61 = vsub.f32 %v432_v53, %v2592_v56  ;;  %v435_v0 = vld [vmem:[#allocation2 + $0x78] sm:$0xff] }
  0xe3   : > { %v2988_v54 = vpop.eup %2987 }
  0xe4   : > { %v437_v55 = vmul.f32 %v2988_v54, %v432_v53 }
  0xe6   : > { %v438_v57 = vsub.f32 2.0, %v437_v55 }
  0xe8   : > { %v439_v60 = vmul.f32 %v2988_v54, %v438_v57 }
  0xea   : > { %v459_v5 = vrot.slane %v439_v60, %v3696_v59 }
  0xec   : > { %v460_v6 = vmul.f32 %v459_v5, %v452_v61  ;;  %v461_v7 = vmul.f32 %v459_v5, %v433_v62  ;;  %v462_v8 = vmul.f32 %v459_v5, %v434_v63  ;;  %v463_v9 = vmul.f32 %v459_v5, %v435_v0 }
  0xed LB: >> { %s2593_s27 = sshll.u32 %s3327_s23, 5  ;;  %s469_s23 = sadd.s32 1, %s3327_s23   ;;  %s3327_s23 = sphi %s3325_s23, %s469_s23  }
  0xee   : >> { %s471_s5 = scalar_lea.vmem [#allocation2], %s2593_s27  ;;  %p466_p7 = scmp.ge.s32.totalorder %s469_s23, 33  }
  0xef   : >> { %v472_v10 = vld [vmem:[%s471_s5] sm:$0xff]  ;;  %v473_v12 = vld [vmem:[%s471_s5 + $0x8] sm:$0xff]  ;;  %v474_v13 = vld [vmem:[%s471_s5 + $0x10] sm:$0xff]  ;;  %vm501_vm8 = vcmp.eq.s32.totalorder (%p466_p7), %v3645_v1, 4  ;;  %v3703_v31 = vsub.s32 (%p466_p7), 4, %v3645_v1  ;;  %s3329_s16 = smov (%p466_p7), 0  }
  0xf0   : >> { %v479_v11 = vrot.slane %v472_v10, %v3696_v59  ;;  %v475_v14 = vld [vmem:[%s471_s5 + $0x18] sm:$0xff]  ;;  %v2594_v27 = vsel (%p466_p7), %vm501_vm8, 1.0, %v3447_v26 }
  0xf1   : > { %468 = sbr.rel (!%p466_p7) target bundleno = 237 (0xed), region = 428 }
  0xf2   : >> { %v480_v15 = vmul.f32 %v479_v11, %v460_v6  ;;  %v481_v16 = vmul.f32 %v479_v11, %v461_v7  ;;  %v482_v17 = vmul.f32 %v479_v11, %v462_v8  ;;  %v483_v18 = vmul.f32 %v479_v11, %v463_v9 }
  0xf4   : >> { %v484_v19 = vsub.f32 %v472_v10, %v480_v15  ;;  %v485_v20 = vsub.f32 %v473_v12, %v481_v16  ;;  %v486_v21 = vsub.f32 %v474_v13, %v482_v17  ;;  %v487_v22 = vsub.f32 %v475_v14, %v483_v18 }
  0xf6   : >> { %488 = vst [vmem:[%s471_s5] sm:$0xff] %v484_v19  ;;  %489 = vst [vmem:[%s471_s5 + $0x8] sm:$0xff] %v485_v20 }
  0xf7   : >> { %490 = vst [vmem:[%s471_s5 + $0x10] sm:$0xff] %v486_v21  ;;  %491 = vst [vmem:[%s471_s5 + $0x18] sm:$0xff] %v487_v22 }
  0xfe   : > { %v493_v23 = vld [vmem:[#allocation2 + $0x80] sm:$0xff]  ;;  %v494_v34 = vld [vmem:[#allocation2 + $0x88] sm:$0xff]  ;;  %v495_v35 = vld [vmem:[#allocation2 + $0x90] sm:$0xff] }
  0xff   : > { %2989 = vrcp.f32 %v493_v23  ;;  %v513_v33 = vsub.f32 %v493_v23, %v2594_v27  ;;  %v496_v36 = vld [vmem:[#allocation2 + $0x98] sm:$0xff] }
 0x109   : > { %v2990_v24 = vpop.eup %2989 }
 0x10a   : > { %v498_v25 = vmul.f32 %v2990_v24, %v493_v23 }
 0x10c   : > { %v499_v30 = vsub.f32 2.0, %v498_v25 }
 0x10e   : > { %v500_v32 = vmul.f32 %v2990_v24, %v499_v30 }
 0x110   : > { %v520_v37 = vrot.slane %v500_v32, %v3703_v31 }
 0x112   : > { %v521_v38 = vmul.f32 %v520_v37, %v513_v33  ;;  %v522_v39 = vmul.f32 %v520_v37, %v494_v34  ;;  %v523_v40 = vmul.f32 %v520_v37, %v495_v35  ;;  %v524_v41 = vmul.f32 %v520_v37, %v496_v36 }
 0x113 LB: >> { %s2595_s20 = sshll.u32 %s3331_s16, 5  ;;  %s530_s16 = sadd.s32 1, %s3331_s16   ;;  %s3331_s16 = sphi %s3329_s16, %s530_s16  }
 0x114   : >> { %s532_s19 = scalar_lea.vmem [#allocation2], %s2595_s20  ;;  %p527_p8 = scmp.ge.s32.totalorder %s530_s16, 33  }
 0x115   : >> { %v533_v42 = vld [vmem:[%s532_s19] sm:$0xff]  ;;  %v534_v44 = vld [vmem:[%s532_s19 + $0x8] sm:$0xff]  ;;  %v535_v45 = vld [vmem:[%s532_s19 + $0x10] sm:$0xff]  ;;  %vm562_vm9 = vcmp.eq.s32.totalorder (%p527_p8), %v3645_v1, 5  ;;  %v3710_v62 = vsub.s32 (%p527_p8), 5, %v3645_v1  ;;  %s3333_s28 = smov (%p527_p8), 0  }
 0x116   : >> { %v540_v43 = vrot.slane %v533_v42, %v3703_v31  ;;  %v536_v46 = vld [vmem:[%s532_s19 + $0x18] sm:$0xff]  ;;  %v2596_v60 = vsel (%p527_p8), %vm562_vm9, 1.0, %v3447_v26 }
 0x117   : > { %529 = sbr.rel (!%p527_p8) target bundleno = 275 (0x113), region = 439 }
 0x118   : >> { %v541_v47 = vmul.f32 %v540_v43, %v521_v38  ;;  %v542_v48 = vmul.f32 %v540_v43, %v522_v39  ;;  %v543_v49 = vmul.f32 %v540_v43, %v523_v40  ;;  %v544_v50 = vmul.f32 %v540_v43, %v524_v41 }
 0x11a   : >> { %v545_v51 = vsub.f32 %v533_v42, %v541_v47  ;;  %v546_v52 = vsub.f32 %v534_v44, %v542_v48  ;;  %v547_v53 = vsub.f32 %v535_v45, %v543_v49  ;;  %v548_v54 = vsub.f32 %v536_v46, %v544_v50 }
 0x11c   : >> { %549 = vst [vmem:[%s532_s19] sm:$0xff] %v545_v51  ;;  %550 = vst [vmem:[%s532_s19 + $0x8] sm:$0xff] %v546_v52 }
 0x11d   : >> { %551 = vst [vmem:[%s532_s19 + $0x10] sm:$0xff] %v547_v53  ;;  %552 = vst [vmem:[%s532_s19 + $0x18] sm:$0xff] %v548_v54 }
 0x124   : > { %v554_v55 = vld [vmem:[#allocation2 + $0xa0] sm:$0xff]  ;;  %v555_v5 = vld [vmem:[#allocation2 + $0xa8] sm:$0xff]  ;;  %v556_v6 = vld [vmem:[#allocation2 + $0xb0] sm:$0xff] }
 0x125   : > { %2991 = vrcp.f32 %v554_v55  ;;  %v574_v0 = vsub.f32 %v554_v55, %v2596_v60  ;;  %v557_v7 = vld [vmem:[#allocation2 + $0xb8] sm:$0xff] }
 0x12f   : > { %v2992_v56 = vpop.eup %2991 }
 0x130   : > { %v559_v57 = vmul.f32 %v2992_v56, %v554_v55 }
 0x132   : > { %v560_v61 = vsub.f32 2.0, %v559_v57 }
 0x134   : > { %v561_v63 = vmul.f32 %v2992_v56, %v560_v61 }
 0x136   : > { %v581_v8 = vrot.slane %v561_v63, %v3710_v62 }
 0x138   : > { %v582_v9 = vmul.f32 %v581_v8, %v574_v0  ;;  %v583_v10 = vmul.f32 %v581_v8, %v555_v5  ;;  %v584_v11 = vmul.f32 %v581_v8, %v556_v6  ;;  %v585_v12 = vmul.f32 %v581_v8, %v557_v7 }
 0x139 LB: >> { %s2597_s26 = sshll.u32 %s3335_s28, 5  ;;  %s591_s28 = sadd.s32 1, %s3335_s28   ;;  %s3335_s28 = sphi %s3333_s28, %s591_s28  }
 0x13a   : >> { %s593_s7 = scalar_lea.vmem [#allocation2], %s2597_s26  ;;  %p588_p9 = scmp.ge.s32.totalorder %s591_s28, 33  }
 0x13b   : >> { %v594_v13 = vld [vmem:[%s593_s7] sm:$0xff]  ;;  %v595_v15 = vld [vmem:[%s593_s7 + $0x8] sm:$0xff]  ;;  %v596_v16 = vld [vmem:[%s593_s7 + $0x10] sm:$0xff]  ;;  %vm623_vm10 = vcmp.eq.s32.totalorder (%p588_p9), %v3645_v1, 6  ;;  %v3717_v35 = vsub.s32 (%p588_p9), 6, %v3645_v1  ;;  %s3337_s6 = smov (%p588_p9), 0  }
 0x13c   : >> { %v601_v14 = vrot.slane %v594_v13, %v3710_v62  ;;  %v597_v17 = vld [vmem:[%s593_s7 + $0x18] sm:$0xff]  ;;  %v2598_v33 = vsel (%p588_p9), %vm623_vm10, 1.0, %v3447_v26 }
 0x13d   : > { %590 = sbr.rel (!%p588_p9) target bundleno = 313 (0x139), region = 450 }
 0x13e   : >> { %v602_v18 = vmul.f32 %v601_v14, %v582_v9  ;;  %v603_v19 = vmul.f32 %v601_v14, %v583_v10  ;;  %v604_v20 = vmul.f32 %v601_v14, %v584_v11  ;;  %v605_v21 = vmul.f32 %v601_v14, %v585_v12 }
 0x140   : >> { %v606_v22 = vsub.f32 %v594_v13, %v602_v18  ;;  %v607_v23 = vsub.f32 %v595_v15, %v603_v19  ;;  %v608_v24 = vsub.f32 %v596_v16, %v604_v20  ;;  %v609_v25 = vsub.f32 %v597_v17, %v605_v21 }
 0x142   : >> { %610 = vst [vmem:[%s593_s7] sm:$0xff] %v606_v22  ;;  %611 = vst [vmem:[%s593_s7 + $0x8] sm:$0xff] %v607_v23 }
 0x143   : >> { %612 = vst [vmem:[%s593_s7 + $0x10] sm:$0xff] %v608_v24  ;;  %613 = vst [vmem:[%s593_s7 + $0x18] sm:$0xff] %v609_v25 }
 0x14a   : > { %v615_v27 = vld [vmem:[#allocation2 + $0xc0] sm:$0xff]  ;;  %v616_v38 = vld [vmem:[#allocation2 + $0xc8] sm:$0xff]  ;;  %v617_v39 = vld [vmem:[#allocation2 + $0xd0] sm:$0xff] }
 0x14b   : > { %2993 = vrcp.f32 %v615_v27  ;;  %v635_v37 = vsub.f32 %v615_v27, %v2598_v33  ;;  %v618_v40 = vld [vmem:[#allocation2 + $0xd8] sm:$0xff] }
 0x155   : > { %v2994_v30 = vpop.eup %2993 }
 0x156   : > { %v620_v32 = vmul.f32 %v2994_v30, %v615_v27 }
 0x158   : > { %v621_v34 = vsub.f32 2.0, %v620_v32 }
 0x15a   : > { %v622_v36 = vmul.f32 %v2994_v30, %v621_v34 }
 0x15c   : > { %v642_v41 = vrot.slane %v622_v36, %v3717_v35 }
 0x15e   : > { %v643_v42 = vmul.f32 %v642_v41, %v635_v37  ;;  %v644_v43 = vmul.f32 %v642_v41, %v616_v38  ;;  %v645_v44 = vmul.f32 %v642_v41, %v617_v39  ;;  %v646_v45 = vmul.f32 %v642_v41, %v618_v40 }
 0x15f LB: >> { %s2599_s8 = sshll.u32 %s3339_s6, 5  ;;  %s652_s6 = sadd.s32 1, %s3339_s6   ;;  %s3339_s6 = sphi %s3337_s6, %s652_s6  }
 0x160   : >> { %s654_s17 = scalar_lea.vmem [#allocation2], %s2599_s8  ;;  %p649_p11 = scmp.ge.s32.totalorder %s652_s6, 33  }
 0x161   : >> { %v655_v46 = vld [vmem:[%s654_s17] sm:$0xff]  ;;  %v656_v48 = vld [vmem:[%s654_s17 + $0x8] sm:$0xff]  ;;  %v657_v49 = vld [vmem:[%s654_s17 + $0x10] sm:$0xff]  ;;  %vm684_vm11 = vcmp.eq.s32.totalorder (%p649_p11), %v3645_v1, 7  ;;  %v3724_v7 = vsub.s32 (%p649_p11), 7, %v3645_v1  ;;  %s3341_s24 = smov (%p649_p11), 0  }
 0x162   : >> { %v662_v47 = vrot.slane %v655_v46, %v3717_v35  ;;  %v658_v50 = vld [vmem:[%s654_s17 + $0x18] sm:$0xff]  ;;  %v2600_v5 = vsel (%p649_p11), %vm684_vm11, 1.0, %v3447_v26 }
 0x163   : > { %651 = sbr.rel (!%p649_p11) target bundleno = 351 (0x15f), region = 461 }
 0x164   : >> { %v663_v51 = vmul.f32 %v662_v47, %v643_v42  ;;  %v664_v52 = vmul.f32 %v662_v47, %v644_v43  ;;  %v665_v53 = vmul.f32 %v662_v47, %v645_v44  ;;  %v666_v54 = vmul.f32 %v662_v47, %v646_v45 }
 0x166   : >> { %v667_v55 = vsub.f32 %v655_v46, %v663_v51  ;;  %v668_v56 = vsub.f32 %v656_v48, %v664_v52  ;;  %v669_v57 = vsub.f32 %v657_v49, %v665_v53  ;;  %v670_v60 = vsub.f32 %v658_v50, %v666_v54 }
 0x168   : >> { %671 = vst [vmem:[%s654_s17] sm:$0xff] %v667_v55  ;;  %672 = vst [vmem:[%s654_s17 + $0x8] sm:$0xff] %v668_v56 }
 0x169   : >> { %673 = vst [vmem:[%s654_s17 + $0x10] sm:$0xff] %v669_v57  ;;  %674 = vst [vmem:[%s654_s17 + $0x18] sm:$0xff] %v670_v60 }
 0x170   : > { %v676_v61 = vld [vmem:[#allocation2 + $0xe0] sm:$0xff]  ;;  %v677_v10 = vld [vmem:[#allocation2 + $0xe8] sm:$0xff]  ;;  %v678_v11 = vld [vmem:[#allocation2 + $0xf0] sm:$0xff] }
 0x171   : > { %2995 = vrcp.f32 %v676_v61  ;;  %v696_v9 = vsub.f32 %v676_v61, %v2600_v5  ;;  %v679_v12 = vld [vmem:[#allocation2 + $0xf8] sm:$0xff] }
 0x17b   : > { %v2996_v63 = vpop.eup %2995 }
 0x17c   : > { %v681_v0 = vmul.f32 %v2996_v63, %v676_v61 }
 0x17e   : > { %v682_v6 = vsub.f32 2.0, %v681_v0 }
 0x180   : > { %v683_v8 = vmul.f32 %v2996_v63, %v682_v6 }
 0x182   : > { %v703_v13 = vrot.slane %v683_v8, %v3724_v7 }
 0x184   : > { %v704_v14 = vmul.f32 %v703_v13, %v696_v9  ;;  %v705_v15 = vmul.f32 %v703_v13, %v677_v10  ;;  %v706_v16 = vmul.f32 %v703_v13, %v678_v11  ;;  %v707_v17 = vmul.f32 %v703_v13, %v679_v12 }
 0x185 LB: >> { %s2601_s4 = sshll.u32 %s3343_s24, 5  ;;  %s713_s24 = sadd.s32 1, %s3343_s24   ;;  %s3343_s24 = sphi %s3341_s24, %s713_s24  }
 0x186   : >> { %s715_s25 = scalar_lea.vmem [#allocation2], %s2601_s4  ;;  %p710_p0 = scmp.ge.s32.totalorder %s713_s24, 33  }
 0x187   : >> { %v716_v18 = vld [vmem:[%s715_s25] sm:$0xff]  ;;  %v717_v19 = vld [vmem:[%s715_s25 + $0x8] sm:$0xff]  ;;  %v718_v20 = vld [vmem:[%s715_s25 + $0x10] sm:$0xff]  ;;  %vm746_vm12 = vcmp.eq.s32.totalorder (%p710_p0), %v3648_v2, 8  ;;  %s3345_s3 = smov (%p710_p0), 0  }
 0x188   : >> { %v723_v1 = vrot.slane %v716_v18, %v3724_v7  ;;  %v719_v21 = vld [vmem:[%s715_s25 + $0x18] sm:$0xff]  ;;  %v2602_v38 = vsel (%p710_p0), %vm746_vm12, 1.0, %v3447_v26 }
 0x189   : > { %712 = sbr.rel (!%p710_p0) target bundleno = 389 (0x185), region = 472 }
 0x18a   : >> { %v724_v22 = vmul.f32 %v723_v1, %v704_v14  ;;  %v725_v23 = vmul.f32 %v723_v1, %v705_v15  ;;  %v726_v24 = vmul.f32 %v723_v1, %v706_v16  ;;  %v727_v25 = vmul.f32 %v723_v1, %v707_v17 }
 0x18c   : >> { %v728_v27 = vsub.f32 %v716_v18, %v724_v22  ;;  %v729_v30 = vsub.f32 %v717_v19, %v725_v23  ;;  %v730_v32 = vsub.f32 %v718_v20, %v726_v24  ;;  %v731_v33 = vsub.f32 %v719_v21, %v727_v25 }
 0x18e   : >> { %732 = vst [vmem:[%s715_s25] sm:$0xff] %v728_v27  ;;  %733 = vst [vmem:[%s715_s25 + $0x8] sm:$0xff] %v729_v30 }
 0x18f   : >> { %734 = vst [vmem:[%s715_s25 + $0x10] sm:$0xff] %v730_v32  ;;  %735 = vst [vmem:[%s715_s25 + $0x18] sm:$0xff] %v731_v33 }
 0x196   : > { %v738_v34 = vld [vmem:[#allocation2 + $0x108] sm:$0xff]  ;;  %v737_v42 = vld [vmem:[#allocation2 + $0x100] sm:$0xff]  ;;  %v739_v43 = vld [vmem:[#allocation2 + $0x110] sm:$0xff] }
 0x197   : > { %2997 = vrcp.f32 %v738_v34  ;;  %v758_v41 = vsub.f32 %v738_v34, %v2602_v38  ;;  %v740_v44 = vld [vmem:[#allocation2 + $0x118] sm:$0xff] }
 0x1a1   : > { %v2998_v36 = vpop.eup %2997 }
 0x1a2   : > { %v742_v37 = vmul.f32 %v2998_v36, %v738_v34 }
 0x1a4   : > { %v743_v39 = vsub.f32 2.0, %v742_v37 }
 0x1a6   : > { %v744_v40 = vmul.f32 %v2998_v36, %v743_v39 }
 0x1a8   : > { %v764_v45 = vrot.slane %v744_v40, %v3675_v29 }
 0x1aa   : > { %v765_v46 = vmul.f32 %v764_v45, %v737_v42  ;;  %v766_v47 = vmul.f32 %v764_v45, %v758_v41  ;;  %v767_v48 = vmul.f32 %v764_v45, %v739_v43  ;;  %v768_v49 = vmul.f32 %v764_v45, %v740_v44 }
 0x1ab LB: >> { %s2603_s23 = sshll.u32 %s3347_s3, 5  ;;  %s774_s3 = sadd.s32 1, %s3347_s3   ;;  %s3347_s3 = sphi %s3345_s3, %s774_s3  }
 0x1ac   : >> { %s776_s27 = scalar_lea.vmem [#allocation2], %s2603_s23  ;;  %p771_p4 = scmp.ge.s32.totalorder %s774_s3, 33  }
 0x1ad   : >> { %v778_v50 = vld [vmem:[%s776_s27 + $0x8] sm:$0xff]  ;;  %v777_v52 = vld [vmem:[%s776_s27] sm:$0xff]  ;;  %v779_v53 = vld [vmem:[%s776_s27 + $0x10] sm:$0xff]  ;;  %vm807_vm13 = vcmp.eq.s32.totalorder (%p771_p4), %v3648_v2, 9  ;;  %s3349_s5 = smov (%p771_p4), 0  }
 0x1ae   : >> { %v784_v51 = vrot.slane %v778_v50, %v3675_v29  ;;  %v780_v54 = vld [vmem:[%s776_s27 + $0x18] sm:$0xff]  ;;  %v2604_v10 = vsel (%p771_p4), %vm807_vm13, 1.0, %v3447_v26 }
 0x1af   : > { %773 = sbr.rel (!%p771_p4) target bundleno = 427 (0x1ab), region = 483 }
 0x1b0   : >> { %v785_v55 = vmul.f32 %v784_v51, %v765_v46  ;;  %v786_v56 = vmul.f32 %v784_v51, %v766_v47  ;;  %v787_v57 = vmul.f32 %v784_v51, %v767_v48  ;;  %v788_v60 = vmul.f32 %v784_v51, %v768_v49 }
 0x1b2   : >> { %v789_v61 = vsub.f32 %v777_v52, %v785_v55  ;;  %v790_v63 = vsub.f32 %v778_v50, %v786_v56  ;;  %v791_v0 = vsub.f32 %v779_v53, %v787_v57  ;;  %v792_v5 = vsub.f32 %v780_v54, %v788_v60 }
 0x1b4   : >> { %793 = vst [vmem:[%s776_s27] sm:$0xff] %v789_v61  ;;  %794 = vst [vmem:[%s776_s27 + $0x8] sm:$0xff] %v790_v63 }
 0x1b5   : >> { %795 = vst [vmem:[%s776_s27 + $0x10] sm:$0xff] %v791_v0  ;;  %796 = vst [vmem:[%s776_s27 + $0x18] sm:$0xff] %v792_v5 }
 0x1bc   : > { %v799_v6 = vld [vmem:[#allocation2 + $0x128] sm:$0xff]  ;;  %v798_v14 = vld [vmem:[#allocation2 + $0x120] sm:$0xff]  ;;  %v800_v15 = vld [vmem:[#allocation2 + $0x130] sm:$0xff] }
 0x1bd   : > { %2999 = vrcp.f32 %v799_v6  ;;  %v819_v13 = vsub.f32 %v799_v6, %v2604_v10  ;;  %v801_v16 = vld [vmem:[#allocation2 + $0x138] sm:$0xff] }
 0x1c7   : > { %v3000_v8 = vpop.eup %2999 }
 0x1c8   : > { %v803_v9 = vmul.f32 %v3000_v8, %v799_v6 }
 0x1ca   : > { %v804_v11 = vsub.f32 2.0, %v803_v9 }
 0x1cc   : > { %v805_v12 = vmul.f32 %v3000_v8, %v804_v11 }
 0x1ce   : > { %v825_v17 = vrot.slane %v805_v12, %v3682_v58 }
 0x1d0   : > { %v826_v18 = vmul.f32 %v825_v17, %v798_v14  ;;  %v827_v1 = vmul.f32 %v825_v17, %v819_v13  ;;  %v828_v19 = vmul.f32 %v825_v17, %v800_v15  ;;  %v829_v20 = vmul.f32 %v825_v17, %v801_v16 }
 0x1d1 LB: >> { %s2605_s16 = sshll.u32 %s3351_s5, 5  ;;  %s835_s5 = sadd.s32 1, %s3351_s5   ;;  %s3351_s5 = sphi %s3349_s5, %s835_s5  }
 0x1d2   : >> { %s837_s20 = scalar_lea.vmem [#allocation2], %s2605_s16  ;;  %p832_p1 = scmp.ge.s32.totalorder %s835_s5, 33  }
 0x1d3   : >> { %v839_v21 = vld [vmem:[%s837_s20 + $0x8] sm:$0xff]  ;;  %v838_v23 = vld [vmem:[%s837_s20] sm:$0xff]  ;;  %v840_v24 = vld [vmem:[%s837_s20 + $0x10] sm:$0xff]  ;;  %vm868_vm14 = vcmp.eq.s32.totalorder (%p832_p1), %v3648_v2, 10  ;;  %s3353_s19 = smov (%p832_p1), 0  }
 0x1d4   : >> { %v845_v22 = vrot.slane %v839_v21, %v3682_v58  ;;  %v841_v25 = vld [vmem:[%s837_s20 + $0x18] sm:$0xff]  ;;  %v2606_v42 = vsel (%p832_p1), %vm868_vm14, 1.0, %v3447_v26 }
 0x1d5   : > { %834 = sbr.rel (!%p832_p1) target bundleno = 465 (0x1d1), region = 494 }
 0x1d6   : >> { %v846_v27 = vmul.f32 %v845_v22, %v826_v18  ;;  %v847_v30 = vmul.f32 %v845_v22, %v827_v1  ;;  %v848_v32 = vmul.f32 %v845_v22, %v828_v19  ;;  %v849_v33 = vmul.f32 %v845_v22, %v829_v20 }
 0x1d8   : >> { %v850_v34 = vsub.f32 %v838_v23, %v846_v27  ;;  %v851_v36 = vsub.f32 %v839_v21, %v847_v30  ;;  %v852_v37 = vsub.f32 %v840_v24, %v848_v32  ;;  %v853_v38 = vsub.f32 %v841_v25, %v849_v33 }
 0x1da   : >> { %854 = vst [vmem:[%s837_s20] sm:$0xff] %v850_v34  ;;  %855 = vst [vmem:[%s837_s20 + $0x8] sm:$0xff] %v851_v36 }
 0x1db   : >> { %856 = vst [vmem:[%s837_s20 + $0x10] sm:$0xff] %v852_v37  ;;  %857 = vst [vmem:[%s837_s20 + $0x18] sm:$0xff] %v853_v38 }
 0x1e2   : > { %v860_v39 = vld [vmem:[#allocation2 + $0x148] sm:$0xff]  ;;  %v859_v46 = vld [vmem:[#allocation2 + $0x140] sm:$0xff]  ;;  %v861_v47 = vld [vmem:[#allocation2 + $0x150] sm:$0xff] }
 0x1e3   : > { %3001 = vrcp.f32 %v860_v39  ;;  %v880_v45 = vsub.f32 %v860_v39, %v2606_v42  ;;  %v862_v48 = vld [vmem:[#allocation2 + $0x158] sm:$0xff] }
 0x1ed   : > { %v3002_v40 = vpop.eup %3001 }
 0x1ee   : > { %v864_v41 = vmul.f32 %v3002_v40, %v860_v39 }
 0x1f0   : > { %v865_v43 = vsub.f32 2.0, %v864_v41 }
 0x1f2   : > { %v866_v44 = vmul.f32 %v3002_v40, %v865_v43 }
 0x1f4   : > { %v886_v49 = vrot.slane %v866_v44, %v3689_v28 }
 0x1f6   : > { %v887_v50 = vmul.f32 %v886_v49, %v859_v46  ;;  %v888_v51 = vmul.f32 %v886_v49, %v880_v45  ;;  %v889_v52 = vmul.f32 %v886_v49, %v861_v47  ;;  %v890_v53 = vmul.f32 %v886_v49, %v862_v48 }
 0x1f7 LB: >> { %s2607_s28 = sshll.u32 %s3355_s19, 5  ;;  %s896_s19 = sadd.s32 1, %s3355_s19   ;;  %s3355_s19 = sphi %s3353_s19, %s896_s19  }
 0x1f8   : >> { %s898_s26 = scalar_lea.vmem [#allocation2], %s2607_s28  ;;  %p893_p3 = scmp.ge.s32.totalorder %s896_s19, 33  }
 0x1f9   : >> { %v900_v54 = vld [vmem:[%s898_s26 + $0x8] sm:$0xff]  ;;  %v899_v56 = vld [vmem:[%s898_s26] sm:$0xff]  ;;  %v901_v57 = vld [vmem:[%s898_s26 + $0x10] sm:$0xff]  ;;  %vm929_vm15 = vcmp.eq.s32.totalorder (%p893_p3), %v3648_v2, 11  ;;  %s3357_s7 = smov (%p893_p3), 0  }
 0x1fa   : >> { %v906_v55 = vrot.slane %v900_v54, %v3689_v28  ;;  %v902_v60 = vld [vmem:[%s898_s26 + $0x18] sm:$0xff]  ;;  %v2608_v14 = vsel (%p893_p3), %vm929_vm15, 1.0, %v3447_v26 }
 0x1fb   : > { %895 = sbr.rel (!%p893_p3) target bundleno = 503 (0x1f7), region = 505 }
 0x1fc   : >> { %v907_v61 = vmul.f32 %v906_v55, %v887_v50  ;;  %v908_v63 = vmul.f32 %v906_v55, %v888_v51  ;;  %v909_v0 = vmul.f32 %v906_v55, %v889_v52  ;;  %v910_v5 = vmul.f32 %v906_v55, %v890_v53 }
 0x1fe   : >> { %v911_v6 = vsub.f32 %v899_v56, %v907_v61  ;;  %v912_v8 = vsub.f32 %v900_v54, %v908_v63  ;;  %v913_v9 = vsub.f32 %v901_v57, %v909_v0  ;;  %v914_v10 = vsub.f32 %v902_v60, %v910_v5 }
 0x200   : >> { %915 = vst [vmem:[%s898_s26] sm:$0xff] %v911_v6  ;;  %916 = vst [vmem:[%s898_s26 + $0x8] sm:$0xff] %v912_v8 }
 0x201   : >> { %917 = vst [vmem:[%s898_s26 + $0x10] sm:$0xff] %v913_v9  ;;  %918 = vst [vmem:[%s898_s26 + $0x18] sm:$0xff] %v914_v10 }
 0x208   : > { %v921_v11 = vld [vmem:[#allocation2 + $0x168] sm:$0xff]  ;;  %v920_v18 = vld [vmem:[#allocation2 + $0x160] sm:$0xff]  ;;  %v922_v1 = vld [vmem:[#allocation2 + $0x170] sm:$0xff] }
 0x209   : > { %3003 = vrcp.f32 %v921_v11  ;;  %v941_v17 = vsub.f32 %v921_v11, %v2608_v14  ;;  %v923_v19 = vld [vmem:[#allocation2 + $0x178] sm:$0xff] }
 0x213   : > { %v3004_v12 = vpop.eup %3003 }
 0x214   : > { %v925_v13 = vmul.f32 %v3004_v12, %v921_v11 }
 0x216   : > { %v926_v15 = vsub.f32 2.0, %v925_v13 }
 0x218   : > { %v927_v16 = vmul.f32 %v3004_v12, %v926_v15 }
 0x21a   : > { %v947_v20 = vrot.slane %v927_v16, %v3696_v59 }
 0x21c   : > { %v948_v21 = vmul.f32 %v947_v20, %v920_v18  ;;  %v949_v22 = vmul.f32 %v947_v20, %v941_v17  ;;  %v950_v23 = vmul.f32 %v947_v20, %v922_v1  ;;  %v951_v24 = vmul.f32 %v947_v20, %v923_v19 }
 0x21d LB: >> { %s2609_s6 = sshll.u32 %s3359_s7, 5  ;;  %s957_s7 = sadd.s32 1, %s3359_s7   ;;  %s3359_s7 = sphi %s3357_s7, %s957_s7  }
 0x21e   : >> { %s959_s8 = scalar_lea.vmem [#allocation2], %s2609_s6  ;;  %p954_p5 = scmp.ge.s32.totalorder %s957_s7, 33  }
 0x21f   : >> { %v961_v25 = vld [vmem:[%s959_s8 + $0x8] sm:$0xff]  ;;  %v960_v30 = vld [vmem:[%s959_s8] sm:$0xff]  ;;  %v962_v32 = vld [vmem:[%s959_s8 + $0x10] sm:$0xff]  ;;  %vm990_vm0 = vcmp.eq.s32.totalorder (%p954_p5), %v3648_v2, 12  ;;  %s3361_s17 = smov (%p954_p5), 0  }
 0x220   : >> { %v967_v27 = vrot.slane %v961_v25, %v3696_v59  ;;  %v963_v33 = vld [vmem:[%s959_s8 + $0x18] sm:$0xff]  ;;  %v2610_v46 = vsel (%p954_p5), %vm990_vm0, 1.0, %v3447_v26 }
 0x221   : > { %956 = sbr.rel (!%p954_p5) target bundleno = 541 (0x21d), region = 516 }
 0x222   : >> { %v968_v34 = vmul.f32 %v967_v27, %v948_v21  ;;  %v969_v36 = vmul.f32 %v967_v27, %v949_v22  ;;  %v970_v37 = vmul.f32 %v967_v27, %v950_v23  ;;  %v971_v38 = vmul.f32 %v967_v27, %v951_v24 }
 0x224   : >> { %v972_v39 = vsub.f32 %v960_v30, %v968_v34  ;;  %v973_v40 = vsub.f32 %v961_v25, %v969_v36  ;;  %v974_v41 = vsub.f32 %v962_v32, %v970_v37  ;;  %v975_v42 = vsub.f32 %v963_v33, %v971_v38 }
 0x226   : >> { %976 = vst [vmem:[%s959_s8] sm:$0xff] %v972_v39  ;;  %977 = vst [vmem:[%s959_s8 + $0x8] sm:$0xff] %v973_v40 }
 0x227   : >> { %978 = vst [vmem:[%s959_s8 + $0x10] sm:$0xff] %v974_v41  ;;  %979 = vst [vmem:[%s959_s8 + $0x18] sm:$0xff] %v975_v42 }
 0x22e   : > { %v982_v43 = vld [vmem:[#allocation2 + $0x188] sm:$0xff]  ;;  %v981_v50 = vld [vmem:[#allocation2 + $0x180] sm:$0xff]  ;;  %v983_v51 = vld [vmem:[#allocation2 + $0x190] sm:$0xff] }
 0x22f   : > { %3005 = vrcp.f32 %v982_v43  ;;  %v1002_v49 = vsub.f32 %v982_v43, %v2610_v46  ;;  %v984_v52 = vld [vmem:[#allocation2 + $0x198] sm:$0xff] }
 0x239   : > { %v3006_v44 = vpop.eup %3005 }
 0x23a   : > { %v986_v45 = vmul.f32 %v3006_v44, %v982_v43 }
 0x23c   : > { %v987_v47 = vsub.f32 2.0, %v986_v45 }
 0x23e   : > { %v988_v48 = vmul.f32 %v3006_v44, %v987_v47 }
 0x240   : > { %v1008_v53 = vrot.slane %v988_v48, %v3703_v31 }
 0x242   : > { %v1009_v54 = vmul.f32 %v1008_v53, %v981_v50  ;;  %v1010_v55 = vmul.f32 %v1008_v53, %v1002_v49  ;;  %v1011_v56 = vmul.f32 %v1008_v53, %v983_v51  ;;  %v1012_v57 = vmul.f32 %v1008_v53, %v984_v52 }
 0x243 LB: >> { %s2611_s24 = sshll.u32 %s3363_s17, 5  ;;  %s1018_s17 = sadd.s32 1, %s3363_s17   ;;  %s3363_s17 = sphi %s3361_s17, %s1018_s17  }
 0x244   : >> { %s1020_s4 = scalar_lea.vmem [#allocation2], %s2611_s24  ;;  %p1015_p6 = scmp.ge.s32.totalorder %s1018_s17, 33  }
 0x245   : >> { %v1022_v60 = vld [vmem:[%s1020_s4 + $0x8] sm:$0xff]  ;;  %v1021_v63 = vld [vmem:[%s1020_s4] sm:$0xff]  ;;  %v1023_v0 = vld [vmem:[%s1020_s4 + $0x10] sm:$0xff]  ;;  %vm1051_vm1 = vcmp.eq.s32.totalorder (%p1015_p6), %v3648_v2, 13  ;;  %s3365_s25 = smov (%p1015_p6), 0  }
 0x246   : >> { %v1028_v61 = vrot.slane %v1022_v60, %v3703_v31  ;;  %v1024_v5 = vld [vmem:[%s1020_s4 + $0x18] sm:$0xff]  ;;  %v2612_v18 = vsel (%p1015_p6), %vm1051_vm1, 1.0, %v3447_v26 }
 0x247   : > { %1017 = sbr.rel (!%p1015_p6) target bundleno = 579 (0x243), region = 527 }
 0x248   : >> { %v1029_v6 = vmul.f32 %v1028_v61, %v1009_v54  ;;  %v1030_v8 = vmul.f32 %v1028_v61, %v1010_v55  ;;  %v1031_v9 = vmul.f32 %v1028_v61, %v1011_v56  ;;  %v1032_v10 = vmul.f32 %v1028_v61, %v1012_v57 }
 0x24a   : >> { %v1033_v11 = vsub.f32 %v1021_v63, %v1029_v6  ;;  %v1034_v12 = vsub.f32 %v1022_v60, %v1030_v8  ;;  %v1035_v13 = vsub.f32 %v1023_v0, %v1031_v9  ;;  %v1036_v14 = vsub.f32 %v1024_v5, %v1032_v10 }
 0x24c   : >> { %1037 = vst [vmem:[%s1020_s4] sm:$0xff] %v1033_v11  ;;  %1038 = vst [vmem:[%s1020_s4 + $0x8] sm:$0xff] %v1034_v12 }
 0x24d   : >> { %1039 = vst [vmem:[%s1020_s4 + $0x10] sm:$0xff] %v1035_v13  ;;  %1040 = vst [vmem:[%s1020_s4 + $0x18] sm:$0xff] %v1036_v14 }
 0x254   : > { %v1043_v15 = vld [vmem:[#allocation2 + $0x1a8] sm:$0xff]  ;;  %v1042_v21 = vld [vmem:[#allocation2 + $0x1a0] sm:$0xff]  ;;  %v1044_v22 = vld [vmem:[#allocation2 + $0x1b0] sm:$0xff] }
 0x255   : > { %3007 = vrcp.f32 %v1043_v15  ;;  %v1063_v20 = vsub.f32 %v1043_v15, %v2612_v18  ;;  %v1045_v23 = vld [vmem:[#allocation2 + $0x1b8] sm:$0xff] }
 0x25f   : > { %v3008_v16 = vpop.eup %3007 }
 0x260   : > { %v1047_v17 = vmul.f32 %v3008_v16, %v1043_v15 }
 0x262   : > { %v1048_v1 = vsub.f32 2.0, %v1047_v17 }
 0x264   : > { %v1049_v19 = vmul.f32 %v3008_v16, %v1048_v1 }
 0x266   : > { %v1069_v24 = vrot.slane %v1049_v19, %v3710_v62 }
 0x268   : > { %v1070_v25 = vmul.f32 %v1069_v24, %v1042_v21  ;;  %v1071_v27 = vmul.f32 %v1069_v24, %v1063_v20  ;;  %v1072_v30 = vmul.f32 %v1069_v24, %v1044_v22  ;;  %v1073_v32 = vmul.f32 %v1069_v24, %v1045_v23 }
 0x269 LB: >> { %s2613_s3 = sshll.u32 %s3367_s25, 5  ;;  %s1079_s25 = sadd.s32 1, %s3367_s25   ;;  %s3367_s25 = sphi %s3365_s25, %s1079_s25  }
 0x26a   : >> { %s1081_s23 = scalar_lea.vmem [#allocation2], %s2613_s3  ;;  %p1076_p13 = scmp.ge.s32.totalorder %s1079_s25, 33  }
 0x26b   : >> { %v1083_v33 = vld [vmem:[%s1081_s23 + $0x8] sm:$0xff]  ;;  %v1082_v36 = vld [vmem:[%s1081_s23] sm:$0xff]  ;;  %v1084_v37 = vld [vmem:[%s1081_s23 + $0x10] sm:$0xff]  ;;  %vm1112_vm2 = vcmp.eq.s32.totalorder (%p1076_p13), %v3648_v2, 14  ;;  %s3369_s27 = smov (%p1076_p13), 0  }
 0x26c   : >> { %v1089_v34 = vrot.slane %v1083_v33, %v3710_v62  ;;  %v1085_v38 = vld [vmem:[%s1081_s23 + $0x18] sm:$0xff]  ;;  %v2614_v50 = vsel (%p1076_p13), %vm1112_vm2, 1.0, %v3447_v26 }
 0x26d   : > { %1078 = sbr.rel (!%p1076_p13) target bundleno = 617 (0x269), region = 538 }
 0x26e   : >> { %v1090_v39 = vmul.f32 %v1089_v34, %v1070_v25  ;;  %v1091_v40 = vmul.f32 %v1089_v34, %v1071_v27  ;;  %v1092_v41 = vmul.f32 %v1089_v34, %v1072_v30  ;;  %v1093_v42 = vmul.f32 %v1089_v34, %v1073_v32 }
 0x270   : >> { %v1094_v43 = vsub.f32 %v1082_v36, %v1090_v39  ;;  %v1095_v44 = vsub.f32 %v1083_v33, %v1091_v40  ;;  %v1096_v45 = vsub.f32 %v1084_v37, %v1092_v41  ;;  %v1097_v46 = vsub.f32 %v1085_v38, %v1093_v42 }
 0x272   : >> { %1098 = vst [vmem:[%s1081_s23] sm:$0xff] %v1094_v43  ;;  %1099 = vst [vmem:[%s1081_s23 + $0x8] sm:$0xff] %v1095_v44 }
 0x273   : >> { %1100 = vst [vmem:[%s1081_s23 + $0x10] sm:$0xff] %v1096_v45  ;;  %1101 = vst [vmem:[%s1081_s23 + $0x18] sm:$0xff] %v1097_v46 }
 0x27a   : > { %v1104_v47 = vld [vmem:[#allocation2 + $0x1c8] sm:$0xff]  ;;  %v1103_v54 = vld [vmem:[#allocation2 + $0x1c0] sm:$0xff]  ;;  %v1105_v55 = vld [vmem:[#allocation2 + $0x1d0] sm:$0xff] }
 0x27b   : > { %3009 = vrcp.f32 %v1104_v47  ;;  %v1124_v53 = vsub.f32 %v1104_v47, %v2614_v50  ;;  %v1106_v56 = vld [vmem:[#allocation2 + $0x1d8] sm:$0xff] }
 0x285   : > { %v3010_v48 = vpop.eup %3009 }
 0x286   : > { %v1108_v49 = vmul.f32 %v3010_v48, %v1104_v47 }
 0x288   : > { %v1109_v51 = vsub.f32 2.0, %v1108_v49 }
 0x28a   : > { %v1110_v52 = vmul.f32 %v3010_v48, %v1109_v51 }
 0x28c   : > { %v1130_v57 = vrot.slane %v1110_v52, %v3717_v35 }
 0x28e   : > { %v1131_v60 = vmul.f32 %v1130_v57, %v1103_v54  ;;  %v1132_v61 = vmul.f32 %v1130_v57, %v1124_v53  ;;  %v1133_v63 = vmul.f32 %v1130_v57, %v1105_v55  ;;  %v1134_v0 = vmul.f32 %v1130_v57, %v1106_v56 }
 0x28f LB: >> { %s2615_s5 = sshll.u32 %s3371_s27, 5  ;;  %s1140_s27 = sadd.s32 1, %s3371_s27   ;;  %s3371_s27 = sphi %s3369_s27, %s1140_s27  }
 0x290   : >> { %s1142_s16 = scalar_lea.vmem [#allocation2], %s2615_s5  ;;  %p1137_p2 = scmp.ge.s32.totalorder %s1140_s27, 33  }
 0x291   : >> { %v1144_v5 = vld [vmem:[%s1142_s16 + $0x8] sm:$0xff]  ;;  %v1143_v8 = vld [vmem:[%s1142_s16] sm:$0xff]  ;;  %v1145_v9 = vld [vmem:[%s1142_s16 + $0x10] sm:$0xff]  ;;  %vm1173_vm3 = vcmp.eq.s32.totalorder (%p1137_p2), %v3648_v2, 15  ;;  %s3373_s20 = smov (%p1137_p2), 0  }
 0x292   : >> { %v1150_v6 = vrot.slane %v1144_v5, %v3717_v35  ;;  %v1146_v10 = vld [vmem:[%s1142_s16 + $0x18] sm:$0xff]  ;;  %v2616_v21 = vsel (%p1137_p2), %vm1173_vm3, 1.0, %v3447_v26 }
 0x293   : > { %1139 = sbr.rel (!%p1137_p2) target bundleno = 655 (0x28f), region = 549 }
 0x294   : >> { %v1151_v11 = vmul.f32 %v1150_v6, %v1131_v60  ;;  %v1152_v12 = vmul.f32 %v1150_v6, %v1132_v61  ;;  %v1153_v13 = vmul.f32 %v1150_v6, %v1133_v63  ;;  %v1154_v14 = vmul.f32 %v1150_v6, %v1134_v0 }
 0x296   : >> { %v1155_v15 = vsub.f32 %v1143_v8, %v1151_v11  ;;  %v1156_v16 = vsub.f32 %v1144_v5, %v1152_v12  ;;  %v1157_v17 = vsub.f32 %v1145_v9, %v1153_v13  ;;  %v1158_v18 = vsub.f32 %v1146_v10, %v1154_v14 }
 0x298   : >> { %1159 = vst [vmem:[%s1142_s16] sm:$0xff] %v1155_v15  ;;  %1160 = vst [vmem:[%s1142_s16 + $0x8] sm:$0xff] %v1156_v16 }
 0x299   : >> { %1161 = vst [vmem:[%s1142_s16 + $0x10] sm:$0xff] %v1157_v17  ;;  %1162 = vst [vmem:[%s1142_s16 + $0x18] sm:$0xff] %v1158_v18 }
 0x2a0   : > { %v1165_v1 = vld [vmem:[#allocation2 + $0x1e8] sm:$0xff]  ;;  %v1164_v25 = vld [vmem:[#allocation2 + $0x1e0] sm:$0xff]  ;;  %v1166_v27 = vld [vmem:[#allocation2 + $0x1f0] sm:$0xff] }
 0x2a1   : > { %3011 = vrcp.f32 %v1165_v1  ;;  %v1185_v24 = vsub.f32 %v1165_v1, %v2616_v21  ;;  %v1167_v30 = vld [vmem:[#allocation2 + $0x1f8] sm:$0xff] }
 0x2ab   : > { %v3012_v19 = vpop.eup %3011 }
 0x2ac   : > { %v1169_v20 = vmul.f32 %v3012_v19, %v1165_v1 }
 0x2ae   : > { %v1170_v22 = vsub.f32 2.0, %v1169_v20 }
 0x2b0   : > { %v1171_v23 = vmul.f32 %v3012_v19, %v1170_v22 }
 0x2b2   : > { %v1191_v32 = vrot.slane %v1171_v23, %v3724_v7 }
 0x2b4   : > { %v1192_v33 = vmul.f32 %v1191_v32, %v1164_v25  ;;  %v1193_v34 = vmul.f32 %v1191_v32, %v1185_v24  ;;  %v1194_v36 = vmul.f32 %v1191_v32, %v1166_v27  ;;  %v1195_v37 = vmul.f32 %v1191_v32, %v1167_v30 }
 0x2b5 LB: >> { %s2617_s19 = sshll.u32 %s3375_s20, 5  ;;  %s1201_s20 = sadd.s32 1, %s3375_s20   ;;  %s3375_s20 = sphi %s3373_s20, %s1201_s20  }
 0x2b6   : >> { %s1203_s28 = scalar_lea.vmem [#allocation2], %s2617_s19  ;;  %p1198_p12 = scmp.ge.s32.totalorder %s1201_s20, 33  }
 0x2b7   : >> { %v1205_v2 = vld [vmem:[%s1203_s28 + $0x8] sm:$0xff]  ;;  %v1204_v39 = vld [vmem:[%s1203_s28] sm:$0xff]  ;;  %v1206_v40 = vld [vmem:[%s1203_s28 + $0x10] sm:$0xff]  ;;  %vm1235_vm4 = vcmp.eq.s32.totalorder (%p1198_p12), %v3651_v3, 16  ;;  %s3377_s26 = smov (%p1198_p12), 0  }
 0x2b8   : >> { %v1211_v38 = vrot.slane %v1205_v2, %v3724_v7  ;;  %v1207_v41 = vld [vmem:[%s1203_s28 + $0x18] sm:$0xff]  ;;  %v2618_v53 = vsel (%p1198_p12), %vm1235_vm4, 1.0, %v3447_v26 }
 0x2b9   : > { %1200 = sbr.rel (!%p1198_p12) target bundleno = 693 (0x2b5), region = 560 }
 0x2ba   : >> { %v1212_v42 = vmul.f32 %v1211_v38, %v1192_v33  ;;  %v1213_v43 = vmul.f32 %v1211_v38, %v1193_v34  ;;  %v1214_v44 = vmul.f32 %v1211_v38, %v1194_v36  ;;  %v1215_v45 = vmul.f32 %v1211_v38, %v1195_v37 }
 0x2bc   : >> { %v1216_v46 = vsub.f32 %v1204_v39, %v1212_v42  ;;  %v1217_v47 = vsub.f32 %v1205_v2, %v1213_v43  ;;  %v1218_v48 = vsub.f32 %v1206_v40, %v1214_v44  ;;  %v1219_v49 = vsub.f32 %v1207_v41, %v1215_v45 }
 0x2be   : >> { %1220 = vst [vmem:[%s1203_s28] sm:$0xff] %v1216_v46  ;;  %1221 = vst [vmem:[%s1203_s28 + $0x8] sm:$0xff] %v1217_v47 }
 0x2bf   : >> { %1222 = vst [vmem:[%s1203_s28 + $0x10] sm:$0xff] %v1218_v48  ;;  %1223 = vst [vmem:[%s1203_s28 + $0x18] sm:$0xff] %v1219_v49 }
 0x2c6   : > { %v1227_v50 = vld [vmem:[#allocation2 + $0x210] sm:$0xff]  ;;  %v1225_v57 = vld [vmem:[#allocation2 + $0x200] sm:$0xff]  ;;  %v1226_v60 = vld [vmem:[#allocation2 + $0x208] sm:$0xff] }
 0x2c7   : > { %3013 = vrcp.f32 %v1227_v50  ;;  %v1247_v56 = vsub.f32 %v1227_v50, %v2618_v53  ;;  %v1228_v61 = vld [vmem:[#allocation2 + $0x218] sm:$0xff] }
 0x2d1   : > { %v3014_v51 = vpop.eup %3013 }
 0x2d2   : > { %v1230_v52 = vmul.f32 %v3014_v51, %v1227_v50 }
 0x2d4   : > { %v1231_v54 = vsub.f32 2.0, %v1230_v52 }
 0x2d6   : > { %v1232_v55 = vmul.f32 %v3014_v51, %v1231_v54 }
 0x2d8   : > { %v1252_v63 = vrot.slane %v1232_v55, %v3675_v29 }
 0x2da   : > { %v1253_v0 = vmul.f32 %v1252_v63, %v1225_v57  ;;  %v1254_v5 = vmul.f32 %v1252_v63, %v1226_v60  ;;  %v1255_v6 = vmul.f32 %v1252_v63, %v1247_v56  ;;  %v1256_v8 = vmul.f32 %v1252_v63, %v1228_v61 }
 0x2db LB: >> { %s2619_s7 = sshll.u32 %s3379_s26, 5  ;;  %s1262_s26 = sadd.s32 1, %s3379_s26   ;;  %s3379_s26 = sphi %s3377_s26, %s1262_s26  }
 0x2dc   : >> { %s1264_s6 = scalar_lea.vmem [#allocation2], %s2619_s7  ;;  %p1259_p10 = scmp.ge.s32.totalorder %s1262_s26, 33  }
 0x2dd   : >> { %v1267_v9 = vld [vmem:[%s1264_s6 + $0x10] sm:$0xff]  ;;  %v1265_v11 = vld [vmem:[%s1264_s6] sm:$0xff]  ;;  %v1266_v12 = vld [vmem:[%s1264_s6 + $0x8] sm:$0xff]  ;;  %vm1296_vm5 = vcmp.eq.s32.totalorder (%p1259_p10), %v3651_v3, 17  ;;  %s3381_s8 = smov (%p1259_p10), 0  }
 0x2de   : >> { %v1272_v10 = vrot.slane %v1267_v9, %v3675_v29  ;;  %v1268_v13 = vld [vmem:[%s1264_s6 + $0x18] sm:$0xff]  ;;  %v2620_v24 = vsel (%p1259_p10), %vm1296_vm5, 1.0, %v3447_v26 }
 0x2df   : > { %1261 = sbr.rel (!%p1259_p10) target bundleno = 731 (0x2db), region = 571 }
 0x2e0   : >> { %v1273_v14 = vmul.f32 %v1272_v10, %v1253_v0  ;;  %v1274_v15 = vmul.f32 %v1272_v10, %v1254_v5  ;;  %v1275_v16 = vmul.f32 %v1272_v10, %v1255_v6  ;;  %v1276_v17 = vmul.f32 %v1272_v10, %v1256_v8 }
 0x2e2   : >> { %v1277_v18 = vsub.f32 %v1265_v11, %v1273_v14  ;;  %v1278_v1 = vsub.f32 %v1266_v12, %v1274_v15  ;;  %v1279_v19 = vsub.f32 %v1267_v9, %v1275_v16  ;;  %v1280_v20 = vsub.f32 %v1268_v13, %v1276_v17 }
 0x2e4   : >> { %1281 = vst [vmem:[%s1264_s6] sm:$0xff] %v1277_v18  ;;  %1282 = vst [vmem:[%s1264_s6 + $0x8] sm:$0xff] %v1278_v1 }
 0x2e5   : >> { %1283 = vst [vmem:[%s1264_s6 + $0x10] sm:$0xff] %v1279_v19  ;;  %1284 = vst [vmem:[%s1264_s6 + $0x18] sm:$0xff] %v1280_v20 }
 0x2ec   : > { %v1288_v21 = vld [vmem:[#allocation2 + $0x230] sm:$0xff]  ;;  %v1286_v32 = vld [vmem:[#allocation2 + $0x220] sm:$0xff]  ;;  %v1287_v33 = vld [vmem:[#allocation2 + $0x228] sm:$0xff] }
 0x2ed   : > { %3015 = vrcp.f32 %v1288_v21  ;;  %v1308_v30 = vsub.f32 %v1288_v21, %v2620_v24  ;;  %v1289_v34 = vld [vmem:[#allocation2 + $0x238] sm:$0xff] }
 0x2f7   : > { %v3016_v22 = vpop.eup %3015 }
 0x2f8   : > { %v1291_v23 = vmul.f32 %v3016_v22, %v1288_v21 }
 0x2fa   : > { %v1292_v25 = vsub.f32 2.0, %v1291_v23 }
 0x2fc   : > { %v1293_v27 = vmul.f32 %v3016_v22, %v1292_v25 }
 0x2fe   : > { %v1313_v36 = vrot.slane %v1293_v27, %v3682_v58 }
 0x300   : > { %v1314_v37 = vmul.f32 %v1313_v36, %v1286_v32  ;;  %v1315_v2 = vmul.f32 %v1313_v36, %v1287_v33  ;;  %v1316_v38 = vmul.f32 %v1313_v36, %v1308_v30  ;;  %v1317_v39 = vmul.f32 %v1313_v36, %v1289_v34 }
 0x301 LB: >> { %s2621_s17 = sshll.u32 %s3383_s8, 5  ;;  %s1323_s8 = sadd.s32 1, %s3383_s8   ;;  %s3383_s8 = sphi %s3381_s8, %s1323_s8  }
 0x302   : >> { %s1325_s24 = scalar_lea.vmem [#allocation2], %s2621_s17  ;;  %p1320_p7 = scmp.ge.s32.totalorder %s1323_s8, 33  }
 0x303   : >> { %v1328_v40 = vld [vmem:[%s1325_s24 + $0x10] sm:$0xff]  ;;  %v1326_v42 = vld [vmem:[%s1325_s24] sm:$0xff]  ;;  %v1327_v43 = vld [vmem:[%s1325_s24 + $0x8] sm:$0xff]  ;;  %vm1357_vm6 = vcmp.eq.s32.totalorder (%p1320_p7), %v3651_v3, 18  ;;  %s3385_s4 = smov (%p1320_p7), 0  }
 0x304   : >> { %v1333_v41 = vrot.slane %v1328_v40, %v3682_v58  ;;  %v1329_v44 = vld [vmem:[%s1325_s24 + $0x18] sm:$0xff]  ;;  %v2622_v56 = vsel (%p1320_p7), %vm1357_vm6, 1.0, %v3447_v26 }
 0x305   : > { %1322 = sbr.rel (!%p1320_p7) target bundleno = 769 (0x301), region = 582 }
 0x306   : >> { %v1334_v45 = vmul.f32 %v1333_v41, %v1314_v37  ;;  %v1335_v46 = vmul.f32 %v1333_v41, %v1315_v2  ;;  %v1336_v47 = vmul.f32 %v1333_v41, %v1316_v38  ;;  %v1337_v48 = vmul.f32 %v1333_v41, %v1317_v39 }
 0x308   : >> { %v1338_v49 = vsub.f32 %v1326_v42, %v1334_v45  ;;  %v1339_v50 = vsub.f32 %v1327_v43, %v1335_v46  ;;  %v1340_v51 = vsub.f32 %v1328_v40, %v1336_v47  ;;  %v1341_v52 = vsub.f32 %v1329_v44, %v1337_v48 }
 0x30a   : >> { %1342 = vst [vmem:[%s1325_s24] sm:$0xff] %v1338_v49  ;;  %1343 = vst [vmem:[%s1325_s24 + $0x8] sm:$0xff] %v1339_v50 }
 0x30b   : >> { %1344 = vst [vmem:[%s1325_s24 + $0x10] sm:$0xff] %v1340_v51  ;;  %1345 = vst [vmem:[%s1325_s24 + $0x18] sm:$0xff] %v1341_v52 }
 0x312   : > { %v1349_v53 = vld [vmem:[#allocation2 + $0x250] sm:$0xff]  ;;  %v1347_v63 = vld [vmem:[#allocation2 + $0x240] sm:$0xff]  ;;  %v1348_v0 = vld [vmem:[#allocation2 + $0x248] sm:$0xff] }
 0x313   : > { %3017 = vrcp.f32 %v1349_v53  ;;  %v1369_v61 = vsub.f32 %v1349_v53, %v2622_v56  ;;  %v1350_v5 = vld [vmem:[#allocation2 + $0x258] sm:$0xff] }
 0x31d   : > { %v3018_v54 = vpop.eup %3017 }
 0x31e   : > { %v1352_v55 = vmul.f32 %v3018_v54, %v1349_v53 }
 0x320   : > { %v1353_v57 = vsub.f32 2.0, %v1352_v55 }
 0x322   : > { %v1354_v60 = vmul.f32 %v3018_v54, %v1353_v57 }
 0x324   : > { %v1374_v6 = vrot.slane %v1354_v60, %v3689_v28 }
 0x326   : > { %v1375_v8 = vmul.f32 %v1374_v6, %v1347_v63  ;;  %v1376_v9 = vmul.f32 %v1374_v6, %v1348_v0  ;;  %v1377_v10 = vmul.f32 %v1374_v6, %v1369_v61  ;;  %v1378_v11 = vmul.f32 %v1374_v6, %v1350_v5 }
 0x327 LB: >> { %s2623_s25 = sshll.u32 %s3387_s4, 5  ;;  %s1384_s4 = sadd.s32 1, %s3387_s4   ;;  %s3387_s4 = sphi %s3385_s4, %s1384_s4  }
 0x328   : >> { %s1386_s3 = scalar_lea.vmem [#allocation2], %s2623_s25  ;;  %p1381_p8 = scmp.ge.s32.totalorder %s1384_s4, 33  }
 0x329   : >> { %v1389_v12 = vld [vmem:[%s1386_s3 + $0x10] sm:$0xff]  ;;  %v1387_v14 = vld [vmem:[%s1386_s3] sm:$0xff]  ;;  %v1388_v15 = vld [vmem:[%s1386_s3 + $0x8] sm:$0xff]  ;;  %vm1418_vm7 = vcmp.eq.s32.totalorder (%p1381_p8), %v3651_v3, 19  ;;  %s3389_s23 = smov (%p1381_p8), 0  }
 0x32a   : >> { %v1394_v13 = vrot.slane %v1389_v12, %v3689_v28  ;;  %v1390_v16 = vld [vmem:[%s1386_s3 + $0x18] sm:$0xff]  ;;  %v2624_v30 = vsel (%p1381_p8), %vm1418_vm7, 1.0, %v3447_v26 }
 0x32b   : > { %1383 = sbr.rel (!%p1381_p8) target bundleno = 807 (0x327), region = 593 }
 0x32c   : >> { %v1395_v17 = vmul.f32 %v1394_v13, %v1375_v8  ;;  %v1396_v18 = vmul.f32 %v1394_v13, %v1376_v9  ;;  %v1397_v1 = vmul.f32 %v1394_v13, %v1377_v10  ;;  %v1398_v19 = vmul.f32 %v1394_v13, %v1378_v11 }
 0x32e   : >> { %v1399_v20 = vsub.f32 %v1387_v14, %v1395_v17  ;;  %v1400_v21 = vsub.f32 %v1388_v15, %v1396_v18  ;;  %v1401_v22 = vsub.f32 %v1389_v12, %v1397_v1  ;;  %v1402_v23 = vsub.f32 %v1390_v16, %v1398_v19 }
 0x330   : >> { %1403 = vst [vmem:[%s1386_s3] sm:$0xff] %v1399_v20  ;;  %1404 = vst [vmem:[%s1386_s3 + $0x8] sm:$0xff] %v1400_v21 }
 0x331   : >> { %1405 = vst [vmem:[%s1386_s3 + $0x10] sm:$0xff] %v1401_v22  ;;  %1406 = vst [vmem:[%s1386_s3 + $0x18] sm:$0xff] %v1402_v23 }
 0x338   : > { %v1410_v24 = vld [vmem:[#allocation2 + $0x270] sm:$0xff]  ;;  %v1408_v36 = vld [vmem:[#allocation2 + $0x260] sm:$0xff]  ;;  %v1409_v37 = vld [vmem:[#allocation2 + $0x268] sm:$0xff] }
 0x339   : > { %3019 = vrcp.f32 %v1410_v24  ;;  %v1430_v34 = vsub.f32 %v1410_v24, %v2624_v30  ;;  %v1411_v2 = vld [vmem:[#allocation2 + $0x278] sm:$0xff] }
 0x343   : > { %v3020_v25 = vpop.eup %3019 }
 0x344   : > { %v1413_v27 = vmul.f32 %v3020_v25, %v1410_v24 }
 0x346   : > { %v1414_v32 = vsub.f32 2.0, %v1413_v27 }
 0x348   : > { %v1415_v33 = vmul.f32 %v3020_v25, %v1414_v32 }
 0x34a   : > { %v1435_v38 = vrot.slane %v1415_v33, %v3696_v59 }
 0x34c   : > { %v1436_v39 = vmul.f32 %v1435_v38, %v1408_v36  ;;  %v1437_v40 = vmul.f32 %v1435_v38, %v1409_v37  ;;  %v1438_v41 = vmul.f32 %v1435_v38, %v1430_v34  ;;  %v1439_v42 = vmul.f32 %v1435_v38, %v1411_v2 }
 0x34d LB: >> { %s2625_s27 = sshll.u32 %s3391_s23, 5  ;;  %s1445_s23 = sadd.s32 1, %s3391_s23   ;;  %s3391_s23 = sphi %s3389_s23, %s1445_s23  }
 0x34e   : >> { %s1447_s5 = scalar_lea.vmem [#allocation2], %s2625_s27  ;;  %p1442_p9 = scmp.ge.s32.totalorder %s1445_s23, 33  }
 0x34f   : >> { %v1450_v43 = vld [vmem:[%s1447_s5 + $0x10] sm:$0xff]  ;;  %v1448_v45 = vld [vmem:[%s1447_s5] sm:$0xff]  ;;  %v1449_v46 = vld [vmem:[%s1447_s5 + $0x8] sm:$0xff]  ;;  %vm1479_vm8 = vcmp.eq.s32.totalorder (%p1442_p9), %v3651_v3, 20  ;;  %s3393_s16 = smov (%p1442_p9), 0  }
 0x350   : >> { %v1455_v44 = vrot.slane %v1450_v43, %v3696_v59  ;;  %v1451_v47 = vld [vmem:[%s1447_s5 + $0x18] sm:$0xff]  ;;  %v2626_v61 = vsel (%p1442_p9), %vm1479_vm8, 1.0, %v3447_v26 }
 0x351   : > { %1444 = sbr.rel (!%p1442_p9) target bundleno = 845 (0x34d), region = 604 }
 0x352   : >> { %v1456_v48 = vmul.f32 %v1455_v44, %v1436_v39  ;;  %v1457_v49 = vmul.f32 %v1455_v44, %v1437_v40  ;;  %v1458_v50 = vmul.f32 %v1455_v44, %v1438_v41  ;;  %v1459_v51 = vmul.f32 %v1455_v44, %v1439_v42 }
 0x354   : >> { %v1460_v52 = vsub.f32 %v1448_v45, %v1456_v48  ;;  %v1461_v53 = vsub.f32 %v1449_v46, %v1457_v49  ;;  %v1462_v54 = vsub.f32 %v1450_v43, %v1458_v50  ;;  %v1463_v55 = vsub.f32 %v1451_v47, %v1459_v51 }
 0x356   : >> { %1464 = vst [vmem:[%s1447_s5] sm:$0xff] %v1460_v52  ;;  %1465 = vst [vmem:[%s1447_s5 + $0x8] sm:$0xff] %v1461_v53 }
 0x357   : >> { %1466 = vst [vmem:[%s1447_s5 + $0x10] sm:$0xff] %v1462_v54  ;;  %1467 = vst [vmem:[%s1447_s5 + $0x18] sm:$0xff] %v1463_v55 }
 0x35e   : > { %v1471_v56 = vld [vmem:[#allocation2 + $0x290] sm:$0xff]  ;;  %v1469_v6 = vld [vmem:[#allocation2 + $0x280] sm:$0xff]  ;;  %v1470_v8 = vld [vmem:[#allocation2 + $0x288] sm:$0xff] }
 0x35f   : > { %3021 = vrcp.f32 %v1471_v56  ;;  %v1491_v5 = vsub.f32 %v1471_v56, %v2626_v61  ;;  %v1472_v9 = vld [vmem:[#allocation2 + $0x298] sm:$0xff] }
 0x369   : > { %v3022_v57 = vpop.eup %3021 }
 0x36a   : > { %v1474_v60 = vmul.f32 %v3022_v57, %v1471_v56 }
 0x36c   : > { %v1475_v63 = vsub.f32 2.0, %v1474_v60 }
 0x36e   : > { %v1476_v0 = vmul.f32 %v3022_v57, %v1475_v63 }
 0x370   : > { %v1496_v10 = vrot.slane %v1476_v0, %v3703_v31 }
 0x372   : > { %v1497_v11 = vmul.f32 %v1496_v10, %v1469_v6  ;;  %v1498_v12 = vmul.f32 %v1496_v10, %v1470_v8  ;;  %v1499_v13 = vmul.f32 %v1496_v10, %v1491_v5  ;;  %v1500_v14 = vmul.f32 %v1496_v10, %v1472_v9 }
 0x373 LB: >> { %s2627_s20 = sshll.u32 %s3395_s16, 5  ;;  %s1506_s16 = sadd.s32 1, %s3395_s16   ;;  %s3395_s16 = sphi %s3393_s16, %s1506_s16  }
 0x374   : >> { %s1508_s19 = scalar_lea.vmem [#allocation2], %s2627_s20  ;;  %p1503_p11 = scmp.ge.s32.totalorder %s1506_s16, 33  }
 0x375   : >> { %v1511_v15 = vld [vmem:[%s1508_s19 + $0x10] sm:$0xff]  ;;  %v1509_v17 = vld [vmem:[%s1508_s19] sm:$0xff]  ;;  %v1510_v18 = vld [vmem:[%s1508_s19 + $0x8] sm:$0xff]  ;;  %vm1540_vm9 = vcmp.eq.s32.totalorder (%p1503_p11), %v3651_v3, 21  ;;  %s3397_s28 = smov (%p1503_p11), 0  }
 0x376   : >> { %v1516_v16 = vrot.slane %v1511_v15, %v3703_v31  ;;  %v1512_v1 = vld [vmem:[%s1508_s19 + $0x18] sm:$0xff]  ;;  %v2628_v34 = vsel (%p1503_p11), %vm1540_vm9, 1.0, %v3447_v26 }
 0x377   : > { %1505 = sbr.rel (!%p1503_p11) target bundleno = 883 (0x373), region = 615 }
 0x378   : >> { %v1517_v19 = vmul.f32 %v1516_v16, %v1497_v11  ;;  %v1518_v20 = vmul.f32 %v1516_v16, %v1498_v12  ;;  %v1519_v21 = vmul.f32 %v1516_v16, %v1499_v13  ;;  %v1520_v22 = vmul.f32 %v1516_v16, %v1500_v14 }
 0x37a   : >> { %v1521_v23 = vsub.f32 %v1509_v17, %v1517_v19  ;;  %v1522_v24 = vsub.f32 %v1510_v18, %v1518_v20  ;;  %v1523_v25 = vsub.f32 %v1511_v15, %v1519_v21  ;;  %v1524_v27 = vsub.f32 %v1512_v1, %v1520_v22 }
 0x37c   : >> { %1525 = vst [vmem:[%s1508_s19] sm:$0xff] %v1521_v23  ;;  %1526 = vst [vmem:[%s1508_s19 + $0x8] sm:$0xff] %v1522_v24 }
 0x37d   : >> { %1527 = vst [vmem:[%s1508_s19 + $0x10] sm:$0xff] %v1523_v25  ;;  %1528 = vst [vmem:[%s1508_s19 + $0x18] sm:$0xff] %v1524_v27 }
 0x384   : > { %v1532_v30 = vld [vmem:[#allocation2 + $0x2b0] sm:$0xff]  ;;  %v1530_v38 = vld [vmem:[#allocation2 + $0x2a0] sm:$0xff]  ;;  %v1531_v39 = vld [vmem:[#allocation2 + $0x2a8] sm:$0xff] }
 0x385   : > { %3023 = vrcp.f32 %v1532_v30  ;;  %v1552_v2 = vsub.f32 %v1532_v30, %v2628_v34  ;;  %v1533_v40 = vld [vmem:[#allocation2 + $0x2b8] sm:$0xff] }
 0x38f   : > { %v3024_v32 = vpop.eup %3023 }
 0x390   : > { %v1535_v33 = vmul.f32 %v3024_v32, %v1532_v30 }
 0x392   : > { %v1536_v36 = vsub.f32 2.0, %v1535_v33 }
 0x394   : > { %v1537_v37 = vmul.f32 %v3024_v32, %v1536_v36 }
 0x396   : > { %v1557_v41 = vrot.slane %v1537_v37, %v3710_v62 }
 0x398   : > { %v1558_v42 = vmul.f32 %v1557_v41, %v1530_v38  ;;  %v1559_v43 = vmul.f32 %v1557_v41, %v1531_v39  ;;  %v1560_v44 = vmul.f32 %v1557_v41, %v1552_v2  ;;  %v1561_v45 = vmul.f32 %v1557_v41, %v1533_v40 }
 0x399 LB: >> { %s2629_s26 = sshll.u32 %s3399_s28, 5  ;;  %s1567_s28 = sadd.s32 1, %s3399_s28   ;;  %s3399_s28 = sphi %s3397_s28, %s1567_s28  }
 0x39a   : >> { %s1569_s7 = scalar_lea.vmem [#allocation2], %s2629_s26  ;;  %p1564_p0 = scmp.ge.s32.totalorder %s1567_s28, 33  }
 0x39b   : >> { %v1572_v46 = vld [vmem:[%s1569_s7 + $0x10] sm:$0xff]  ;;  %v1570_v48 = vld [vmem:[%s1569_s7] sm:$0xff]  ;;  %v1571_v49 = vld [vmem:[%s1569_s7 + $0x8] sm:$0xff]  ;;  %vm1601_vm10 = vcmp.eq.s32.totalorder (%p1564_p0), %v3651_v3, 22  ;;  %s3401_s6 = smov (%p1564_p0), 0  }
 0x39c   : >> { %v1577_v47 = vrot.slane %v1572_v46, %v3710_v62  ;;  %v1573_v50 = vld [vmem:[%s1569_s7 + $0x18] sm:$0xff]  ;;  %v2630_v5 = vsel (%p1564_p0), %vm1601_vm10, 1.0, %v3447_v26 }
 0x39d   : > { %1566 = sbr.rel (!%p1564_p0) target bundleno = 921 (0x399), region = 626 }
 0x39e   : >> { %v1578_v51 = vmul.f32 %v1577_v47, %v1558_v42  ;;  %v1579_v52 = vmul.f32 %v1577_v47, %v1559_v43  ;;  %v1580_v53 = vmul.f32 %v1577_v47, %v1560_v44  ;;  %v1581_v54 = vmul.f32 %v1577_v47, %v1561_v45 }
 0x3a0   : >> { %v1582_v55 = vsub.f32 %v1570_v48, %v1578_v51  ;;  %v1583_v56 = vsub.f32 %v1571_v49, %v1579_v52  ;;  %v1584_v57 = vsub.f32 %v1572_v46, %v1580_v53  ;;  %v1585_v60 = vsub.f32 %v1573_v50, %v1581_v54 }
 0x3a2   : >> { %1586 = vst [vmem:[%s1569_s7] sm:$0xff] %v1582_v55  ;;  %1587 = vst [vmem:[%s1569_s7 + $0x8] sm:$0xff] %v1583_v56 }
 0x3a3   : >> { %1588 = vst [vmem:[%s1569_s7 + $0x10] sm:$0xff] %v1584_v57  ;;  %1589 = vst [vmem:[%s1569_s7 + $0x18] sm:$0xff] %v1585_v60 }
 0x3aa   : > { %v1593_v61 = vld [vmem:[#allocation2 + $0x2d0] sm:$0xff]  ;;  %v1591_v10 = vld [vmem:[#allocation2 + $0x2c0] sm:$0xff]  ;;  %v1592_v11 = vld [vmem:[#allocation2 + $0x2c8] sm:$0xff] }
 0x3ab   : > { %3025 = vrcp.f32 %v1593_v61  ;;  %v1613_v9 = vsub.f32 %v1593_v61, %v2630_v5  ;;  %v1594_v12 = vld [vmem:[#allocation2 + $0x2d8] sm:$0xff] }
 0x3b5   : > { %v3026_v63 = vpop.eup %3025 }
 0x3b6   : > { %v1596_v0 = vmul.f32 %v3026_v63, %v1593_v61 }
 0x3b8   : > { %v1597_v6 = vsub.f32 2.0, %v1596_v0 }
 0x3ba   : > { %v1598_v8 = vmul.f32 %v3026_v63, %v1597_v6 }
 0x3bc   : > { %v1618_v13 = vrot.slane %v1598_v8, %v3717_v35 }
 0x3be   : > { %v1619_v14 = vmul.f32 %v1618_v13, %v1591_v10  ;;  %v1620_v15 = vmul.f32 %v1618_v13, %v1592_v11  ;;  %v1621_v16 = vmul.f32 %v1618_v13, %v1613_v9  ;;  %v1622_v17 = vmul.f32 %v1618_v13, %v1594_v12 }
 0x3bf LB: >> { %s2631_s8 = sshll.u32 %s3403_s6, 5  ;;  %s1628_s6 = sadd.s32 1, %s3403_s6   ;;  %s3403_s6 = sphi %s3401_s6, %s1628_s6  }
 0x3c0   : >> { %s1630_s17 = scalar_lea.vmem [#allocation2], %s2631_s8  ;;  %p1625_p4 = scmp.ge.s32.totalorder %s1628_s6, 33  }
 0x3c1   : >> { %v1633_v18 = vld [vmem:[%s1630_s17 + $0x10] sm:$0xff]  ;;  %v1631_v19 = vld [vmem:[%s1630_s17] sm:$0xff]  ;;  %v1632_v20 = vld [vmem:[%s1630_s17 + $0x8] sm:$0xff]  ;;  %vm1662_vm11 = vcmp.eq.s32.totalorder (%p1625_p4), %v3651_v3, 23  ;;  %s3405_s24 = smov (%p1625_p4), 0  }
 0x3c2   : >> { %v1638_v1 = vrot.slane %v1633_v18, %v3717_v35  ;;  %v1634_v21 = vld [vmem:[%s1630_s17 + $0x18] sm:$0xff]  ;;  %v2632_v2 = vsel (%p1625_p4), %vm1662_vm11, 1.0, %v3447_v26 }
 0x3c3   : > { %1627 = sbr.rel (!%p1625_p4) target bundleno = 959 (0x3bf), region = 637 }
 0x3c4   : >> { %v1639_v22 = vmul.f32 %v1638_v1, %v1619_v14  ;;  %v1640_v23 = vmul.f32 %v1638_v1, %v1620_v15  ;;  %v1641_v24 = vmul.f32 %v1638_v1, %v1621_v16  ;;  %v1642_v25 = vmul.f32 %v1638_v1, %v1622_v17 }
 0x3c6   : >> { %v1643_v27 = vsub.f32 %v1631_v19, %v1639_v22  ;;  %v1644_v30 = vsub.f32 %v1632_v20, %v1640_v23  ;;  %v1645_v32 = vsub.f32 %v1633_v18, %v1641_v24  ;;  %v1646_v33 = vsub.f32 %v1634_v21, %v1642_v25 }
 0x3c8   : >> { %1647 = vst [vmem:[%s1630_s17] sm:$0xff] %v1643_v27  ;;  %1648 = vst [vmem:[%s1630_s17 + $0x8] sm:$0xff] %v1644_v30 }
 0x3c9   : >> { %1649 = vst [vmem:[%s1630_s17 + $0x10] sm:$0xff] %v1645_v32  ;;  %1650 = vst [vmem:[%s1630_s17 + $0x18] sm:$0xff] %v1646_v33 }
 0x3d0   : > { %v1654_v34 = vld [vmem:[#allocation2 + $0x2f0] sm:$0xff]  ;;  %v1652_v41 = vld [vmem:[#allocation2 + $0x2e0] sm:$0xff]  ;;  %v1653_v42 = vld [vmem:[#allocation2 + $0x2e8] sm:$0xff] }
 0x3d1   : > { %3027 = vrcp.f32 %v1654_v34  ;;  %v1674_v40 = vsub.f32 %v1654_v34, %v2632_v2  ;;  %v1655_v43 = vld [vmem:[#allocation2 + $0x2f8] sm:$0xff] }
 0x3db   : > { %v3028_v36 = vpop.eup %3027 }
 0x3dc   : > { %v1657_v37 = vmul.f32 %v3028_v36, %v1654_v34 }
 0x3de   : > { %v1658_v38 = vsub.f32 2.0, %v1657_v37 }
 0x3e0   : > { %v1659_v39 = vmul.f32 %v3028_v36, %v1658_v38 }
 0x3e2   : > { %v1679_v44 = vrot.slane %v1659_v39, %v3724_v7 }
 0x3e4   : > { %v1680_v45 = vmul.f32 %v1679_v44, %v1652_v41  ;;  %v1681_v46 = vmul.f32 %v1679_v44, %v1653_v42  ;;  %v1682_v47 = vmul.f32 %v1679_v44, %v1674_v40  ;;  %v1683_v48 = vmul.f32 %v1679_v44, %v1655_v43 }
 0x3e5 LB: >> { %s2633_s4 = sshll.u32 %s3407_s24, 5  ;;  %s1689_s24 = sadd.s32 1, %s3407_s24   ;;  %s3407_s24 = sphi %s3405_s24, %s1689_s24  }
 0x3e6   : >> { %s1691_s25 = scalar_lea.vmem [#allocation2], %s2633_s4  ;;  %p1686_p1 = scmp.ge.s32.totalorder %s1689_s24, 33  }
 0x3e7   : >> { %v1694_v3 = vld [vmem:[%s1691_s25 + $0x10] sm:$0xff]  ;;  %v1692_v50 = vld [vmem:[%s1691_s25] sm:$0xff]  ;;  %v1693_v51 = vld [vmem:[%s1691_s25 + $0x8] sm:$0xff]  ;;  %vm1724_vm12 = vcmp.eq.s32.totalorder (%p1686_p1), %v3654_v4, 24  ;;  %s3409_s3 = smov (%p1686_p1), 0  }
 0x3e8   : >> { %v1699_v49 = vrot.slane %v1694_v3, %v3724_v7  ;;  %v1695_v52 = vld [vmem:[%s1691_s25 + $0x18] sm:$0xff]  ;;  %v2634_v8 = vsel (%p1686_p1), %vm1724_vm12, 1.0, %v3447_v26 }
 0x3e9   : > { %1688 = sbr.rel (!%p1686_p1) target bundleno = 997 (0x3e5), region = 648 }
 0x3ea   : >> { %v1700_v53 = vmul.f32 %v1699_v49, %v1680_v45  ;;  %v1701_v54 = vmul.f32 %v1699_v49, %v1681_v46  ;;  %v1702_v55 = vmul.f32 %v1699_v49, %v1682_v47  ;;  %v1703_v56 = vmul.f32 %v1699_v49, %v1683_v48 }
 0x3ec   : >> { %v1704_v57 = vsub.f32 %v1692_v50, %v1700_v53  ;;  %v1705_v60 = vsub.f32 %v1693_v51, %v1701_v54  ;;  %v1706_v61 = vsub.f32 %v1694_v3, %v1702_v55  ;;  %v1707_v63 = vsub.f32 %v1695_v52, %v1703_v56 }
 0x3ee   : >> { %1708 = vst [vmem:[%s1691_s25] sm:$0xff] %v1704_v57  ;;  %1709 = vst [vmem:[%s1691_s25 + $0x8] sm:$0xff] %v1705_v60 }
 0x3ef   : >> { %1710 = vst [vmem:[%s1691_s25 + $0x10] sm:$0xff] %v1706_v61  ;;  %1711 = vst [vmem:[%s1691_s25 + $0x18] sm:$0xff] %v1707_v63 }
 0x3f6   : > { %v1716_v0 = vld [vmem:[#allocation2 + $0x318] sm:$0xff]  ;;  %v1713_v12 = vld [vmem:[#allocation2 + $0x300] sm:$0xff]  ;;  %v1714_v13 = vld [vmem:[#allocation2 + $0x308] sm:$0xff] }
 0x3f7   : > { %3029 = vrcp.f32 %v1716_v0  ;;  %v1736_v11 = vsub.f32 %v1716_v0, %v2634_v8  ;;  %v1715_v14 = vld [vmem:[#allocation2 + $0x310] sm:$0xff] }
 0x401   : > { %v3030_v5 = vpop.eup %3029 }
 0x402   : > { %v1718_v6 = vmul.f32 %v3030_v5, %v1716_v0 }
 0x404   : > { %v1719_v9 = vsub.f32 2.0, %v1718_v6 }
 0x406   : > { %v1720_v10 = vmul.f32 %v3030_v5, %v1719_v9 }
 0x408   : > { %v1740_v15 = vrot.slane %v1720_v10, %v3675_v29 }
 0x40a   : > { %v1741_v16 = vmul.f32 %v1740_v15, %v1713_v12  ;;  %v1742_v17 = vmul.f32 %v1740_v15, %v1714_v13  ;;  %v1743_v18 = vmul.f32 %v1740_v15, %v1715_v14  ;;  %v1744_v1 = vmul.f32 %v1740_v15, %v1736_v11 }
 0x40b LB: >> { %s2635_s23 = sshll.u32 %s3411_s3, 5  ;;  %s1750_s3 = sadd.s32 1, %s3411_s3   ;;  %s3411_s3 = sphi %s3409_s3, %s1750_s3  }
 0x40c   : >> { %s1752_s27 = scalar_lea.vmem [#allocation2], %s2635_s23  ;;  %p1747_p3 = scmp.ge.s32.totalorder %s1750_s3, 33  }
 0x40d   : >> { %v1756_v19 = vld [vmem:[%s1752_s27 + $0x18] sm:$0xff]  ;;  %v1753_v21 = vld [vmem:[%s1752_s27] sm:$0xff]  ;;  %v1754_v22 = vld [vmem:[%s1752_s27 + $0x8] sm:$0xff]  ;;  %vm1785_vm13 = vcmp.eq.s32.totalorder (%p1747_p3), %v3654_v4, 25  ;;  %s3413_s5 = smov (%p1747_p3), 0  }
 0x40e   : >> { %v1760_v20 = vrot.slane %v1756_v19, %v3675_v29  ;;  %v1755_v23 = vld [vmem:[%s1752_s27 + $0x10] sm:$0xff]  ;;  %v2636_v39 = vsel (%p1747_p3), %vm1785_vm13, 1.0, %v3447_v26 }
 0x40f   : > { %1749 = sbr.rel (!%p1747_p3) target bundleno = 1035 (0x40b), region = 659 }
 0x410   : >> { %v1761_v24 = vmul.f32 %v1760_v20, %v1741_v16  ;;  %v1762_v25 = vmul.f32 %v1760_v20, %v1742_v17  ;;  %v1763_v27 = vmul.f32 %v1760_v20, %v1743_v18  ;;  %v1764_v30 = vmul.f32 %v1760_v20, %v1744_v1 }
 0x412   : >> { %v1765_v32 = vsub.f32 %v1753_v21, %v1761_v24  ;;  %v1766_v33 = vsub.f32 %v1754_v22, %v1762_v25  ;;  %v1767_v34 = vsub.f32 %v1755_v23, %v1763_v27  ;;  %v1768_v36 = vsub.f32 %v1756_v19, %v1764_v30 }
 0x414   : >> { %1769 = vst [vmem:[%s1752_s27] sm:$0xff] %v1765_v32  ;;  %1770 = vst [vmem:[%s1752_s27 + $0x8] sm:$0xff] %v1766_v33 }
 0x415   : >> { %1771 = vst [vmem:[%s1752_s27 + $0x10] sm:$0xff] %v1767_v34  ;;  %1772 = vst [vmem:[%s1752_s27 + $0x18] sm:$0xff] %v1768_v36 }
 0x41c   : > { %v1777_v37 = vld [vmem:[#allocation2 + $0x338] sm:$0xff]  ;;  %v1774_v43 = vld [vmem:[#allocation2 + $0x320] sm:$0xff]  ;;  %v1775_v44 = vld [vmem:[#allocation2 + $0x328] sm:$0xff] }
 0x41d   : > { %3031 = vrcp.f32 %v1777_v37  ;;  %v1797_v42 = vsub.f32 %v1777_v37, %v2636_v39  ;;  %v1776_v45 = vld [vmem:[#allocation2 + $0x330] sm:$0xff] }
 0x427   : > { %v3032_v2 = vpop.eup %3031 }
 0x428   : > { %v1779_v38 = vmul.f32 %v3032_v2, %v1777_v37 }
 0x42a   : > { %v1780_v40 = vsub.f32 2.0, %v1779_v38 }
 0x42c   : > { %v1781_v41 = vmul.f32 %v3032_v2, %v1780_v40 }
 0x42e   : > { %v1801_v46 = vrot.slane %v1781_v41, %v3682_v58 }
 0x430   : > { %v1802_v47 = vmul.f32 %v1801_v46, %v1774_v43  ;;  %v1803_v48 = vmul.f32 %v1801_v46, %v1775_v44  ;;  %v1804_v3 = vmul.f32 %v1801_v46, %v1776_v45  ;;  %v1805_v49 = vmul.f32 %v1801_v46, %v1797_v42 }
 0x431 LB: >> { %s2637_s16 = sshll.u32 %s3415_s5, 5  ;;  %s1811_s5 = sadd.s32 1, %s3415_s5   ;;  %s3415_s5 = sphi %s3413_s5, %s1811_s5  }
 0x432   : >> { %s1813_s20 = scalar_lea.vmem [#allocation2], %s2637_s16  ;;  %p1808_p5 = scmp.ge.s32.totalorder %s1811_s5, 33  }
 0x433   : >> { %v1817_v29 = vld [vmem:[%s1813_s20 + $0x18] sm:$0xff]  ;;  %v1814_v51 = vld [vmem:[%s1813_s20] sm:$0xff]  ;;  %v1815_v52 = vld [vmem:[%s1813_s20 + $0x8] sm:$0xff]  ;;  %vm1846_vm14 = vcmp.eq.s32.totalorder (%p1808_p5), %v3654_v4, 26  ;;  %s3417_s19 = smov (%p1808_p5), 0  }
 0x434   : >> { %v1821_v50 = vrot.slane %v1817_v29, %v3682_v58  ;;  %v1816_v53 = vld [vmem:[%s1813_s20 + $0x10] sm:$0xff]  ;;  %v2638_v9 = vsel (%p1808_p5), %vm1846_vm14, 1.0, %v3447_v26 }
 0x435   : > { %1810 = sbr.rel (!%p1808_p5) target bundleno = 1073 (0x431), region = 670 }
 0x436   : >> { %v1822_v54 = vmul.f32 %v1821_v50, %v1802_v47  ;;  %v1823_v55 = vmul.f32 %v1821_v50, %v1803_v48  ;;  %v1824_v56 = vmul.f32 %v1821_v50, %v1804_v3  ;;  %v1825_v57 = vmul.f32 %v1821_v50, %v1805_v49 }
 0x438   : >> { %v1826_v60 = vsub.f32 %v1814_v51, %v1822_v54  ;;  %v1827_v61 = vsub.f32 %v1815_v52, %v1823_v55  ;;  %v1828_v63 = vsub.f32 %v1816_v53, %v1824_v56  ;;  %v1829_v0 = vsub.f32 %v1817_v29, %v1825_v57 }
 0x43a   : >> { %1830 = vst [vmem:[%s1813_s20] sm:$0xff] %v1826_v60  ;;  %1831 = vst [vmem:[%s1813_s20 + $0x8] sm:$0xff] %v1827_v61 }
 0x43b   : >> { %1832 = vst [vmem:[%s1813_s20 + $0x10] sm:$0xff] %v1828_v63  ;;  %1833 = vst [vmem:[%s1813_s20 + $0x18] sm:$0xff] %v1829_v0 }
 0x442   : > { %v1838_v5 = vld [vmem:[#allocation2 + $0x358] sm:$0xff]  ;;  %v1835_v13 = vld [vmem:[#allocation2 + $0x340] sm:$0xff]  ;;  %v1836_v14 = vld [vmem:[#allocation2 + $0x348] sm:$0xff] }
 0x443   : > { %3033 = vrcp.f32 %v1838_v5  ;;  %v1858_v12 = vsub.f32 %v1838_v5, %v2638_v9  ;;  %v1837_v15 = vld [vmem:[#allocation2 + $0x350] sm:$0xff] }
 0x44d   : > { %v3034_v6 = vpop.eup %3033 }
 0x44e   : > { %v1840_v8 = vmul.f32 %v3034_v6, %v1838_v5 }
 0x450   : > { %v1841_v10 = vsub.f32 2.0, %v1840_v8 }
 0x452   : > { %v1842_v11 = vmul.f32 %v3034_v6, %v1841_v10 }
 0x454   : > { %v1862_v16 = vrot.slane %v1842_v11, %v3689_v28 }
 0x456   : > { %v1863_v17 = vmul.f32 %v1862_v16, %v1835_v13  ;;  %v1864_v18 = vmul.f32 %v1862_v16, %v1836_v14  ;;  %v1865_v1 = vmul.f32 %v1862_v16, %v1837_v15  ;;  %v1866_v19 = vmul.f32 %v1862_v16, %v1858_v12 }
 0x457 LB: >> { %s2639_s28 = sshll.u32 %s3419_s19, 5  ;;  %s1872_s19 = sadd.s32 1, %s3419_s19   ;;  %s3419_s19 = sphi %s3417_s19, %s1872_s19  }
 0x458   : >> { %s1874_s26 = scalar_lea.vmem [#allocation2], %s2639_s28  ;;  %p1869_p6 = scmp.ge.s32.totalorder %s1872_s19, 33  }
 0x459   : >> { %v1878_v58 = vld [vmem:[%s1874_s26 + $0x18] sm:$0xff]  ;;  %v1875_v21 = vld [vmem:[%s1874_s26] sm:$0xff]  ;;  %v1876_v22 = vld [vmem:[%s1874_s26 + $0x8] sm:$0xff]  ;;  %vm1907_vm15 = vcmp.eq.s32.totalorder (%p1869_p6), %v3654_v4, 27  ;;  %s3421_s7 = smov (%p1869_p6), 0  }
 0x45a   : >> { %v1882_v20 = vrot.slane %v1878_v58, %v3689_v28  ;;  %v1877_v23 = vld [vmem:[%s1874_s26 + $0x10] sm:$0xff]  ;;  %v2640_v39 = vsel (%p1869_p6), %vm1907_vm15, 1.0, %v3447_v26 }
 0x45b   : > { %1871 = sbr.rel (!%p1869_p6) target bundleno = 1111 (0x457), region = 681 }
 0x45c   : >> { %v1883_v24 = vmul.f32 %v1882_v20, %v1863_v17  ;;  %v1884_v25 = vmul.f32 %v1882_v20, %v1864_v18  ;;  %v1885_v27 = vmul.f32 %v1882_v20, %v1865_v1  ;;  %v1886_v30 = vmul.f32 %v1882_v20, %v1866_v19 }
 0x45e   : >> { %v1887_v32 = vsub.f32 %v1875_v21, %v1883_v24  ;;  %v1888_v33 = vsub.f32 %v1876_v22, %v1884_v25  ;;  %v1889_v34 = vsub.f32 %v1877_v23, %v1885_v27  ;;  %v1890_v36 = vsub.f32 %v1878_v58, %v1886_v30 }
 0x460   : >> { %1891 = vst [vmem:[%s1874_s26] sm:$0xff] %v1887_v32  ;;  %1892 = vst [vmem:[%s1874_s26 + $0x8] sm:$0xff] %v1888_v33 }
 0x461   : >> { %1893 = vst [vmem:[%s1874_s26 + $0x10] sm:$0xff] %v1889_v34  ;;  %1894 = vst [vmem:[%s1874_s26 + $0x18] sm:$0xff] %v1890_v36 }
 0x468   : > { %v1899_v37 = vld [vmem:[#allocation2 + $0x378] sm:$0xff]  ;;  %v1896_v43 = vld [vmem:[#allocation2 + $0x360] sm:$0xff]  ;;  %v1897_v44 = vld [vmem:[#allocation2 + $0x368] sm:$0xff] }
 0x469   : > { %3035 = vrcp.f32 %v1899_v37  ;;  %v1919_v42 = vsub.f32 %v1899_v37, %v2640_v39  ;;  %v1898_v45 = vld [vmem:[#allocation2 + $0x370] sm:$0xff] }
 0x473   : > { %v3036_v2 = vpop.eup %3035 }
 0x474   : > { %v1901_v38 = vmul.f32 %v3036_v2, %v1899_v37 }
 0x476   : > { %v1902_v40 = vsub.f32 2.0, %v1901_v38 }
 0x478   : > { %v1903_v41 = vmul.f32 %v3036_v2, %v1902_v40 }
 0x47a   : > { %v1923_v46 = vrot.slane %v1903_v41, %v3696_v59 }
 0x47c   : > { %v1924_v47 = vmul.f32 %v1923_v46, %v1896_v43  ;;  %v1925_v48 = vmul.f32 %v1923_v46, %v1897_v44  ;;  %v1926_v3 = vmul.f32 %v1923_v46, %v1898_v45  ;;  %v1927_v49 = vmul.f32 %v1923_v46, %v1919_v42 }
 0x47d LB: >> { %s2641_s6 = sshll.u32 %s3423_s7, 5  ;;  %s1933_s7 = sadd.s32 1, %s3423_s7   ;;  %s3423_s7 = sphi %s3421_s7, %s1933_s7  }
 0x47e   : >> { %s1935_s8 = scalar_lea.vmem [#allocation2], %s2641_s6  ;;  %p1930_p13 = scmp.ge.s32.totalorder %s1933_s7, 33  }
 0x47f   : >> { %v1939_v28 = vld [vmem:[%s1935_s8 + $0x18] sm:$0xff]  ;;  %v1936_v50 = vld [vmem:[%s1935_s8] sm:$0xff]  ;;  %v1937_v51 = vld [vmem:[%s1935_s8 + $0x8] sm:$0xff]  ;;  %vm1968_vm0 = vcmp.eq.s32.totalorder (%p1930_p13), %v3654_v4, 28  ;;  %s3425_s17 = smov (%p1930_p13), 0  }
 0x480   : >> { %v1943_v29 = vrot.slane %v1939_v28, %v3696_v59  ;;  %v1938_v52 = vld [vmem:[%s1935_s8 + $0x10] sm:$0xff]  ;;  %v2642_v8 = vsel (%p1930_p13), %vm1968_vm0, 1.0, %v3447_v26 }
 0x481   : > { %1932 = sbr.rel (!%p1930_p13) target bundleno = 1149 (0x47d), region = 692 }
 0x482   : >> { %v1944_v53 = vmul.f32 %v1943_v29, %v1924_v47  ;;  %v1945_v54 = vmul.f32 %v1943_v29, %v1925_v48  ;;  %v1946_v55 = vmul.f32 %v1943_v29, %v1926_v3  ;;  %v1947_v56 = vmul.f32 %v1943_v29, %v1927_v49 }
 0x484   : >> { %v1948_v57 = vsub.f32 %v1936_v50, %v1944_v53  ;;  %v1949_v60 = vsub.f32 %v1937_v51, %v1945_v54  ;;  %v1950_v61 = vsub.f32 %v1938_v52, %v1946_v55  ;;  %v1951_v63 = vsub.f32 %v1939_v28, %v1947_v56 }
 0x486   : >> { %1952 = vst [vmem:[%s1935_s8] sm:$0xff] %v1948_v57  ;;  %1953 = vst [vmem:[%s1935_s8 + $0x8] sm:$0xff] %v1949_v60 }
 0x487   : >> { %1954 = vst [vmem:[%s1935_s8 + $0x10] sm:$0xff] %v1950_v61  ;;  %1955 = vst [vmem:[%s1935_s8 + $0x18] sm:$0xff] %v1951_v63 }
 0x48e   : > { %v1960_v0 = vld [vmem:[#allocation2 + $0x398] sm:$0xff]  ;;  %v1957_v12 = vld [vmem:[#allocation2 + $0x380] sm:$0xff]  ;;  %v1958_v13 = vld [vmem:[#allocation2 + $0x388] sm:$0xff] }
 0x48f   : > { %3037 = vrcp.f32 %v1960_v0  ;;  %v1980_v11 = vsub.f32 %v1960_v0, %v2642_v8  ;;  %v1959_v14 = vld [vmem:[#allocation2 + $0x390] sm:$0xff] }
 0x499   : > { %v3038_v5 = vpop.eup %3037 }
 0x49a   : > { %v1962_v6 = vmul.f32 %v3038_v5, %v1960_v0 }
 0x49c   : > { %v1963_v9 = vsub.f32 2.0, %v1962_v6 }
 0x49e   : > { %v1964_v10 = vmul.f32 %v3038_v5, %v1963_v9 }
 0x4a0   : > { %v1984_v15 = vrot.slane %v1964_v10, %v3703_v31 }
 0x4a2   : > { %v1985_v16 = vmul.f32 %v1984_v15, %v1957_v12  ;;  %v1986_v17 = vmul.f32 %v1984_v15, %v1958_v13  ;;  %v1987_v18 = vmul.f32 %v1984_v15, %v1959_v14  ;;  %v1988_v1 = vmul.f32 %v1984_v15, %v1980_v11 }
 0x4a3 LB: >> { %s2643_s24 = sshll.u32 %s3427_s17, 5  ;;  %s1994_s17 = sadd.s32 1, %s3427_s17   ;;  %s3427_s17 = sphi %s3425_s17, %s1994_s17  }
 0x4a4   : >> { %s1996_s4 = scalar_lea.vmem [#allocation2], %s2643_s24  ;;  %p1991_p2 = scmp.ge.s32.totalorder %s1994_s17, 33  }
 0x4a5   : >> { %v2000_v59 = vld [vmem:[%s1996_s4 + $0x18] sm:$0xff]  ;;  %v1997_v58 = vld [vmem:[%s1996_s4] sm:$0xff]  ;;  %v1998_v20 = vld [vmem:[%s1996_s4 + $0x8] sm:$0xff]  ;;  %vm2029_vm1 = vcmp.eq.s32.totalorder (%p1991_p2), %v3654_v4, 29  ;;  %s3429_s25 = smov (%p1991_p2), 0  }
 0x4a6   : >> { %v2004_v19 = vrot.slane %v2000_v59, %v3703_v31  ;;  %v1999_v21 = vld [vmem:[%s1996_s4 + $0x10] sm:$0xff]  ;;  %v2644_v2 = vsel (%p1991_p2), %vm2029_vm1, 1.0, %v3447_v26 }
 0x4a7   : > { %1993 = sbr.rel (!%p1991_p2) target bundleno = 1187 (0x4a3), region = 703 }
 0x4a8   : >> { %v2005_v22 = vmul.f32 %v2004_v19, %v1985_v16  ;;  %v2006_v23 = vmul.f32 %v2004_v19, %v1986_v17  ;;  %v2007_v24 = vmul.f32 %v2004_v19, %v1987_v18  ;;  %v2008_v25 = vmul.f32 %v2004_v19, %v1988_v1 }
 0x4aa   : >> { %v2009_v27 = vsub.f32 %v1997_v58, %v2005_v22  ;;  %v2010_v30 = vsub.f32 %v1998_v20, %v2006_v23  ;;  %v2011_v32 = vsub.f32 %v1999_v21, %v2007_v24  ;;  %v2012_v33 = vsub.f32 %v2000_v59, %v2008_v25 }
 0x4ac   : >> { %2013 = vst [vmem:[%s1996_s4] sm:$0xff] %v2009_v27  ;;  %2014 = vst [vmem:[%s1996_s4 + $0x8] sm:$0xff] %v2010_v30 }
 0x4ad   : >> { %2015 = vst [vmem:[%s1996_s4 + $0x10] sm:$0xff] %v2011_v32  ;;  %2016 = vst [vmem:[%s1996_s4 + $0x18] sm:$0xff] %v2012_v33 }
 0x4b4   : > { %v2021_v34 = vld [vmem:[#allocation2 + $0x3b8] sm:$0xff]  ;;  %v2018_v41 = vld [vmem:[#allocation2 + $0x3a0] sm:$0xff]  ;;  %v2019_v42 = vld [vmem:[#allocation2 + $0x3a8] sm:$0xff] }
 0x4b5   : > { %3039 = vrcp.f32 %v2021_v34  ;;  %v2041_v40 = vsub.f32 %v2021_v34, %v2644_v2  ;;  %v2020_v43 = vld [vmem:[#allocation2 + $0x3b0] sm:$0xff] }
 0x4bf   : > { %v3040_v36 = vpop.eup %3039 }
 0x4c0   : > { %v2023_v37 = vmul.f32 %v3040_v36, %v2021_v34 }
 0x4c2   : > { %v2024_v38 = vsub.f32 2.0, %v2023_v37 }
 0x4c4   : > { %v2025_v39 = vmul.f32 %v3040_v36, %v2024_v38 }
 0x4c6   : > { %v2045_v44 = vrot.slane %v2025_v39, %v3710_v62 }
 0x4c8   : > { %v2046_v45 = vmul.f32 %v2045_v44, %v2018_v41  ;;  %v2047_v46 = vmul.f32 %v2045_v44, %v2019_v42  ;;  %v2048_v47 = vmul.f32 %v2045_v44, %v2020_v43  ;;  %v2049_v48 = vmul.f32 %v2045_v44, %v2041_v40 }
 0x4c9 LB: >> { %s2645_s3 = sshll.u32 %s3431_s25, 5  ;;  %s2055_s25 = sadd.s32 1, %s3431_s25   ;;  %s3431_s25 = sphi %s3429_s25, %s2055_s25  }
 0x4ca   : >> { %s2057_s23 = scalar_lea.vmem [#allocation2], %s2645_s3  ;;  %p2052_p12 = scmp.ge.s32.totalorder %s2055_s25, 33  }
 0x4cb   : >> { %v2061_v31 = vld [vmem:[%s2057_s23 + $0x18] sm:$0xff]  ;;  %v2058_v49 = vld [vmem:[%s2057_s23] sm:$0xff]  ;;  %v2059_v28 = vld [vmem:[%s2057_s23 + $0x8] sm:$0xff]  ;;  %vm2090_vm2 = vcmp.eq.s32.totalorder (%p2052_p12), %v3654_v4, 30  ;;  %s3433_s27 = smov (%p2052_p12), 0  }
 0x4cc   : >> { %v2065_v3 = vrot.slane %v2061_v31, %v3710_v62  ;;  %v2060_v29 = vld [vmem:[%s2057_s23 + $0x10] sm:$0xff]  ;;  %v2646_v0 = vsel (%p2052_p12), %vm2090_vm2, 1.0, %v3447_v26 }
 0x4cd   : > { %2054 = sbr.rel (!%p2052_p12) target bundleno = 1225 (0x4c9), region = 714 }
 0x4ce   : >> { %v2066_v50 = vmul.f32 %v2065_v3, %v2046_v45  ;;  %v2067_v51 = vmul.f32 %v2065_v3, %v2047_v46  ;;  %v2068_v52 = vmul.f32 %v2065_v3, %v2048_v47  ;;  %v2069_v53 = vmul.f32 %v2065_v3, %v2049_v48 }
 0x4d0   : >> { %v2070_v54 = vsub.f32 %v2058_v49, %v2066_v50  ;;  %v2071_v55 = vsub.f32 %v2059_v28, %v2067_v51  ;;  %v2072_v56 = vsub.f32 %v2060_v29, %v2068_v52  ;;  %v2073_v57 = vsub.f32 %v2061_v31, %v2069_v53 }
 0x4d2   : >> { %2074 = vst [vmem:[%s2057_s23] sm:$0xff] %v2070_v54  ;;  %2075 = vst [vmem:[%s2057_s23 + $0x8] sm:$0xff] %v2071_v55 }
 0x4d3   : >> { %2076 = vst [vmem:[%s2057_s23 + $0x10] sm:$0xff] %v2072_v56  ;;  %2077 = vst [vmem:[%s2057_s23 + $0x18] sm:$0xff] %v2073_v57 }
 0x4da   : > { %v2082_v60 = vld [vmem:[#allocation2 + $0x3d8] sm:$0xff]  ;;  %v2079_v9 = vld [vmem:[#allocation2 + $0x3c0] sm:$0xff]  ;;  %v2080_v10 = vld [vmem:[#allocation2 + $0x3c8] sm:$0xff] }
 0x4db   : > { %3041 = vrcp.f32 %v2082_v60  ;;  %v2102_v8 = vsub.f32 %v2082_v60, %v2646_v0  ;;  %v2081_v11 = vld [vmem:[#allocation2 + $0x3d0] sm:$0xff] }
 0x4e5   : > { %v3042_v61 = vpop.eup %3041 }
 0x4e6   : > { %v2084_v63 = vmul.f32 %v3042_v61, %v2082_v60 }
 0x4e8   : > { %v2085_v5 = vsub.f32 2.0, %v2084_v63 }
 0x4ea   : > { %v2086_v6 = vmul.f32 %v3042_v61, %v2085_v5 }
 0x4ec   : > { %v2106_v12 = vrot.slane %v2086_v6, %v3717_v35 }
 0x4ee   : > { %v2107_v13 = vmul.f32 %v2106_v12, %v2079_v9  ;;  %v2108_v14 = vmul.f32 %v2106_v12, %v2080_v10  ;;  %v2109_v15 = vmul.f32 %v2106_v12, %v2081_v11  ;;  %v2110_v16 = vmul.f32 %v2106_v12, %v2102_v8 }
 0x4ef LB: >> { %s2647_s5 = sshll.u32 %s3435_s27, 5  ;;  %s2116_s27 = sadd.s32 1, %s3435_s27   ;;  %s3435_s27 = sphi %s3433_s27, %s2116_s27  }
 0x4f0   : >> { %s2118_s16 = scalar_lea.vmem [#allocation2], %s2647_s5  ;;  %p2113_p10 = scmp.ge.s32.totalorder %s2116_s27, 33  }
 0x4f1   : >> { %v2122_v62 = vld [vmem:[%s2118_s16 + $0x18] sm:$0xff]  ;;  %v2119_v18 = vld [vmem:[%s2118_s16] sm:$0xff]  ;;  %v2120_v1 = vld [vmem:[%s2118_s16 + $0x8] sm:$0xff]  ;;  %vm2151_vm3 = vcmp.eq.s32.totalorder (%p2113_p10), %v3654_v4, 31  ;;  %s3437_s20 = smov (%p2113_p10), 0  }
 0x4f2   : >> { %v2126_v17 = vrot.slane %v2122_v62, %v3717_v35  ;;  %v2121_v59 = vld [vmem:[%s2118_s16 + $0x10] sm:$0xff]  ;;  %v2648_v33 = vsel (%p2113_p10), %vm2151_vm3, 1.0, %v3447_v26 }
 0x4f3   : > { %2115 = sbr.rel (!%p2113_p10) target bundleno = 1263 (0x4ef), region = 725 }
 0x4f4   : >> { %v2127_v19 = vmul.f32 %v2126_v17, %v2107_v13  ;;  %v2128_v58 = vmul.f32 %v2126_v17, %v2108_v14  ;;  %v2129_v20 = vmul.f32 %v2126_v17, %v2109_v15  ;;  %v2130_v21 = vmul.f32 %v2126_v17, %v2110_v16 }
 0x4f6   : >> { %v2131_v22 = vsub.f32 %v2119_v18, %v2127_v19  ;;  %v2132_v23 = vsub.f32 %v2120_v1, %v2128_v58  ;;  %v2133_v24 = vsub.f32 %v2121_v59, %v2129_v20  ;;  %v2134_v25 = vsub.f32 %v2122_v62, %v2130_v21 }
 0x4f8   : >> { %2135 = vst [vmem:[%s2118_s16] sm:$0xff] %v2131_v22  ;;  %2136 = vst [vmem:[%s2118_s16 + $0x8] sm:$0xff] %v2132_v23 }
 0x4f9   : >> { %2137 = vst [vmem:[%s2118_s16 + $0x10] sm:$0xff] %v2133_v24  ;;  %2138 = vst [vmem:[%s2118_s16 + $0x18] sm:$0xff] %v2134_v25 }
 0x500   : > { %v2143_v27 = vld [vmem:[#allocation2 + $0x3f8] sm:$0xff]  ;;  %v2140_v2 = vld [vmem:[#allocation2 + $0x3e0] sm:$0xff]  ;;  %v2141_v38 = vld [vmem:[#allocation2 + $0x3e8] sm:$0xff] }
 0x501   : > { %3043 = vrcp.f32 %v2143_v27  ;;  %v2163_v37 = vsub.f32 %v2143_v27, %v2648_v33  ;;  %v2142_v39 = vld [vmem:[#allocation2 + $0x3f0] sm:$0xff] }
 0x50b   : > { %v3044_v30 = vpop.eup %3043 }
 0x50c   : > { %v2145_v32 = vmul.f32 %v3044_v30, %v2143_v27 }
 0x50e   : > { %v2146_v34 = vsub.f32 2.0, %v2145_v32 }
 0x510   : > { %v2147_v36 = vmul.f32 %v3044_v30, %v2146_v34 }
 0x512   : > { %v2167_v40 = vrot.slane %v2147_v36, %v3724_v7 }
 0x514   : > { %v2168_v41 = vmul.f32 %v2167_v40, %v2140_v2  ;;  %v2169_v42 = vmul.f32 %v2167_v40, %v2141_v38  ;;  %v2170_v43 = vmul.f32 %v2167_v40, %v2142_v39  ;;  %v2171_v44 = vmul.f32 %v2167_v40, %v2163_v37 }
 0x515 LB: >> { %s2649_s19 = sshll.u32 %s3439_s20, 5  ;;  %s2177_s20 = sadd.s32 1, %s3439_s20   ;;  %s3439_s20 = sphi %s3437_s20, %s2177_s20  }
 0x516   : >> { %s2179_s28 = scalar_lea.vmem [#allocation2], %s2649_s19  ;;  %p2174_p7 = scmp.ge.s32.totalorder %s2177_s20, 33  }
 0x517   : >> { %v2183_v4 = vld [vmem:[%s2179_s28 + $0x18] sm:$0xff]  ;;  %v2180_v35 = vld [vmem:[%s2179_s28] sm:$0xff]  ;;  %v2181_v45 = vld [vmem:[%s2179_s28 + $0x8] sm:$0xff]  ;;  %s2655_s26 = sshll.u32 (%p2174_p7), %s3488_s13, 7  ;;  %s2237_s7 = sshll.u32 (%p2174_p7), %s3656_s14, 4  ;;  %s3840_s7 = int_to_ptr.vmem [resolvable:$true] %s2237_s7 }
 0x518   : >> { %v2187_v26 = vrot.slane %v2183_v4, %v3724_v7  ;;  %v2182_v46 = vld [vmem:[%s2179_s28 + $0x10] sm:$0xff]  ;;  %v2200_v51 = vld [vmem:[%s3638_s29] sm:$0xff] (%p2174_p7)  ;;  %v2201_v55 = vld [vmem:[%s3638_s29 + $0x8] sm:$0xff] (%p2174_p7)  ;;  %s3837_s13 = scalar_lea.hbm (%p2174_p7), %s3889_s2, %s2655_s26  ;;  %s3105_s17 = scalar_lea.vmem (%p2174_p7), %s3840_s7, 512 }
 0x519   : > { %2176 = sbr.rel (!%p2174_p7) target bundleno = 1301 (0x515), region = 736  ;;  %v2650_v52 = vld [vmem:[%s3638_s29 + $0x20] sm:$0xff] (%p2174_p7)  ;;  %v2651_v56 = vld [vmem:[%s3638_s29 + $0x28] sm:$0xff] (%p2174_p7)  ;;  %v2202_v7 = vld [vmem:[%s3638_s29 + $0x10] sm:$0xff] (%p2174_p7)  ;;  %p3106_p8 = scmp.ne.s32.totalorder (%p2174_p7), %s3840_s7, %s3105_s17 }
 0x51a   : >> { %v2188_v47 = vmul.f32 %v2187_v26, %v2168_v41  ;;  %v2189_v48 = vmul.f32 %v2187_v26, %v2169_v42  ;;  %v2190_v31 = vmul.f32 %v2187_v26, %v2170_v43  ;;  %v2191_v3 = vmul.f32 %v2187_v26, %v2171_v44  ;;  %v2652_v61 = vld [vmem:[%s3638_s29 + $0x30] sm:$0xff] (%p2174_p7)  ;;  %v2203_v6 = vld [vmem:[%s3638_s29 + $0x18] sm:$0xff] (%p2174_p7)  ;;  %p3900_p9 = scmp.ne.s32.totalorder (%p2174_p7), %s3894_s21, 0  ;;  %s3448_s24 = smov (%p2174_p7), [#allocation8]  }
 0x51b   : > { %v2208_v54 = vadd.f32 (%p2174_p7), %v2650_v52, %v2200_v51  ;;  %v2209_v60 = vadd.f32 (%p2174_p7), %v2651_v56, %v2201_v55  ;;  %v2210_v5 = vadd.f32 (%p2174_p7), %v2652_v61, %v2202_v7  ;;  %v2653_v8 = vld [vmem:[%s3638_s29 + $0x38] sm:$0xff] (%p2174_p7)  ;;  %s2225_s29 = scalar_lea.sflag (%p2174_p7), [#allocation5], %s3626_s30  ;;  %s3109_s4 = sshll.u32 (%p2174_p7), %s3448_s24, 4  ;;  %s3110_s4 = int_to_ptr.vmem [resolvable:$false] %s3109_s4 }
 0x51c   : >> { %v2192_v49 = vsub.f32 %v2180_v35, %v2188_v47  ;;  %v2193_v28 = vsub.f32 %v2181_v45, %v2189_v48  ;;  %v2194_v29 = vsub.f32 %v2182_v46, %v2190_v31  ;;  %v2195_v50 = vsub.f32 %v2183_v4, %v2191_v3  ;;  %p3107_p11 = pnand (%p2174_p7), %p3106_p8, %p3900_p9  ;;  %s3111_s25 = scalar_lea.vmem (%p2174_p7), %s3110_s4, 1024 }
 0x51d   : > { %v2211_v11 = vadd.f32 (%p2174_p7), %v2653_v8, %v2203_v6  ;;  %p3112_p4 = scmp.lt.s32.totalorder (%p2174_p7), %s3840_s7, %s3110_s4  ;;  %p3113_p1 = scmp.lt.s32.totalorder (%p2174_p7), %s3111_s25, %s3105_s17 }
 0x51e   : >> { %2196 = vst [vmem:[%s2179_s28] sm:$0xff] %v2192_v49  ;;  %2197 = vst [vmem:[%s2179_s28 + $0x8] sm:$0xff] %v2193_v28  ;;  %p3108_p0 = pneg (%p2174_p7), %p3107_p11 }
 0x51f   : >> { %2198 = vst [vmem:[%s2179_s28 + $0x10] sm:$0xff] %v2194_v29  ;;  %2199 = vst [vmem:[%s2179_s28 + $0x18] sm:$0xff] %v2195_v50  ;;  %p3114_p3 = por (%p2174_p7), %p3113_p1, %p3112_p4 }
 0x521   : > { %p3115_p5 = pnand %p3114_p3, %p3108_p0 }
 0x526   : > { %v2212_v53 = vld [vmem:[#allocation2 + $0x400] sm:$0xff]  ;;  %v2213_v57 = vld [vmem:[#allocation2 + $0x408] sm:$0xff]  ;;  %v2214_v63 = vld [vmem:[#allocation2 + $0x410] sm:$0xff] }
 0x527   : > { %v2216_v0 = vsub.f32 %v2208_v54, %v2212_v53  ;;  %v2215_v9 = vld [vmem:[#allocation2 + $0x418] sm:$0xff]  ;;  %v2217_v10 = vsub.f32 %v2209_v60, %v2213_v57  ;;  %v2218_v12 = vsub.f32 %v2210_v5, %v2214_v63 }
 0x528   : > { %v2219_v13 = vsub.f32 %v2211_v11, %v2215_v9 }
 0x529   : > { %2220 = vst [vmem:[%s3656_s14] sm:$0xff] %v2216_v0  ;;  %2221 = vst [vmem:[%s3656_s14 + $0x8] sm:$0xff] %v2217_v10 }
 0x52a   : > { %2222 = vst [vmem:[%s3656_s14 + $0x10] sm:$0xff] %v2218_v12  ;;  %2223 = vst [vmem:[%s3656_s14 + $0x18] sm:$0xff] %v2219_v13 }
 0x52b   : > { %3118 = shalt.err (!%p3115_p5)
}
 0x52c   : > { %s3119_s14 = scalar_lea.hbm %s3837_s13, 512  ;;  %s3123_s27 = scalar_lea.hbm %s3889_s2, 1024 }
 0x52d   : > { %p3120_p6 = scmp.ne.s32.totalorder %s3837_s13, %s3119_s14  ;;  %p3124_p12 = scmp.lt.u32.totalorder %s3837_s13, %s3889_s2 }
 0x52e   : > { %p3125_p10 = scmp.lt.u32.totalorder %s3123_s27, %s3119_s14  ;;  %p3127_p8 = scmp.lt.u32.totalorder %s3119_s14, %s3837_s13 }
 0x52f   : > { %p3121_p13 = pnand %p3120_p6, %p3900_p9 }
 0x530   : > { %p3126_p7 = por %p3125_p10, %p3124_p12 }
 0x531   : > { %p3122_p2 = pneg %p3121_p13 }
 0x532   : > { %p3128_p11 = por %p3127_p8, %p3126_p7 }
 0x534   : > { %p3129_p0 = pnand %p3128_p11, %p3122_p2 }
 0x536   : > { %3132 = shalt.err (!%p3129_p0)
}
 0x537   : > { %s3449_s20 = smov 128   ;;  %s3450_s19 = smov 256  }
 0x538   : > { %s3451_s28 = smov 8  }
 0x539   : > { %2662 = dma.vmem_to_hbm [thread:$0]  (%p3900_p9), %s3840_s7, 512, %s3837_s13, %s2225_s29, %s3449_s20, %s3450_s19, %s3451_s28  }
 0x53a PF: > { %s2252_s26 = sand.u32 1, %s3295_s9   ;;  %p3901_p4 = scmp.ne.s32.totalorder %s3895_s22, 0 }
 0x53b   : > { %p3902_p1 = scmp.ge.s32.totalorder %s3307_s12, 2  ;;  %s2253_s6 = scalar_lea.sflag [#allocation5], %s2252_s26 }
 0x53d   : > { %p2672_p3 = pnand %p3902_p1, %p3901_p4 }
 0x53f   : > { %3290 = dma.done.wait (!%p2672_p3), %s2253_s6, 512  }
 0x540   : > { %3292 = vsyncadd (!%p2672_p3), %s2253_s6, 4294966784  ;;  %p18_p5 = scmp.ge.s32.totalorder %s3492_s15, 4   ;;  %s3903_s9 = smov %s3299_s10 }
 0x541   : > { %s3904_s10 = smov %s3303_s11  ;;  %s3905_s11 = smov %s3504_s18 }
 0x542   : > { %s3906_s12 = smov %s3492_s15  ;;  %20 = sbr.rel (!%p18_p5) target bundleno = 7 (0x7), region = 747 }
 0x549   :  { %2258 = vsyncpa [#allocation4], 1 }
 0x54a   :  { %2260 = vsyncpa [#allocation4 + $0x1], 1 }
 0x54b   :  { %2261 = vsyncpa [#allocation7], 1 }
 0x54c   :  { %2263 = vsyncpa [#allocation7 + $0x1], 1 }
 0x54d   :  { %2264 = vsyncpa [#allocation5], 1 }
 0x54e   :  { %2266 = vsyncpa [#allocation5 + $0x1], 1 }

</bundles_post_ra>
